<compile_context>
chip_gen: v7x
topology: tpu7x:2x2x1
jax: 0.10.0
libtpu: 0.0.40
codegen_flags: <defaults>
</compile_context>

<pallas_src>
import functools

import jax
import jax.numpy as jnp
from jax.experimental import pallas as pl
from jax.experimental.pallas import tpu as pltpu

CLAMP_MIN = 0.0
CLAMP_MAX = 0.0

C_IN = 9
C_OUT = 20
KH = KW = 5
PAD = 1
STRIDE = 1

QCHUNK = 512  # lanes of flattened output computed per inner (register-resident) step


def _round_up(x, m):
    return ((x + m - 1) // m) * m


def _fused_conv_clamp_kernel(x_ref, w_ref, b_ref, o_ref, *,
                             wp, mq_pad, qchunk, clamp_min, clamp_max):
    # x_ref: (1, CIN_PAD, FLAT_PAD)      bf16  flattened, spatially padded image
    # w_ref: (KH*KW, COUT_PAD, CIN_PAD)  bf16  per-tap weights (VMEM resident)
    # b_ref: (COUT_PAD, 1)               f32   bias column
    # o_ref: (1, COUT_PAD, MQ_PAD)       bf16  transposed flattened output
    for start in range(0, mq_pad, qchunk):
        qlen = min(qchunk, mq_pad - start)
        acc = None
        for kh in range(KH):
            for kw in range(KW):
                j = kh * KW + kw
                off = kh * wp + kw + start
                xj = x_ref[0, :, off:off + qlen]            # (CIN_PAD, qlen) bf16
                part = jnp.dot(w_ref[j], xj,
                               preferred_element_type=jnp.float32)
                acc = part if acc is None else acc + part
        acc = acc + b_ref[...]                              # (COUT_PAD, 1) broadcast
        acc = jnp.maximum(acc, clamp_min)                   # torch.clamp(x, min=...)
        acc = jnp.minimum(acc, clamp_max)                   # torch.clamp(x, max=...)
        o_ref[0, :, start:start + qlen] = acc.astype(o_ref.dtype)


@functools.partial(jax.jit, static_argnames=("clamp_min", "clamp_max"))
def conv2d_clamp(x_nchw, weight, bias, clamp_min=CLAMP_MIN, clamp_max=CLAMP_MAX):
    """x_nchw: (N, Cin, H, W); weight: (Cout, Cin, KH, KW); bias: (Cout,)."""
    n, c_in, h, w = x_nchw.shape
    c_out = weight.shape[0]
    oh = (h + 2 * PAD - KH) // STRIDE + 1
    ow = (w + 2 * PAD - KW) // STRIDE + 1
    hp, wp = h + 2 * PAD, w + 2 * PAD

    cin_pad = _round_up(c_in, 8)        # 9  -> 16 (explicit zero K padding)
    cout_pad = _round_up(c_out, 8)      # 20 -> 24 (sublane dim of output)

    mq = oh * wp                        # flattened output extent (incl. Wp-OW slack cols)
    mq_pad = _round_up(mq, 128)
    qchunk = min(QCHUNK, mq_pad)
    max_off = (KH - 1) * wp + (KW - 1)
    flat_pad = _round_up(max(hp * wp, max_off + mq_pad), 128)

    # --- glue (no im2col, no amplification): bf16 pad -> flatten ---
    xp = jnp.pad(x_nchw.astype(jnp.bfloat16),
                 ((0, 0), (0, cin_pad - c_in), (PAD, PAD), (PAD, PAD)))
    xflat = jnp.pad(xp.reshape(n, cin_pad, hp * wp),
                    ((0, 0), (0, 0), (0, flat_pad - hp * wp)))

    # per-tap weights: w_all[kh*KW + kw, cout, cin] = weight[cout, cin, kh, kw]
    w_all = jnp.transpose(weight, (2, 3, 0, 1)).reshape(KH * KW, c_out, c_in)
    w_all = jnp.pad(w_all, ((0, 0), (0, cout_pad - c_out),
                            (0, cin_pad - c_in))).astype(jnp.bfloat16)
    b_col = jnp.pad(bias, (0, cout_pad - c_out)).reshape(cout_pad, 1).astype(jnp.float32)

    kernel = functools.partial(
        _fused_conv_clamp_kernel, wp=wp, mq_pad=mq_pad, qchunk=qchunk,
        clamp_min=float(clamp_min), clamp_max=float(clamp_max))

    cost = pl.CostEstimate(
        flops=2 * n * KH * KW * cout_pad * cin_pad * mq_pad,
        transcendentals=0,
        bytes_accessed=(n * cin_pad * flat_pad * 2         # bf16 input
                        + KH * KW * cout_pad * cin_pad * 2  # bf16 weights
                        + cout_pad * 4                      # f32 bias
                        + n * cout_pad * mq_pad * 2),       # bf16 output
    )

    out_flat = pl.pallas_call(
        kernel,
        out_shape=jax.ShapeDtypeStruct((n, cout_pad, mq_pad), jnp.bfloat16),
        grid_spec=pl.GridSpec(
            grid=(n,),
            in_specs=[
                pl.BlockSpec((1, cin_pad, flat_pad), lambda b: (b, 0, 0)),       # image
                pl.BlockSpec((KH * KW, cout_pad, cin_pad), lambda b: (0, 0, 0)),  # weights
                pl.BlockSpec((cout_pad, 1), lambda b: (0, 0)),                    # bias
            ],
            out_specs=pl.BlockSpec((1, cout_pad, mq_pad), lambda b: (b, 0, 0)),
        ),
        compiler_params=pltpu.CompilerParams(
            dimension_semantics=("parallel",)),
        cost_estimate=cost,
    )(xflat, w_all, b_col)

    # --- glue: slice off channel / lane padding; result is already NCHW ---
    out = out_flat[:, :c_out, :mq].reshape(n, c_out, oh, wp)[:, :, :, :ow]
    return out.astype(jnp.float32)


def _reference(x_nchw, weight, bias, clamp_min=CLAMP_MIN, clamp_max=CLAMP_MAX):
    conv = jax.lax.conv_general_dilated(
        x_nchw.astype(jnp.float32),
        weight.astype(jnp.float32),
        window_strides=(STRIDE, STRIDE),
        padding=((PAD, PAD), (PAD, PAD)),
        dimension_numbers=("NCHW", "OIHW", "NCHW"),
    ) + bias.reshape(1, -1, 1, 1)
    return jnp.minimum(jnp.maximum(conv, clamp_min), clamp_max)


if __name__ == "__main__":
    key = jax.random.PRNGKey(0)
    kx, kw_, kb = jax.random.split(key, 3)

    # Small shapes consistent with the module (Cin must be 9).
    N, H, W = 2, 32, 32
    x = jax.random.normal(kx, (N, C_IN, H, W), dtype=jnp.float32)

    # Deterministic parameter init (PyTorch-style uniform bound).
    fan_in = C_IN * KH * KW
    bound = 1.0 / (fan_in ** 0.5)
    weight = jax.random.uniform(
        kw_, (C_OUT, C_IN, KH, KW), minval=-bound, maxval=bound, dtype=jnp.float32)
    bias = jax.random.uniform(
        kb, (C_OUT,), minval=-bound, maxval=bound, dtype=jnp.float32)

    oh = (H + 2 * PAD - KH) // STRIDE + 1
    ow = (W + 2 * PAD - KW) // STRIDE + 1

    # Module semantics: clamp(min=0.0) then clamp(max=0.0) -> identically zero.
    out = jax.block_until_ready(conv2d_clamp(x, weight, bias))
    ref = _reference(x, weight, bias)
    assert out.shape == (N, C_OUT, oh, ow)
    assert jnp.allclose(out, ref, atol=1e-5, rtol=1e-5)

    # Sanity check of the conv+bias+clamp path with non-degenerate bounds
    # (bf16 operands + bf16 store, f32 accumulate -> generous tolerance).
    out2 = jax.block_until_ready(
        conv2d_clamp(x, weight, bias, clamp_min=-0.25, clamp_max=0.25))
    ref2 = _reference(x, weight, bias, clamp_min=-0.25, clamp_max=0.25)
    assert jnp.allclose(out2, ref2, atol=5e-2, rtol=5e-2)

    print("KERNEL_OK")
</pallas_src>

<mosaic_0001>
module attributes {stable_mosaic.version = 11 : i64} {
  func.func @_fused_conv_clamp_kernel(%arg0: i32, %arg1: memref<1x16x1280xbf16, #tpu.memory_space<vmem>>, %arg2: memref<25x24x16xbf16, #tpu.memory_space<vmem>>, %arg3: memref<24x1xf32, #tpu.memory_space<vmem>>, %arg4: memref<1x24x1024xbf16, #tpu.memory_space<vmem>>) attributes {dimension_semantics = [#tpu.dimension_semantics<parallel>], iteration_bounds = array<i64: 2>, scalar_prefetch = 0 : i64, scratch_operands = 0 : i64, tpu.core_type = #tpu.core_type<tc>, window_params = [{transform_indices = @transform_0, window_bounds = array<i64: 1, 16, 1280>}, {pipeline_mode = #tpu.pipeline_mode<synchronous>, transform_indices = @transform_1, window_bounds = array<i64: 25, 24, 16>}, {pipeline_mode = #tpu.pipeline_mode<synchronous>, transform_indices = @transform_2, window_bounds = array<i64: 24, 1>}, {transform_indices = @transform_3, window_bounds = array<i64: 1, 24, 1024>}]} {
    %c0 = arith.constant 0 : index
    %c0_0 = arith.constant 0 : index
    %c0_1 = arith.constant 0 : index
    %0 = vector.load %arg1[%c0, %c0_0, %c0_1] : memref<1x16x1280xbf16, #tpu.memory_space<vmem>>, vector<1x16x512xbf16>
    %1 = vector.shape_cast %0 : vector<1x16x512xbf16> to vector<16x512xbf16>
    %c0_2 = arith.constant 0 : index
    %c0_3 = arith.constant 0 : index
    %c0_4 = arith.constant 0 : index
    %2 = vector.load %arg2[%c0_2, %c0_3, %c0_4] : memref<25x24x16xbf16, #tpu.memory_space<vmem>>, vector<1x24x16xbf16>
    %3 = vector.shape_cast %2 : vector<1x24x16xbf16> to vector<24x16xbf16>
    %cst = arith.constant dense<0.000000e+00> : vector<24x512xf32>
    %4 = tpu.matmul %3, %1, %cst {dimension_numbers = #tpu.dot_dimension_numbers<[1], [0], [0], [1], [0, 0, 1, 1], [], []>} : vector<24x16xbf16>, vector<16x512xbf16>, vector<24x512xf32> -> vector<24x512xf32>
    %c0_5 = arith.constant 0 : index
    %c0_6 = arith.constant 0 : index
    %c1 = arith.constant 1 : index
    %5 = vector.load %arg1[%c0_5, %c0_6, %c1] : memref<1x16x1280xbf16, #tpu.memory_space<vmem>>, vector<1x16x512xbf16>
    %6 = vector.shape_cast %5 : vector<1x16x512xbf16> to vector<16x512xbf16>
    %c1_7 = arith.constant 1 : index
    %c0_8 = arith.constant 0 : index
    %c0_9 = arith.constant 0 : index
    %7 = vector.load %arg2[%c1_7, %c0_8, %c0_9] : memref<25x24x16xbf16, #tpu.memory_space<vmem>>, vector<1x24x16xbf16>
    %8 = vector.shape_cast %7 : vector<1x24x16xbf16> to vector<24x16xbf16>
    %cst_10 = arith.constant dense<0.000000e+00> : vector<24x512xf32>
    %9 = tpu.matmul %8, %6, %cst_10 {dimension_numbers = #tpu.dot_dimension_numbers<[1], [0], [0], [1], [0, 0, 1, 1], [], []>} : vector<24x16xbf16>, vector<16x512xbf16>, vector<24x512xf32> -> vector<24x512xf32>
    %10 = arith.addf %4, %9 : vector<24x512xf32>
    %c0_11 = arith.constant 0 : index
    %c0_12 = arith.constant 0 : index
    %c2 = arith.constant 2 : index
    %11 = vector.load %arg1[%c0_11, %c0_12, %c2] : memref<1x16x1280xbf16, #tpu.memory_space<vmem>>, vector<1x16x512xbf16>
    %12 = vector.shape_cast %11 : vector<1x16x512xbf16> to vector<16x512xbf16>
    %c2_13 = arith.constant 2 : index
    %c0_14 = arith.constant 0 : index
    %c0_15 = arith.constant 0 : index
    %13 = vector.load %arg2[%c2_13, %c0_14, %c0_15] : memref<25x24x16xbf16, #tpu.memory_space<vmem>>, vector<1x24x16xbf16>
    %14 = vector.shape_cast %13 : vector<1x24x16xbf16> to vector<24x16xbf16>
    %cst_16 = arith.constant dense<0.000000e+00> : vector<24x512xf32>
    %15 = tpu.matmul %14, %12, %cst_16 {dimension_numbers = #tpu.dot_dimension_numbers<[1], [0], [0], [1], [0, 0, 1, 1], [], []>} : vector<24x16xbf16>, vector<16x512xbf16>, vector<24x512xf32> -> vector<24x512xf32>
    %16 = arith.addf %10, %15 : vector<24x512xf32>
    %c0_17 = arith.constant 0 : index
    %c0_18 = arith.constant 0 : index
    %c3 = arith.constant 3 : index
    %17 = vector.load %arg1[%c0_17, %c0_18, %c3] : memref<1x16x1280xbf16, #tpu.memory_space<vmem>>, vector<1x16x512xbf16>
    %18 = vector.shape_cast %17 : vector<1x16x512xbf16> to vector<16x512xbf16>
    %c3_19 = arith.constant 3 : index
    %c0_20 = arith.constant 0 : index
    %c0_21 = arith.constant 0 : index
    %19 = vector.load %arg2[%c3_19, %c0_20, %c0_21] : memref<25x24x16xbf16, #tpu.memory_space<vmem>>, vector<1x24x16xbf16>
    %20 = vector.shape_cast %19 : vector<1x24x16xbf16> to vector<24x16xbf16>
    %cst_22 = arith.constant dense<0.000000e+00> : vector<24x512xf32>
    %21 = tpu.matmul %20, %18, %cst_22 {dimension_numbers = #tpu.dot_dimension_numbers<[1], [0], [0], [1], [0, 0, 1, 1], [], []>} : vector<24x16xbf16>, vector<16x512xbf16>, vector<24x512xf32> -> vector<24x512xf32>
    %22 = arith.addf %16, %21 : vector<24x512xf32>
    %c0_23 = arith.constant 0 : index
    %c0_24 = arith.constant 0 : index
    %c4 = arith.constant 4 : index
    %23 = vector.load %arg1[%c0_23, %c0_24, %c4] : memref<1x16x1280xbf16, #tpu.memory_space<vmem>>, vector<1x16x512xbf16>
    %24 = vector.shape_cast %23 : vector<1x16x512xbf16> to vector<16x512xbf16>
    %c4_25 = arith.constant 4 : index
    %c0_26 = arith.constant 0 : index
    %c0_27 = arith.constant 0 : index
    %25 = vector.load %arg2[%c4_25, %c0_26, %c0_27] : memref<25x24x16xbf16, #tpu.memory_space<vmem>>, vector<1x24x16xbf16>
    %26 = vector.shape_cast %25 : vector<1x24x16xbf16> to vector<24x16xbf16>
    %cst_28 = arith.constant dense<0.000000e+00> : vector<24x512xf32>
    %27 = tpu.matmul %26, %24, %cst_28 {dimension_numbers = #tpu.dot_dimension_numbers<[1], [0], [0], [1], [0, 0, 1, 1], [], []>} : vector<24x16xbf16>, vector<16x512xbf16>, vector<24x512xf32> -> vector<24x512xf32>
    %28 = arith.addf %22, %27 : vector<24x512xf32>
    %c0_29 = arith.constant 0 : index
    %c0_30 = arith.constant 0 : index
    %c34 = arith.constant 34 : index
    %29 = vector.load %arg1[%c0_29, %c0_30, %c34] : memref<1x16x1280xbf16, #tpu.memory_space<vmem>>, vector<1x16x512xbf16>
    %30 = vector.shape_cast %29 : vector<1x16x512xbf16> to vector<16x512xbf16>
    %c5 = arith.constant 5 : index
    %c0_31 = arith.constant 0 : index
    %c0_32 = arith.constant 0 : index
    %31 = vector.load %arg2[%c5, %c0_31, %c0_32] : memref<25x24x16xbf16, #tpu.memory_space<vmem>>, vector<1x24x16xbf16>
    %32 = vector.shape_cast %31 : vector<1x24x16xbf16> to vector<24x16xbf16>
    %cst_33 = arith.constant dense<0.000000e+00> : vector<24x512xf32>
    %33 = tpu.matmul %32, %30, %cst_33 {dimension_numbers = #tpu.dot_dimension_numbers<[1], [0], [0], [1], [0, 0, 1, 1], [], []>} : vector<24x16xbf16>, vector<16x512xbf16>, vector<24x512xf32> -> vector<24x512xf32>
    %34 = arith.addf %28, %33 : vector<24x512xf32>
    %c0_34 = arith.constant 0 : index
    %c0_35 = arith.constant 0 : index
    %c35 = arith.constant 35 : index
    %35 = vector.load %arg1[%c0_34, %c0_35, %c35] : memref<1x16x1280xbf16, #tpu.memory_space<vmem>>, vector<1x16x512xbf16>
    %36 = vector.shape_cast %35 : vector<1x16x512xbf16> to vector<16x512xbf16>
    %c6 = arith.constant 6 : index
    %c0_36 = arith.constant 0 : index
    %c0_37 = arith.constant 0 : index
    %37 = vector.load %arg2[%c6, %c0_36, %c0_37] : memref<25x24x16xbf16, #tpu.memory_space<vmem>>, vector<1x24x16xbf16>
    %38 = vector.shape_cast %37 : vector<1x24x16xbf16> to vector<24x16xbf16>
    %cst_38 = arith.constant dense<0.000000e+00> : vector<24x512xf32>
    %39 = tpu.matmul %38, %36, %cst_38 {dimension_numbers = #tpu.dot_dimension_numbers<[1], [0], [0], [1], [0, 0, 1, 1], [], []>} : vector<24x16xbf16>, vector<16x512xbf16>, vector<24x512xf32> -> vector<24x512xf32>
    %40 = arith.addf %34, %39 : vector<24x512xf32>
    %c0_39 = arith.constant 0 : index
    %c0_40 = arith.constant 0 : index
    %c36 = arith.constant 36 : index
    %41 = vector.load %arg1[%c0_39, %c0_40, %c36] : memref<1x16x1280xbf16, #tpu.memory_space<vmem>>, vector<1x16x512xbf16>
    %42 = vector.shape_cast %41 : vector<1x16x512xbf16> to vector<16x512xbf16>
    %c7 = arith.constant 7 : index
    %c0_41 = arith.constant 0 : index
    %c0_42 = arith.constant 0 : index
    %43 = vector.load %arg2[%c7, %c0_41, %c0_42] : memref<25x24x16xbf16, #tpu.memory_space<vmem>>, vector<1x24x16xbf16>
    %44 = vector.shape_cast %43 : vector<1x24x16xbf16> to vector<24x16xbf16>
    %cst_43 = arith.constant dense<0.000000e+00> : vector<24x512xf32>
    %45 = tpu.matmul %44, %42, %cst_43 {dimension_numbers = #tpu.dot_dimension_numbers<[1], [0], [0], [1], [0, 0, 1, 1], [], []>} : vector<24x16xbf16>, vector<16x512xbf16>, vector<24x512xf32> -> vector<24x512xf32>
    %46 = arith.addf %40, %45 : vector<24x512xf32>
    %c0_44 = arith.constant 0 : index
    %c0_45 = arith.constant 0 : index
    %c37 = arith.constant 37 : index
    %47 = vector.load %arg1[%c0_44, %c0_45, %c37] : memref<1x16x1280xbf16, #tpu.memory_space<vmem>>, vector<1x16x512xbf16>
    %48 = vector.shape_cast %47 : vector<1x16x512xbf16> to vector<16x512xbf16>
    %c8 = arith.constant 8 : index
    %c0_46 = arith.constant 0 : index
    %c0_47 = arith.constant 0 : index
    %49 = vector.load %arg2[%c8, %c0_46, %c0_47] : memref<25x24x16xbf16, #tpu.memory_space<vmem>>, vector<1x24x16xbf16>
    %50 = vector.shape_cast %49 : vector<1x24x16xbf16> to vector<24x16xbf16>
    %cst_48 = arith.constant dense<0.000000e+00> : vector<24x512xf32>
    %51 = tpu.matmul %50, %48, %cst_48 {dimension_numbers = #tpu.dot_dimension_numbers<[1], [0], [0], [1], [0, 0, 1, 1], [], []>} : vector<24x16xbf16>, vector<16x512xbf16>, vector<24x512xf32> -> vector<24x512xf32>
    %52 = arith.addf %46, %51 : vector<24x512xf32>
    %c0_49 = arith.constant 0 : index
    %c0_50 = arith.constant 0 : index
    %c38 = arith.constant 38 : index
    %53 = vector.load %arg1[%c0_49, %c0_50, %c38] : memref<1x16x1280xbf16, #tpu.memory_space<vmem>>, vector<1x16x512xbf16>
    %54 = vector.shape_cast %53 : vector<1x16x512xbf16> to vector<16x512xbf16>
    %c9 = arith.constant 9 : index
    %c0_51 = arith.constant 0 : index
    %c0_52 = arith.constant 0 : index
    %55 = vector.load %arg2[%c9, %c0_51, %c0_52] : memref<25x24x16xbf16, #tpu.memory_space<vmem>>, vector<1x24x16xbf16>
    %56 = vector.shape_cast %55 : vector<1x24x16xbf16> to vector<24x16xbf16>
    %cst_53 = arith.constant dense<0.000000e+00> : vector<24x512xf32>
    %57 = tpu.matmul %56, %54, %cst_53 {dimension_numbers = #tpu.dot_dimension_numbers<[1], [0], [0], [1], [0, 0, 1, 1], [], []>} : vector<24x16xbf16>, vector<16x512xbf16>, vector<24x512xf32> -> vector<24x512xf32>
    %58 = arith.addf %52, %57 : vector<24x512xf32>
    %c0_54 = arith.constant 0 : index
    %c0_55 = arith.constant 0 : index
    %c68 = arith.constant 68 : index
    %59 = vector.load %arg1[%c0_54, %c0_55, %c68] : memref<1x16x1280xbf16, #tpu.memory_space<vmem>>, vector<1x16x512xbf16>
    %60 = vector.shape_cast %59 : vector<1x16x512xbf16> to vector<16x512xbf16>
    %c10 = arith.constant 10 : index
    %c0_56 = arith.constant 0 : index
    %c0_57 = arith.constant 0 : index
    %61 = vector.load %arg2[%c10, %c0_56, %c0_57] : memref<25x24x16xbf16, #tpu.memory_space<vmem>>, vector<1x24x16xbf16>
    %62 = vector.shape_cast %61 : vector<1x24x16xbf16> to vector<24x16xbf16>
    %cst_58 = arith.constant dense<0.000000e+00> : vector<24x512xf32>
    %63 = tpu.matmul %62, %60, %cst_58 {dimension_numbers = #tpu.dot_dimension_numbers<[1], [0], [0], [1], [0, 0, 1, 1], [], []>} : vector<24x16xbf16>, vector<16x512xbf16>, vector<24x512xf32> -> vector<24x512xf32>
    %64 = arith.addf %58, %63 : vector<24x512xf32>
    %c0_59 = arith.constant 0 : index
    %c0_60 = arith.constant 0 : index
    %c69 = arith.constant 69 : index
    %65 = vector.load %arg1[%c0_59, %c0_60, %c69] : memref<1x16x1280xbf16, #tpu.memory_space<vmem>>, vector<1x16x512xbf16>
    %66 = vector.shape_cast %65 : vector<1x16x512xbf16> to vector<16x512xbf16>
    %c11 = arith.constant 11 : index
    %c0_61 = arith.constant 0 : index
    %c0_62 = arith.constant 0 : index
    %67 = vector.load %arg2[%c11, %c0_61, %c0_62] : memref<25x24x16xbf16, #tpu.memory_space<vmem>>, vector<1x24x16xbf16>
    %68 = vector.shape_cast %67 : vector<1x24x16xbf16> to vector<24x16xbf16>
    %cst_63 = arith.constant dense<0.000000e+00> : vector<24x512xf32>
    %69 = tpu.matmul %68, %66, %cst_63 {dimension_numbers = #tpu.dot_dimension_numbers<[1], [0], [0], [1], [0, 0, 1, 1], [], []>} : vector<24x16xbf16>, vector<16x512xbf16>, vector<24x512xf32> -> vector<24x512xf32>
    %70 = arith.addf %64, %69 : vector<24x512xf32>
    %c0_64 = arith.constant 0 : index
    %c0_65 = arith.constant 0 : index
    %c70 = arith.constant 70 : index
    %71 = vector.load %arg1[%c0_64, %c0_65, %c70] : memref<1x16x1280xbf16, #tpu.memory_space<vmem>>, vector<1x16x512xbf16>
    %72 = vector.shape_cast %71 : vector<1x16x512xbf16> to vector<16x512xbf16>
    %c12 = arith.constant 12 : index
    %c0_66 = arith.constant 0 : index
    %c0_67 = arith.constant 0 : index
    %73 = vector.load %arg2[%c12, %c0_66, %c0_67] : memref<25x24x16xbf16, #tpu.memory_space<vmem>>, vector<1x24x16xbf16>
    %74 = vector.shape_cast %73 : vector<1x24x16xbf16> to vector<24x16xbf16>
    %cst_68 = arith.constant dense<0.000000e+00> : vector<24x512xf32>
    %75 = tpu.matmul %74, %72, %cst_68 {dimension_numbers = #tpu.dot_dimension_numbers<[1], [0], [0], [1], [0, 0, 1, 1], [], []>} : vector<24x16xbf16>, vector<16x512xbf16>, vector<24x512xf32> -> vector<24x512xf32>
    %76 = arith.addf %70, %75 : vector<24x512xf32>
    %c0_69 = arith.constant 0 : index
    %c0_70 = arith.constant 0 : index
    %c71 = arith.constant 71 : index
    %77 = vector.load %arg1[%c0_69, %c0_70, %c71] : memref<1x16x1280xbf16, #tpu.memory_space<vmem>>, vector<1x16x512xbf16>
    %78 = vector.shape_cast %77 : vector<1x16x512xbf16> to vector<16x512xbf16>
    %c13 = arith.constant 13 : index
    %c0_71 = arith.constant 0 : index
    %c0_72 = arith.constant 0 : index
    %79 = vector.load %arg2[%c13, %c0_71, %c0_72] : memref<25x24x16xbf16, #tpu.memory_space<vmem>>, vector<1x24x16xbf16>
    %80 = vector.shape_cast %79 : vector<1x24x16xbf16> to vector<24x16xbf16>
    %cst_73 = arith.constant dense<0.000000e+00> : vector<24x512xf32>
    %81 = tpu.matmul %80, %78, %cst_73 {dimension_numbers = #tpu.dot_dimension_numbers<[1], [0], [0], [1], [0, 0, 1, 1], [], []>} : vector<24x16xbf16>, vector<16x512xbf16>, vector<24x512xf32> -> vector<24x512xf32>
    %82 = arith.addf %76, %81 : vector<24x512xf32>
    %c0_74 = arith.constant 0 : index
    %c0_75 = arith.constant 0 : index
    %c72 = arith.constant 72 : index
    %83 = vector.load %arg1[%c0_74, %c0_75, %c72] : memref<1x16x1280xbf16, #tpu.memory_space<vmem>>, vector<1x16x512xbf16>
    %84 = vector.shape_cast %83 : vector<1x16x512xbf16> to vector<16x512xbf16>
    %c14 = arith.constant 14 : index
    %c0_76 = arith.constant 0 : index
    %c0_77 = arith.constant 0 : index
    %85 = vector.load %arg2[%c14, %c0_76, %c0_77] : memref<25x24x16xbf16, #tpu.memory_space<vmem>>, vector<1x24x16xbf16>
    %86 = vector.shape_cast %85 : vector<1x24x16xbf16> to vector<24x16xbf16>
    %cst_78 = arith.constant dense<0.000000e+00> : vector<24x512xf32>
    %87 = tpu.matmul %86, %84, %cst_78 {dimension_numbers = #tpu.dot_dimension_numbers<[1], [0], [0], [1], [0, 0, 1, 1], [], []>} : vector<24x16xbf16>, vector<16x512xbf16>, vector<24x512xf32> -> vector<24x512xf32>
    %88 = arith.addf %82, %87 : vector<24x512xf32>
    %c0_79 = arith.constant 0 : index
    %c0_80 = arith.constant 0 : index
    %c102 = arith.constant 102 : index
    %89 = vector.load %arg1[%c0_79, %c0_80, %c102] : memref<1x16x1280xbf16, #tpu.memory_space<vmem>>, vector<1x16x512xbf16>
    %90 = vector.shape_cast %89 : vector<1x16x512xbf16> to vector<16x512xbf16>
    %c15 = arith.constant 15 : index
    %c0_81 = arith.constant 0 : index
    %c0_82 = arith.constant 0 : index
    %91 = vector.load %arg2[%c15, %c0_81, %c0_82] : memref<25x24x16xbf16, #tpu.memory_space<vmem>>, vector<1x24x16xbf16>
    %92 = vector.shape_cast %91 : vector<1x24x16xbf16> to vector<24x16xbf16>
    %cst_83 = arith.constant dense<0.000000e+00> : vector<24x512xf32>
    %93 = tpu.matmul %92, %90, %cst_83 {dimension_numbers = #tpu.dot_dimension_numbers<[1], [0], [0], [1], [0, 0, 1, 1], [], []>} : vector<24x16xbf16>, vector<16x512xbf16>, vector<24x512xf32> -> vector<24x512xf32>
    %94 = arith.addf %88, %93 : vector<24x512xf32>
    %c0_84 = arith.constant 0 : index
    %c0_85 = arith.constant 0 : index
    %c103 = arith.constant 103 : index
    %95 = vector.load %arg1[%c0_84, %c0_85, %c103] : memref<1x16x1280xbf16, #tpu.memory_space<vmem>>, vector<1x16x512xbf16>
    %96 = vector.shape_cast %95 : vector<1x16x512xbf16> to vector<16x512xbf16>
    %c16 = arith.constant 16 : index
    %c0_86 = arith.constant 0 : index
    %c0_87 = arith.constant 0 : index
    %97 = vector.load %arg2[%c16, %c0_86, %c0_87] : memref<25x24x16xbf16, #tpu.memory_space<vmem>>, vector<1x24x16xbf16>
    %98 = vector.shape_cast %97 : vector<1x24x16xbf16> to vector<24x16xbf16>
    %cst_88 = arith.constant dense<0.000000e+00> : vector<24x512xf32>
    %99 = tpu.matmul %98, %96, %cst_88 {dimension_numbers = #tpu.dot_dimension_numbers<[1], [0], [0], [1], [0, 0, 1, 1], [], []>} : vector<24x16xbf16>, vector<16x512xbf16>, vector<24x512xf32> -> vector<24x512xf32>
    %100 = arith.addf %94, %99 : vector<24x512xf32>
    %c0_89 = arith.constant 0 : index
    %c0_90 = arith.constant 0 : index
    %c104 = arith.constant 104 : index
    %101 = vector.load %arg1[%c0_89, %c0_90, %c104] : memref<1x16x1280xbf16, #tpu.memory_space<vmem>>, vector<1x16x512xbf16>
    %102 = vector.shape_cast %101 : vector<1x16x512xbf16> to vector<16x512xbf16>
    %c17 = arith.constant 17 : index
    %c0_91 = arith.constant 0 : index
    %c0_92 = arith.constant 0 : index
    %103 = vector.load %arg2[%c17, %c0_91, %c0_92] : memref<25x24x16xbf16, #tpu.memory_space<vmem>>, vector<1x24x16xbf16>
    %104 = vector.shape_cast %103 : vector<1x24x16xbf16> to vector<24x16xbf16>
    %cst_93 = arith.constant dense<0.000000e+00> : vector<24x512xf32>
    %105 = tpu.matmul %104, %102, %cst_93 {dimension_numbers = #tpu.dot_dimension_numbers<[1], [0], [0], [1], [0, 0, 1, 1], [], []>} : vector<24x16xbf16>, vector<16x512xbf16>, vector<24x512xf32> -> vector<24x512xf32>
    %106 = arith.addf %100, %105 : vector<24x512xf32>
    %c0_94 = arith.constant 0 : index
    %c0_95 = arith.constant 0 : index
    %c105 = arith.constant 105 : index
    %107 = vector.load %arg1[%c0_94, %c0_95, %c105] : memref<1x16x1280xbf16, #tpu.memory_space<vmem>>, vector<1x16x512xbf16>
    %108 = vector.shape_cast %107 : vector<1x16x512xbf16> to vector<16x512xbf16>
    %c18 = arith.constant 18 : index
    %c0_96 = arith.constant 0 : index
    %c0_97 = arith.constant 0 : index
    %109 = vector.load %arg2[%c18, %c0_96, %c0_97] : memref<25x24x16xbf16, #tpu.memory_space<vmem>>, vector<1x24x16xbf16>
    %110 = vector.shape_cast %109 : vector<1x24x16xbf16> to vector<24x16xbf16>
    %cst_98 = arith.constant dense<0.000000e+00> : vector<24x512xf32>
    %111 = tpu.matmul %110, %108, %cst_98 {dimension_numbers = #tpu.dot_dimension_numbers<[1], [0], [0], [1], [0, 0, 1, 1], [], []>} : vector<24x16xbf16>, vector<16x512xbf16>, vector<24x512xf32> -> vector<24x512xf32>
    %112 = arith.addf %106, %111 : vector<24x512xf32>
    %c0_99 = arith.constant 0 : index
    %c0_100 = arith.constant 0 : index
    %c106 = arith.constant 106 : index
    %113 = vector.load %arg1[%c0_99, %c0_100, %c106] : memref<1x16x1280xbf16, #tpu.memory_space<vmem>>, vector<1x16x512xbf16>
    %114 = vector.shape_cast %113 : vector<1x16x512xbf16> to vector<16x512xbf16>
    %c19 = arith.constant 19 : index
    %c0_101 = arith.constant 0 : index
    %c0_102 = arith.constant 0 : index
    %115 = vector.load %arg2[%c19, %c0_101, %c0_102] : memref<25x24x16xbf16, #tpu.memory_space<vmem>>, vector<1x24x16xbf16>
    %116 = vector.shape_cast %115 : vector<1x24x16xbf16> to vector<24x16xbf16>
    %cst_103 = arith.constant dense<0.000000e+00> : vector<24x512xf32>
    %117 = tpu.matmul %116, %114, %cst_103 {dimension_numbers = #tpu.dot_dimension_numbers<[1], [0], [0], [1], [0, 0, 1, 1], [], []>} : vector<24x16xbf16>, vector<16x512xbf16>, vector<24x512xf32> -> vector<24x512xf32>
    %118 = arith.addf %112, %117 : vector<24x512xf32>
    %c0_104 = arith.constant 0 : index
    %c0_105 = arith.constant 0 : index
    %c136 = arith.constant 136 : index
    %119 = vector.load %arg1[%c0_104, %c0_105, %c136] : memref<1x16x1280xbf16, #tpu.memory_space<vmem>>, vector<1x16x512xbf16>
    %120 = vector.shape_cast %119 : vector<1x16x512xbf16> to vector<16x512xbf16>
    %c20 = arith.constant 20 : index
    %c0_106 = arith.constant 0 : index
    %c0_107 = arith.constant 0 : index
    %121 = vector.load %arg2[%c20, %c0_106, %c0_107] : memref<25x24x16xbf16, #tpu.memory_space<vmem>>, vector<1x24x16xbf16>
    %122 = vector.shape_cast %121 : vector<1x24x16xbf16> to vector<24x16xbf16>
    %cst_108 = arith.constant dense<0.000000e+00> : vector<24x512xf32>
    %123 = tpu.matmul %122, %120, %cst_108 {dimension_numbers = #tpu.dot_dimension_numbers<[1], [0], [0], [1], [0, 0, 1, 1], [], []>} : vector<24x16xbf16>, vector<16x512xbf16>, vector<24x512xf32> -> vector<24x512xf32>
    %124 = arith.addf %118, %123 : vector<24x512xf32>
    %c0_109 = arith.constant 0 : index
    %c0_110 = arith.constant 0 : index
    %c137 = arith.constant 137 : index
    %125 = vector.load %arg1[%c0_109, %c0_110, %c137] : memref<1x16x1280xbf16, #tpu.memory_space<vmem>>, vector<1x16x512xbf16>
    %126 = vector.shape_cast %125 : vector<1x16x512xbf16> to vector<16x512xbf16>
    %c21 = arith.constant 21 : index
    %c0_111 = arith.constant 0 : index
    %c0_112 = arith.constant 0 : index
    %127 = vector.load %arg2[%c21, %c0_111, %c0_112] : memref<25x24x16xbf16, #tpu.memory_space<vmem>>, vector<1x24x16xbf16>
    %128 = vector.shape_cast %127 : vector<1x24x16xbf16> to vector<24x16xbf16>
    %cst_113 = arith.constant dense<0.000000e+00> : vector<24x512xf32>
    %129 = tpu.matmul %128, %126, %cst_113 {dimension_numbers = #tpu.dot_dimension_numbers<[1], [0], [0], [1], [0, 0, 1, 1], [], []>} : vector<24x16xbf16>, vector<16x512xbf16>, vector<24x512xf32> -> vector<24x512xf32>
    %130 = arith.addf %124, %129 : vector<24x512xf32>
    %c0_114 = arith.constant 0 : index
    %c0_115 = arith.constant 0 : index
    %c138 = arith.constant 138 : index
    %131 = vector.load %arg1[%c0_114, %c0_115, %c138] : memref<1x16x1280xbf16, #tpu.memory_space<vmem>>, vector<1x16x512xbf16>
    %132 = vector.shape_cast %131 : vector<1x16x512xbf16> to vector<16x512xbf16>
    %c22 = arith.constant 22 : index
    %c0_116 = arith.constant 0 : index
    %c0_117 = arith.constant 0 : index
    %133 = vector.load %arg2[%c22, %c0_116, %c0_117] : memref<25x24x16xbf16, #tpu.memory_space<vmem>>, vector<1x24x16xbf16>
    %134 = vector.shape_cast %133 : vector<1x24x16xbf16> to vector<24x16xbf16>
    %cst_118 = arith.constant dense<0.000000e+00> : vector<24x512xf32>
    %135 = tpu.matmul %134, %132, %cst_118 {dimension_numbers = #tpu.dot_dimension_numbers<[1], [0], [0], [1], [0, 0, 1, 1], [], []>} : vector<24x16xbf16>, vector<16x512xbf16>, vector<24x512xf32> -> vector<24x512xf32>
    %136 = arith.addf %130, %135 : vector<24x512xf32>
    %c0_119 = arith.constant 0 : index
    %c0_120 = arith.constant 0 : index
    %c139 = arith.constant 139 : index
    %137 = vector.load %arg1[%c0_119, %c0_120, %c139] : memref<1x16x1280xbf16, #tpu.memory_space<vmem>>, vector<1x16x512xbf16>
    %138 = vector.shape_cast %137 : vector<1x16x512xbf16> to vector<16x512xbf16>
    %c23 = arith.constant 23 : index
    %c0_121 = arith.constant 0 : index
    %c0_122 = arith.constant 0 : index
    %139 = vector.load %arg2[%c23, %c0_121, %c0_122] : memref<25x24x16xbf16, #tpu.memory_space<vmem>>, vector<1x24x16xbf16>
    %140 = vector.shape_cast %139 : vector<1x24x16xbf16> to vector<24x16xbf16>
    %cst_123 = arith.constant dense<0.000000e+00> : vector<24x512xf32>
    %141 = tpu.matmul %140, %138, %cst_123 {dimension_numbers = #tpu.dot_dimension_numbers<[1], [0], [0], [1], [0, 0, 1, 1], [], []>} : vector<24x16xbf16>, vector<16x512xbf16>, vector<24x512xf32> -> vector<24x512xf32>
    %142 = arith.addf %136, %141 : vector<24x512xf32>
    %c0_124 = arith.constant 0 : index
    %c0_125 = arith.constant 0 : index
    %c140 = arith.constant 140 : index
    %143 = vector.load %arg1[%c0_124, %c0_125, %c140] : memref<1x16x1280xbf16, #tpu.memory_space<vmem>>, vector<1x16x512xbf16>
    %144 = vector.shape_cast %143 : vector<1x16x512xbf16> to vector<16x512xbf16>
    %c24 = arith.constant 24 : index
    %c0_126 = arith.constant 0 : index
    %c0_127 = arith.constant 0 : index
    %145 = vector.load %arg2[%c24, %c0_126, %c0_127] : memref<25x24x16xbf16, #tpu.memory_space<vmem>>, vector<1x24x16xbf16>
    %146 = vector.shape_cast %145 : vector<1x24x16xbf16> to vector<24x16xbf16>
    %cst_128 = arith.constant dense<0.000000e+00> : vector<24x512xf32>
    %147 = tpu.matmul %146, %144, %cst_128 {dimension_numbers = #tpu.dot_dimension_numbers<[1], [0], [0], [1], [0, 0, 1, 1], [], []>} : vector<24x16xbf16>, vector<16x512xbf16>, vector<24x512xf32> -> vector<24x512xf32>
    %148 = arith.addf %142, %147 : vector<24x512xf32>
    %c0_129 = arith.constant 0 : index
    %c0_130 = arith.constant 0 : index
    %149 = vector.load %arg3[%c0_129, %c0_130] : memref<24x1xf32, #tpu.memory_space<vmem>>, vector<24x1xf32>
    %150 = vector.broadcast %149 : vector<24x1xf32> to vector<24x512xf32>
    %151 = arith.addf %148, %150 : vector<24x512xf32>
    %cst_131 = arith.constant 0.000000e+00 : f32
    %152 = vector.broadcast %cst_131 : f32 to vector<24x512xf32>
    %153 = arith.maximumf %151, %152 : vector<24x512xf32>
    %cst_132 = arith.constant 0.000000e+00 : f32
    %154 = vector.broadcast %cst_132 : f32 to vector<24x512xf32>
    %155 = arith.minimumf %153, %154 : vector<24x512xf32>
    %156 = arith.truncf %155 : vector<24x512xf32> to vector<24x512xbf16>
    %c0_133 = arith.constant 0 : index
    %c0_134 = arith.constant 0 : index
    %c0_135 = arith.constant 0 : index
    %157 = vector.load %arg4[%c0_133, %c0_134, %c0_135] : memref<1x24x1024xbf16, #tpu.memory_space<vmem>>, vector<1x24x512xbf16>
    %158 = vector.shape_cast %157 : vector<1x24x512xbf16> to vector<24x512xbf16>
    %159 = vector.shape_cast %156 : vector<24x512xbf16> to vector<1x24x512xbf16>
    tpu.vector_store %arg4[%c0_133, %c0_134, %c0_135], %159 {strides = array<i32>} : memref<1x24x1024xbf16, #tpu.memory_space<vmem>>, vector<1x24x512xbf16>,
    %c0_136 = arith.constant 0 : index
    %c0_137 = arith.constant 0 : index
    %c512 = arith.constant 512 : index
    %160 = vector.load %arg1[%c0_136, %c0_137, %c512] : memref<1x16x1280xbf16, #tpu.memory_space<vmem>>, vector<1x16x512xbf16>
    %161 = vector.shape_cast %160 : vector<1x16x512xbf16> to vector<16x512xbf16>
    %c0_138 = arith.constant 0 : index
    %c0_139 = arith.constant 0 : index
    %c0_140 = arith.constant 0 : index
    %162 = vector.load %arg2[%c0_138, %c0_139, %c0_140] : memref<25x24x16xbf16, #tpu.memory_space<vmem>>, vector<1x24x16xbf16>
    %163 = vector.shape_cast %162 : vector<1x24x16xbf16> to vector<24x16xbf16>
    %cst_141 = arith.constant dense<0.000000e+00> : vector<24x512xf32>
    %164 = tpu.matmul %163, %161, %cst_141 {dimension_numbers = #tpu.dot_dimension_numbers<[1], [0], [0], [1], [0, 0, 1, 1], [], []>} : vector<24x16xbf16>, vector<16x512xbf16>, vector<24x512xf32> -> vector<24x512xf32>
    %c0_142 = arith.constant 0 : index
    %c0_143 = arith.constant 0 : index
    %c513 = arith.constant 513 : index
    %165 = vector.load %arg1[%c0_142, %c0_143, %c513] : memref<1x16x1280xbf16, #tpu.memory_space<vmem>>, vector<1x16x512xbf16>
    %166 = vector.shape_cast %165 : vector<1x16x512xbf16> to vector<16x512xbf16>
    %c1_144 = arith.constant 1 : index
    %c0_145 = arith.constant 0 : index
    %c0_146 = arith.constant 0 : index
    %167 = vector.load %arg2[%c1_144, %c0_145, %c0_146] : memref<25x24x16xbf16, #tpu.memory_space<vmem>>, vector<1x24x16xbf16>
    %168 = vector.shape_cast %167 : vector<1x24x16xbf16> to vector<24x16xbf16>
    %cst_147 = arith.constant dense<0.000000e+00> : vector<24x512xf32>
    %169 = tpu.matmul %168, %166, %cst_147 {dimension_numbers = #tpu.dot_dimension_numbers<[1], [0], [0], [1], [0, 0, 1, 1], [], []>} : vector<24x16xbf16>, vector<16x512xbf16>, vector<24x512xf32> -> vector<24x512xf32>
    %170 = arith.addf %164, %169 : vector<24x512xf32>
    %c0_148 = arith.constant 0 : index
    %c0_149 = arith.constant 0 : index
    %c514 = arith.constant 514 : index
    %171 = vector.load %arg1[%c0_148, %c0_149, %c514] : memref<1x16x1280xbf16, #tpu.memory_space<vmem>>, vector<1x16x512xbf16>
    %172 = vector.shape_cast %171 : vector<1x16x512xbf16> to vector<16x512xbf16>
    %c2_150 = arith.constant 2 : index
    %c0_151 = arith.constant 0 : index
    %c0_152 = arith.constant 0 : index
    %173 = vector.load %arg2[%c2_150, %c0_151, %c0_152] : memref<25x24x16xbf16, #tpu.memory_space<vmem>>, vector<1x24x16xbf16>
    %174 = vector.shape_cast %173 : vector<1x24x16xbf16> to vector<24x16xbf16>
    %cst_153 = arith.constant dense<0.000000e+00> : vector<24x512xf32>
    %175 = tpu.matmul %174, %172, %cst_153 {dimension_numbers = #tpu.dot_dimension_numbers<[1], [0], [0], [1], [0, 0, 1, 1], [], []>} : vector<24x16xbf16>, vector<16x512xbf16>, vector<24x512xf32> -> vector<24x512xf32>
    %176 = arith.addf %170, %175 : vector<24x512xf32>
    %c0_154 = arith.constant 0 : index
    %c0_155 = arith.constant 0 : index
    %c515 = arith.constant 515 : index
    %177 = vector.load %arg1[%c0_154, %c0_155, %c515] : memref<1x16x1280xbf16, #tpu.memory_space<vmem>>, vector<1x16x512xbf16>
    %178 = vector.shape_cast %177 : vector<1x16x512xbf16> to vector<16x512xbf16>
    %c3_156 = arith.constant 3 : index
    %c0_157 = arith.constant 0 : index
    %c0_158 = arith.constant 0 : index
    %179 = vector.load %arg2[%c3_156, %c0_157, %c0_158] : memref<25x24x16xbf16, #tpu.memory_space<vmem>>, vector<1x24x16xbf16>
    %180 = vector.shape_cast %179 : vector<1x24x16xbf16> to vector<24x16xbf16>
    %cst_159 = arith.constant dense<0.000000e+00> : vector<24x512xf32>
    %181 = tpu.matmul %180, %178, %cst_159 {dimension_numbers = #tpu.dot_dimension_numbers<[1], [0], [0], [1], [0, 0, 1, 1], [], []>} : vector<24x16xbf16>, vector<16x512xbf16>, vector<24x512xf32> -> vector<24x512xf32>
    %182 = arith.addf %176, %181 : vector<24x512xf32>
    %c0_160 = arith.constant 0 : index
    %c0_161 = arith.constant 0 : index
    %c516 = arith.constant 516 : index
    %183 = vector.load %arg1[%c0_160, %c0_161, %c516] : memref<1x16x1280xbf16, #tpu.memory_space<vmem>>, vector<1x16x512xbf16>
    %184 = vector.shape_cast %183 : vector<1x16x512xbf16> to vector<16x512xbf16>
    %c4_162 = arith.constant 4 : index
    %c0_163 = arith.constant 0 : index
    %c0_164 = arith.constant 0 : index
    %185 = vector.load %arg2[%c4_162, %c0_163, %c0_164] : memref<25x24x16xbf16, #tpu.memory_space<vmem>>, vector<1x24x16xbf16>
    %186 = vector.shape_cast %185 : vector<1x24x16xbf16> to vector<24x16xbf16>
    %cst_165 = arith.constant dense<0.000000e+00> : vector<24x512xf32>
    %187 = tpu.matmul %186, %184, %cst_165 {dimension_numbers = #tpu.dot_dimension_numbers<[1], [0], [0], [1], [0, 0, 1, 1], [], []>} : vector<24x16xbf16>, vector<16x512xbf16>, vector<24x512xf32> -> vector<24x512xf32>
    %188 = arith.addf %182, %187 : vector<24x512xf32>
    %c0_166 = arith.constant 0 : index
    %c0_167 = arith.constant 0 : index
    %c546 = arith.constant 546 : index
    %189 = vector.load %arg1[%c0_166, %c0_167, %c546] : memref<1x16x1280xbf16, #tpu.memory_space<vmem>>, vector<1x16x512xbf16>
    %190 = vector.shape_cast %189 : vector<1x16x512xbf16> to vector<16x512xbf16>
    %c5_168 = arith.constant 5 : index
    %c0_169 = arith.constant 0 : index
    %c0_170 = arith.constant 0 : index
    %191 = vector.load %arg2[%c5_168, %c0_169, %c0_170] : memref<25x24x16xbf16, #tpu.memory_space<vmem>>, vector<1x24x16xbf16>
    %192 = vector.shape_cast %191 : vector<1x24x16xbf16> to vector<24x16xbf16>
    %cst_171 = arith.constant dense<0.000000e+00> : vector<24x512xf32>
    %193 = tpu.matmul %192, %190, %cst_171 {dimension_numbers = #tpu.dot_dimension_numbers<[1], [0], [0], [1], [0, 0, 1, 1], [], []>} : vector<24x16xbf16>, vector<16x512xbf16>, vector<24x512xf32> -> vector<24x512xf32>
    %194 = arith.addf %188, %193 : vector<24x512xf32>
    %c0_172 = arith.constant 0 : index
    %c0_173 = arith.constant 0 : index
    %c547 = arith.constant 547 : index
    %195 = vector.load %arg1[%c0_172, %c0_173, %c547] : memref<1x16x1280xbf16, #tpu.memory_space<vmem>>, vector<1x16x512xbf16>
    %196 = vector.shape_cast %195 : vector<1x16x512xbf16> to vector<16x512xbf16>
    %c6_174 = arith.constant 6 : index
    %c0_175 = arith.constant 0 : index
    %c0_176 = arith.constant 0 : index
    %197 = vector.load %arg2[%c6_174, %c0_175, %c0_176] : memref<25x24x16xbf16, #tpu.memory_space<vmem>>, vector<1x24x16xbf16>
    %198 = vector.shape_cast %197 : vector<1x24x16xbf16> to vector<24x16xbf16>
    %cst_177 = arith.constant dense<0.000000e+00> : vector<24x512xf32>
    %199 = tpu.matmul %198, %196, %cst_177 {dimension_numbers = #tpu.dot_dimension_numbers<[1], [0], [0], [1], [0, 0, 1, 1], [], []>} : vector<24x16xbf16>, vector<16x512xbf16>, vector<24x512xf32> -> vector<24x512xf32>
    %200 = arith.addf %194, %199 : vector<24x512xf32>
    %c0_178 = arith.constant 0 : index
    %c0_179 = arith.constant 0 : index
    %c548 = arith.constant 548 : index
    %201 = vector.load %arg1[%c0_178, %c0_179, %c548] : memref<1x16x1280xbf16, #tpu.memory_space<vmem>>, vector<1x16x512xbf16>
    %202 = vector.shape_cast %201 : vector<1x16x512xbf16> to vector<16x512xbf16>
    %c7_180 = arith.constant 7 : index
    %c0_181 = arith.constant 0 : index
    %c0_182 = arith.constant 0 : index
    %203 = vector.load %arg2[%c7_180, %c0_181, %c0_182] : memref<25x24x16xbf16, #tpu.memory_space<vmem>>, vector<1x24x16xbf16>
    %204 = vector.shape_cast %203 : vector<1x24x16xbf16> to vector<24x16xbf16>
    %cst_183 = arith.constant dense<0.000000e+00> : vector<24x512xf32>
    %205 = tpu.matmul %204, %202, %cst_183 {dimension_numbers = #tpu.dot_dimension_numbers<[1], [0], [0], [1], [0, 0, 1, 1], [], []>} : vector<24x16xbf16>, vector<16x512xbf16>, vector<24x512xf32> -> vector<24x512xf32>
    %206 = arith.addf %200, %205 : vector<24x512xf32>
    %c0_184 = arith.constant 0 : index
    %c0_185 = arith.constant 0 : index
    %c549 = arith.constant 549 : index
    %207 = vector.load %arg1[%c0_184, %c0_185, %c549] : memref<1x16x1280xbf16, #tpu.memory_space<vmem>>, vector<1x16x512xbf16>
    %208 = vector.shape_cast %207 : vector<1x16x512xbf16> to vector<16x512xbf16>
    %c8_186 = arith.constant 8 : index
    %c0_187 = arith.constant 0 : index
    %c0_188 = arith.constant 0 : index
    %209 = vector.load %arg2[%c8_186, %c0_187, %c0_188] : memref<25x24x16xbf16, #tpu.memory_space<vmem>>, vector<1x24x16xbf16>
    %210 = vector.shape_cast %209 : vector<1x24x16xbf16> to vector<24x16xbf16>
    %cst_189 = arith.constant dense<0.000000e+00> : vector<24x512xf32>
    %211 = tpu.matmul %210, %208, %cst_189 {dimension_numbers = #tpu.dot_dimension_numbers<[1], [0], [0], [1], [0, 0, 1, 1], [], []>} : vector<24x16xbf16>, vector<16x512xbf16>, vector<24x512xf32> -> vector<24x512xf32>
    %212 = arith.addf %206, %211 : vector<24x512xf32>
    %c0_190 = arith.constant 0 : index
    %c0_191 = arith.constant 0 : index
    %c550 = arith.constant 550 : index
    %213 = vector.load %arg1[%c0_190, %c0_191, %c550] : memref<1x16x1280xbf16, #tpu.memory_space<vmem>>, vector<1x16x512xbf16>
    %214 = vector.shape_cast %213 : vector<1x16x512xbf16> to vector<16x512xbf16>
    %c9_192 = arith.constant 9 : index
    %c0_193 = arith.constant 0 : index
    %c0_194 = arith.constant 0 : index
    %215 = vector.load %arg2[%c9_192, %c0_193, %c0_194] : memref<25x24x16xbf16, #tpu.memory_space<vmem>>, vector<1x24x16xbf16>
    %216 = vector.shape_cast %215 : vector<1x24x16xbf16> to vector<24x16xbf16>
    %cst_195 = arith.constant dense<0.000000e+00> : vector<24x512xf32>
    %217 = tpu.matmul %216, %214, %cst_195 {dimension_numbers = #tpu.dot_dimension_numbers<[1], [0], [0], [1], [0, 0, 1, 1], [], []>} : vector<24x16xbf16>, vector<16x512xbf16>, vector<24x512xf32> -> vector<24x512xf32>
    %218 = arith.addf %212, %217 : vector<24x512xf32>
    %c0_196 = arith.constant 0 : index
    %c0_197 = arith.constant 0 : index
    %c580 = arith.constant 580 : index
    %219 = vector.load %arg1[%c0_196, %c0_197, %c580] : memref<1x16x1280xbf16, #tpu.memory_space<vmem>>, vector<1x16x512xbf16>
    %220 = vector.shape_cast %219 : vector<1x16x512xbf16> to vector<16x512xbf16>
    %c10_198 = arith.constant 10 : index
    %c0_199 = arith.constant 0 : index
    %c0_200 = arith.constant 0 : index
    %221 = vector.load %arg2[%c10_198, %c0_199, %c0_200] : memref<25x24x16xbf16, #tpu.memory_space<vmem>>, vector<1x24x16xbf16>
    %222 = vector.shape_cast %221 : vector<1x24x16xbf16> to vector<24x16xbf16>
    %cst_201 = arith.constant dense<0.000000e+00> : vector<24x512xf32>
    %223 = tpu.matmul %222, %220, %cst_201 {dimension_numbers = #tpu.dot_dimension_numbers<[1], [0], [0], [1], [0, 0, 1, 1], [], []>} : vector<24x16xbf16>, vector<16x512xbf16>, vector<24x512xf32> -> vector<24x512xf32>
    %224 = arith.addf %218, %223 : vector<24x512xf32>
    %c0_202 = arith.constant 0 : index
    %c0_203 = arith.constant 0 : index
    %c581 = arith.constant 581 : index
    %225 = vector.load %arg1[%c0_202, %c0_203, %c581] : memref<1x16x1280xbf16, #tpu.memory_space<vmem>>, vector<1x16x512xbf16>
    %226 = vector.shape_cast %225 : vector<1x16x512xbf16> to vector<16x512xbf16>
    %c11_204 = arith.constant 11 : index
    %c0_205 = arith.constant 0 : index
    %c0_206 = arith.constant 0 : index
    %227 = vector.load %arg2[%c11_204, %c0_205, %c0_206] : memref<25x24x16xbf16, #tpu.memory_space<vmem>>, vector<1x24x16xbf16>
    %228 = vector.shape_cast %227 : vector<1x24x16xbf16> to vector<24x16xbf16>
    %cst_207 = arith.constant dense<0.000000e+00> : vector<24x512xf32>
    %229 = tpu.matmul %228, %226, %cst_207 {dimension_numbers = #tpu.dot_dimension_numbers<[1], [0], [0], [1], [0, 0, 1, 1], [], []>} : vector<24x16xbf16>, vector<16x512xbf16>, vector<24x512xf32> -> vector<24x512xf32>
    %230 = arith.addf %224, %229 : vector<24x512xf32>
    %c0_208 = arith.constant 0 : index
    %c0_209 = arith.constant 0 : index
    %c582 = arith.constant 582 : index
    %231 = vector.load %arg1[%c0_208, %c0_209, %c582] : memref<1x16x1280xbf16, #tpu.memory_space<vmem>>, vector<1x16x512xbf16>
    %232 = vector.shape_cast %231 : vector<1x16x512xbf16> to vector<16x512xbf16>
    %c12_210 = arith.constant 12 : index
    %c0_211 = arith.constant 0 : index
    %c0_212 = arith.constant 0 : index
    %233 = vector.load %arg2[%c12_210, %c0_211, %c0_212] : memref<25x24x16xbf16, #tpu.memory_space<vmem>>, vector<1x24x16xbf16>
    %234 = vector.shape_cast %233 : vector<1x24x16xbf16> to vector<24x16xbf16>
    %cst_213 = arith.constant dense<0.000000e+00> : vector<24x512xf32>
    %235 = tpu.matmul %234, %232, %cst_213 {dimension_numbers = #tpu.dot_dimension_numbers<[1], [0], [0], [1], [0, 0, 1, 1], [], []>} : vector<24x16xbf16>, vector<16x512xbf16>, vector<24x512xf32> -> vector<24x512xf32>
    %236 = arith.addf %230, %235 : vector<24x512xf32>
    %c0_214 = arith.constant 0 : index
    %c0_215 = arith.constant 0 : index
    %c583 = arith.constant 583 : index
    %237 = vector.load %arg1[%c0_214, %c0_215, %c583] : memref<1x16x1280xbf16, #tpu.memory_space<vmem>>, vector<1x16x512xbf16>
    %238 = vector.shape_cast %237 : vector<1x16x512xbf16> to vector<16x512xbf16>
    %c13_216 = arith.constant 13 : index
    %c0_217 = arith.constant 0 : index
    %c0_218 = arith.constant 0 : index
    %239 = vector.load %arg2[%c13_216, %c0_217, %c0_218] : memref<25x24x16xbf16, #tpu.memory_space<vmem>>, vector<1x24x16xbf16>
    %240 = vector.shape_cast %239 : vector<1x24x16xbf16> to vector<24x16xbf16>
    %cst_219 = arith.constant dense<0.000000e+00> : vector<24x512xf32>
    %241 = tpu.matmul %240, %238, %cst_219 {dimension_numbers = #tpu.dot_dimension_numbers<[1], [0], [0], [1], [0, 0, 1, 1], [], []>} : vector<24x16xbf16>, vector<16x512xbf16>, vector<24x512xf32> -> vector<24x512xf32>
    %242 = arith.addf %236, %241 : vector<24x512xf32>
    %c0_220 = arith.constant 0 : index
    %c0_221 = arith.constant 0 : index
    %c584 = arith.constant 584 : index
    %243 = vector.load %arg1[%c0_220, %c0_221, %c584] : memref<1x16x1280xbf16, #tpu.memory_space<vmem>>, vector<1x16x512xbf16>
    %244 = vector.shape_cast %243 : vector<1x16x512xbf16> to vector<16x512xbf16>
    %c14_222 = arith.constant 14 : index
    %c0_223 = arith.constant 0 : index
    %c0_224 = arith.constant 0 : index
    %245 = vector.load %arg2[%c14_222, %c0_223, %c0_224] : memref<25x24x16xbf16, #tpu.memory_space<vmem>>, vector<1x24x16xbf16>
    %246 = vector.shape_cast %245 : vector<1x24x16xbf16> to vector<24x16xbf16>
    %cst_225 = arith.constant dense<0.000000e+00> : vector<24x512xf32>
    %247 = tpu.matmul %246, %244, %cst_225 {dimension_numbers = #tpu.dot_dimension_numbers<[1], [0], [0], [1], [0, 0, 1, 1], [], []>} : vector<24x16xbf16>, vector<16x512xbf16>, vector<24x512xf32> -> vector<24x512xf32>
    %248 = arith.addf %242, %247 : vector<24x512xf32>
    %c0_226 = arith.constant 0 : index
    %c0_227 = arith.constant 0 : index
    %c614 = arith.constant 614 : index
    %249 = vector.load %arg1[%c0_226, %c0_227, %c614] : memref<1x16x1280xbf16, #tpu.memory_space<vmem>>, vector<1x16x512xbf16>
    %250 = vector.shape_cast %249 : vector<1x16x512xbf16> to vector<16x512xbf16>
    %c15_228 = arith.constant 15 : index
    %c0_229 = arith.constant 0 : index
    %c0_230 = arith.constant 0 : index
    %251 = vector.load %arg2[%c15_228, %c0_229, %c0_230] : memref<25x24x16xbf16, #tpu.memory_space<vmem>>, vector<1x24x16xbf16>
    %252 = vector.shape_cast %251 : vector<1x24x16xbf16> to vector<24x16xbf16>
    %cst_231 = arith.constant dense<0.000000e+00> : vector<24x512xf32>
    %253 = tpu.matmul %252, %250, %cst_231 {dimension_numbers = #tpu.dot_dimension_numbers<[1], [0], [0], [1], [0, 0, 1, 1], [], []>} : vector<24x16xbf16>, vector<16x512xbf16>, vector<24x512xf32> -> vector<24x512xf32>
    %254 = arith.addf %248, %253 : vector<24x512xf32>
    %c0_232 = arith.constant 0 : index
    %c0_233 = arith.constant 0 : index
    %c615 = arith.constant 615 : index
    %255 = vector.load %arg1[%c0_232, %c0_233, %c615] : memref<1x16x1280xbf16, #tpu.memory_space<vmem>>, vector<1x16x512xbf16>
    %256 = vector.shape_cast %255 : vector<1x16x512xbf16> to vector<16x512xbf16>
    %c16_234 = arith.constant 16 : index
    %c0_235 = arith.constant 0 : index
    %c0_236 = arith.constant 0 : index
    %257 = vector.load %arg2[%c16_234, %c0_235, %c0_236] : memref<25x24x16xbf16, #tpu.memory_space<vmem>>, vector<1x24x16xbf16>
    %258 = vector.shape_cast %257 : vector<1x24x16xbf16> to vector<24x16xbf16>
    %cst_237 = arith.constant dense<0.000000e+00> : vector<24x512xf32>
    %259 = tpu.matmul %258, %256, %cst_237 {dimension_numbers = #tpu.dot_dimension_numbers<[1], [0], [0], [1], [0, 0, 1, 1], [], []>} : vector<24x16xbf16>, vector<16x512xbf16>, vector<24x512xf32> -> vector<24x512xf32>
    %260 = arith.addf %254, %259 : vector<24x512xf32>
    %c0_238 = arith.constant 0 : index
    %c0_239 = arith.constant 0 : index
    %c616 = arith.constant 616 : index
    %261 = vector.load %arg1[%c0_238, %c0_239, %c616] : memref<1x16x1280xbf16, #tpu.memory_space<vmem>>, vector<1x16x512xbf16>
    %262 = vector.shape_cast %261 : vector<1x16x512xbf16> to vector<16x512xbf16>
    %c17_240 = arith.constant 17 : index
    %c0_241 = arith.constant 0 : index
    %c0_242 = arith.constant 0 : index
    %263 = vector.load %arg2[%c17_240, %c0_241, %c0_242] : memref<25x24x16xbf16, #tpu.memory_space<vmem>>, vector<1x24x16xbf16>
    %264 = vector.shape_cast %263 : vector<1x24x16xbf16> to vector<24x16xbf16>
    %cst_243 = arith.constant dense<0.000000e+00> : vector<24x512xf32>
    %265 = tpu.matmul %264, %262, %cst_243 {dimension_numbers = #tpu.dot_dimension_numbers<[1], [0], [0], [1], [0, 0, 1, 1], [], []>} : vector<24x16xbf16>, vector<16x512xbf16>, vector<24x512xf32> -> vector<24x512xf32>
    %266 = arith.addf %260, %265 : vector<24x512xf32>
    %c0_244 = arith.constant 0 : index
    %c0_245 = arith.constant 0 : index
    %c617 = arith.constant 617 : index
    %267 = vector.load %arg1[%c0_244, %c0_245, %c617] : memref<1x16x1280xbf16, #tpu.memory_space<vmem>>, vector<1x16x512xbf16>
    %268 = vector.shape_cast %267 : vector<1x16x512xbf16> to vector<16x512xbf16>
    %c18_246 = arith.constant 18 : index
    %c0_247 = arith.constant 0 : index
    %c0_248 = arith.constant 0 : index
    %269 = vector.load %arg2[%c18_246, %c0_247, %c0_248] : memref<25x24x16xbf16, #tpu.memory_space<vmem>>, vector<1x24x16xbf16>
    %270 = vector.shape_cast %269 : vector<1x24x16xbf16> to vector<24x16xbf16>
    %cst_249 = arith.constant dense<0.000000e+00> : vector<24x512xf32>
    %271 = tpu.matmul %270, %268, %cst_249 {dimension_numbers = #tpu.dot_dimension_numbers<[1], [0], [0], [1], [0, 0, 1, 1], [], []>} : vector<24x16xbf16>, vector<16x512xbf16>, vector<24x512xf32> -> vector<24x512xf32>
    %272 = arith.addf %266, %271 : vector<24x512xf32>
    %c0_250 = arith.constant 0 : index
    %c0_251 = arith.constant 0 : index
    %c618 = arith.constant 618 : index
    %273 = vector.load %arg1[%c0_250, %c0_251, %c618] : memref<1x16x1280xbf16, #tpu.memory_space<vmem>>, vector<1x16x512xbf16>
    %274 = vector.shape_cast %273 : vector<1x16x512xbf16> to vector<16x512xbf16>
    %c19_252 = arith.constant 19 : index
    %c0_253 = arith.constant 0 : index
    %c0_254 = arith.constant 0 : index
    %275 = vector.load %arg2[%c19_252, %c0_253, %c0_254] : memref<25x24x16xbf16, #tpu.memory_space<vmem>>, vector<1x24x16xbf16>
    %276 = vector.shape_cast %275 : vector<1x24x16xbf16> to vector<24x16xbf16>
    %cst_255 = arith.constant dense<0.000000e+00> : vector<24x512xf32>
    %277 = tpu.matmul %276, %274, %cst_255 {dimension_numbers = #tpu.dot_dimension_numbers<[1], [0], [0], [1], [0, 0, 1, 1], [], []>} : vector<24x16xbf16>, vector<16x512xbf16>, vector<24x512xf32> -> vector<24x512xf32>
    %278 = arith.addf %272, %277 : vector<24x512xf32>
    %c0_256 = arith.constant 0 : index
    %c0_257 = arith.constant 0 : index
    %c648 = arith.constant 648 : index
    %279 = vector.load %arg1[%c0_256, %c0_257, %c648] : memref<1x16x1280xbf16, #tpu.memory_space<vmem>>, vector<1x16x512xbf16>
    %280 = vector.shape_cast %279 : vector<1x16x512xbf16> to vector<16x512xbf16>
    %c20_258 = arith.constant 20 : index
    %c0_259 = arith.constant 0 : index
    %c0_260 = arith.constant 0 : index
    %281 = vector.load %arg2[%c20_258, %c0_259, %c0_260] : memref<25x24x16xbf16, #tpu.memory_space<vmem>>, vector<1x24x16xbf16>
    %282 = vector.shape_cast %281 : vector<1x24x16xbf16> to vector<24x16xbf16>
    %cst_261 = arith.constant dense<0.000000e+00> : vector<24x512xf32>
    %283 = tpu.matmul %282, %280, %cst_261 {dimension_numbers = #tpu.dot_dimension_numbers<[1], [0], [0], [1], [0, 0, 1, 1], [], []>} : vector<24x16xbf16>, vector<16x512xbf16>, vector<24x512xf32> -> vector<24x512xf32>
    %284 = arith.addf %278, %283 : vector<24x512xf32>
    %c0_262 = arith.constant 0 : index
    %c0_263 = arith.constant 0 : index
    %c649 = arith.constant 649 : index
    %285 = vector.load %arg1[%c0_262, %c0_263, %c649] : memref<1x16x1280xbf16, #tpu.memory_space<vmem>>, vector<1x16x512xbf16>
    %286 = vector.shape_cast %285 : vector<1x16x512xbf16> to vector<16x512xbf16>
    %c21_264 = arith.constant 21 : index
    %c0_265 = arith.constant 0 : index
    %c0_266 = arith.constant 0 : index
    %287 = vector.load %arg2[%c21_264, %c0_265, %c0_266] : memref<25x24x16xbf16, #tpu.memory_space<vmem>>, vector<1x24x16xbf16>
    %288 = vector.shape_cast %287 : vector<1x24x16xbf16> to vector<24x16xbf16>
    %cst_267 = arith.constant dense<0.000000e+00> : vector<24x512xf32>
    %289 = tpu.matmul %288, %286, %cst_267 {dimension_numbers = #tpu.dot_dimension_numbers<[1], [0], [0], [1], [0, 0, 1, 1], [], []>} : vector<24x16xbf16>, vector<16x512xbf16>, vector<24x512xf32> -> vector<24x512xf32>
    %290 = arith.addf %284, %289 : vector<24x512xf32>
    %c0_268 = arith.constant 0 : index
    %c0_269 = arith.constant 0 : index
    %c650 = arith.constant 650 : index
    %291 = vector.load %arg1[%c0_268, %c0_269, %c650] : memref<1x16x1280xbf16, #tpu.memory_space<vmem>>, vector<1x16x512xbf16>
    %292 = vector.shape_cast %291 : vector<1x16x512xbf16> to vector<16x512xbf16>
    %c22_270 = arith.constant 22 : index
    %c0_271 = arith.constant 0 : index
    %c0_272 = arith.constant 0 : index
    %293 = vector.load %arg2[%c22_270, %c0_271, %c0_272] : memref<25x24x16xbf16, #tpu.memory_space<vmem>>, vector<1x24x16xbf16>
    %294 = vector.shape_cast %293 : vector<1x24x16xbf16> to vector<24x16xbf16>
    %cst_273 = arith.constant dense<0.000000e+00> : vector<24x512xf32>
    %295 = tpu.matmul %294, %292, %cst_273 {dimension_numbers = #tpu.dot_dimension_numbers<[1], [0], [0], [1], [0, 0, 1, 1], [], []>} : vector<24x16xbf16>, vector<16x512xbf16>, vector<24x512xf32> -> vector<24x512xf32>
    %296 = arith.addf %290, %295 : vector<24x512xf32>
    %c0_274 = arith.constant 0 : index
    %c0_275 = arith.constant 0 : index
    %c651 = arith.constant 651 : index
    %297 = vector.load %arg1[%c0_274, %c0_275, %c651] : memref<1x16x1280xbf16, #tpu.memory_space<vmem>>, vector<1x16x512xbf16>
    %298 = vector.shape_cast %297 : vector<1x16x512xbf16> to vector<16x512xbf16>
    %c23_276 = arith.constant 23 : index
    %c0_277 = arith.constant 0 : index
    %c0_278 = arith.constant 0 : index
    %299 = vector.load %arg2[%c23_276, %c0_277, %c0_278] : memref<25x24x16xbf16, #tpu.memory_space<vmem>>, vector<1x24x16xbf16>
    %300 = vector.shape_cast %299 : vector<1x24x16xbf16> to vector<24x16xbf16>
    %cst_279 = arith.constant dense<0.000000e+00> : vector<24x512xf32>
    %301 = tpu.matmul %300, %298, %cst_279 {dimension_numbers = #tpu.dot_dimension_numbers<[1], [0], [0], [1], [0, 0, 1, 1], [], []>} : vector<24x16xbf16>, vector<16x512xbf16>, vector<24x512xf32> -> vector<24x512xf32>
    %302 = arith.addf %296, %301 : vector<24x512xf32>
    %c0_280 = arith.constant 0 : index
    %c0_281 = arith.constant 0 : index
    %c652 = arith.constant 652 : index
    %303 = vector.load %arg1[%c0_280, %c0_281, %c652] : memref<1x16x1280xbf16, #tpu.memory_space<vmem>>, vector<1x16x512xbf16>
    %304 = vector.shape_cast %303 : vector<1x16x512xbf16> to vector<16x512xbf16>
    %c24_282 = arith.constant 24 : index
    %c0_283 = arith.constant 0 : index
    %c0_284 = arith.constant 0 : index
    %305 = vector.load %arg2[%c24_282, %c0_283, %c0_284] : memref<25x24x16xbf16, #tpu.memory_space<vmem>>, vector<1x24x16xbf16>
    %306 = vector.shape_cast %305 : vector<1x24x16xbf16> to vector<24x16xbf16>
    %cst_285 = arith.constant dense<0.000000e+00> : vector<24x512xf32>
    %307 = tpu.matmul %306, %304, %cst_285 {dimension_numbers = #tpu.dot_dimension_numbers<[1], [0], [0], [1], [0, 0, 1, 1], [], []>} : vector<24x16xbf16>, vector<16x512xbf16>, vector<24x512xf32> -> vector<24x512xf32>
    %308 = arith.addf %302, %307 : vector<24x512xf32>
    %c0_286 = arith.constant 0 : index
    %c0_287 = arith.constant 0 : index
    %309 = vector.load %arg3[%c0_286, %c0_287] : memref<24x1xf32, #tpu.memory_space<vmem>>, vector<24x1xf32>
    %310 = vector.broadcast %309 : vector<24x1xf32> to vector<24x512xf32>
    %311 = arith.addf %308, %310 : vector<24x512xf32>
    %cst_288 = arith.constant 0.000000e+00 : f32
    %312 = vector.broadcast %cst_288 : f32 to vector<24x512xf32>
    %313 = arith.maximumf %311, %312 : vector<24x512xf32>
    %cst_289 = arith.constant 0.000000e+00 : f32
    %314 = vector.broadcast %cst_289 : f32 to vector<24x512xf32>
    %315 = arith.minimumf %313, %314 : vector<24x512xf32>
    %316 = arith.truncf %315 : vector<24x512xf32> to vector<24x512xbf16>
    %c0_290 = arith.constant 0 : index
    %c0_291 = arith.constant 0 : index
    %c512_292 = arith.constant 512 : index
    %317 = vector.load %arg4[%c0_290, %c0_291, %c512_292] : memref<1x24x1024xbf16, #tpu.memory_space<vmem>>, vector<1x24x512xbf16>
    %318 = vector.shape_cast %317 : vector<1x24x512xbf16> to vector<24x512xbf16>
    %319 = vector.shape_cast %316 : vector<24x512xbf16> to vector<1x24x512xbf16>
    tpu.vector_store %arg4[%c0_290, %c0_291, %c512_292], %319 {strides = array<i32>} : memref<1x24x1024xbf16, #tpu.memory_space<vmem>>, vector<1x24x512xbf16>,
    return
  }
  func.func @transform_0(%arg0: i32) -> (i32, i32, i32) {
    %c0_i32 = arith.constant 0 : i32
    %c0_i32_0 = arith.constant 0 : i32
    %c0_i32_1 = arith.constant 0 : i32
    return %arg0, %c0_i32, %c0_i32_0 : i32, i32, i32
  }
  func.func @transform_1(%arg0: i32) -> (i32, i32, i32) {
    %c0_i32 = arith.constant 0 : i32
    %c0_i32_0 = arith.constant 0 : i32
    %c0_i32_1 = arith.constant 0 : i32
    %c0_i32_2 = arith.constant 0 : i32
    return %c0_i32, %c0_i32_0, %c0_i32_1 : i32, i32, i32
  }
  func.func @transform_2(%arg0: i32) -> (i32, i32) {
    %c0_i32 = arith.constant 0 : i32
    %c0_i32_0 = arith.constant 0 : i32
    %c0_i32_1 = arith.constant 0 : i32
    return %c0_i32, %c0_i32_0 : i32, i32
  }
  func.func @transform_3(%arg0: i32) -> (i32, i32, i32) {
    %c0_i32 = arith.constant 0 : i32
    %c0_i32_0 = arith.constant 0 : i32
    %c0_i32_1 = arith.constant 0 : i32
    return %arg0, %c0_i32, %c0_i32_0 : i32, i32, i32
  }
}

</mosaic_0001>

<bundles_post_ra>
// kernel: conv2d_clamp.1
= control target key start
LH: loop header
LB: loop body
LE: loop exit
PB: predicated region body
PF: predicated region fallthrough
CT: control target
= control target key end

     0   :  { %s9085_s12 = smov 0   ;;  %s11374_s0 = inlined_call_operand.vmem [shape: bf16[2,16,1280], index: 0, kind: input, shape index: {}]   ;;  %s11375_s1 = inlined_call_operand.vmem [shape: bf16[25,24,16], index: 1, kind: input, shape index: {}]   ;;  %s11376_s2 = inlined_call_operand.vmem [shape: f32[24,1], index: 2, kind: input, shape index: {}]   ;;  %s11377_s3 = inlined_call_operand.vmem [shape: bf16[2,24,1024], index: 3, kind: output, shape index: {}]  }
   0x1 LB: > { %s7958_s13 = sadd.s32 4294967295, %s9038_s12   ;;  %p7962_p0 = scmp.ge.s32.totalorder %s9038_s12, 1  ;;  %s9038_s12 = sphi %s9085_s12, %s13_s12  }
   0x2   : > { %p137_p1 = scmp.lt.s32.totalorder %s9038_s12, 3 }
   0x4   : > { %p138_p2 = pnand %p7962_p0, %p137_p1 }
   0x6   : > { %141 = sbr.rel (%p138_p2) target bundleno = 1162 (0x48a), region = 32 }
   0xd   : > { %p161_p3 = scmp.lt.s32.totalorder %s7958_s13, 1  ;;  %v11404_v0 = vmov 0   ;;  %s9041_s18 = smov 127   ;;  %vm224_vm0 = vcmask 1039360   ;;  %v8907_v13 = vld [vmem:[%s11375_s1 + $0xc] sm:$0xff]   ;;  %vm233_vm1 = vcmask 130048  }
   0xe   : > { %323 = vmatprep.mubr.bf16.mxu1 %v11404_v0  ;;  %272 = vmatprep.mubr.bf16.mxu0 %v11404_v0  ;;  %s9042_s19 = smov 126   ;;  %s9043_s20 = smov 125   ;;  %vm484_vm2 = vcmask 1031168   ;;  %v8908_v19 = vld [vmem:[%s11375_s1 + $0x14] ss:$0 sps:$4 sm:$0xff]   ;;  %v8909_v26 = vld [vmem:[%s11375_s1] sm:$0xff]  }
   0xf   : > { %s11503_s13 = smov (!%p161_p3, %s7958_s13), 1  ;;  %8898 = vset.pattern.permute.xlu0 %v11404_v0  ;;  %8899 = vset.pattern.permute.xlu1 %v11404_v0  ;;  %s9044_s21 = smov 124   ;;  %vm635_vm3 = vcmask 1022976   ;;  %v8910_v35 = vld [vmem:[%s11375_s1 + $0x8] ss:$0 sps:$4 sm:$0xff]   ;;  %v8911_v40 = vld [vmem:[%s11375_s1 + $0x18] sm:$0xff]  }
  0x10   : > { %s8863_s14 = smul.u32 80, %s11503_s13  ;;  %s9045_s22 = smov 94   ;;  %vm786_vm4 = vcmask 1014784   ;;  %v8912_v49 = vld [vmem:[%s11375_s1 + $0x20] ss:$0 sps:$4 sm:$0xff]   ;;  %v8913_v54 = vld [vmem:[%s11375_s1 + $0x24] sm:$0xff]  }
  0x11   : > { %s9046_s23 = smov 93   ;;  %s9047_s24 = smov 92   ;;  %vm937_vm5 = vcmask 769024   ;;  %v8914_v63 = vld [vmem:[%s11375_s1 + $0x2c] ss:$0 sps:$4 sm:$0xff]   ;;  %vm1088_vm6 = vcmask 760832  }
  0x12   : > { %s9101_s17 = scalar_lea.vmem %s11374_s0, %s8863_s14  ;;  %s9048_s25 = smov 91   ;;  %vm1239_vm7 = vcmask 752640   ;;  %vm1390_vm8 = vcmask 744448   ;;  %vm1541_vm9 = vcmask 736256   ;;  %vm1692_vm10 = vcmask 490496  }
  0x13   : > { %v9106_v1 = vld [vmem:[%s9101_s17 + $0xc] ss:$40 sps:$4 sm:$0xff]   ;;  %v9114_v3 = vld [vmem:[%s9101_s17 + $0x10] ss:$40 sps:$4 sm:$0xff]   ;;  %v9122_v5 = vld [vmem:[%s9101_s17] ss:$40 sps:$4 sm:$0xff]  }
  0x14   : > { %v9109_v2 = vld [vmem:[%s9101_s17 + $0x4] ss:$40 sps:$4 sm:$0xff]   ;;  %220 = vrot.lane.b32.xlu1 %v9106_v1, %s9041_s18  ;;  %v9119_v4 = vld [vmem:[%s9101_s17 + $0x8] ss:$40 sps:$4 sm:$0xff]   ;;  %s9049_s26 = smov 90   ;;  %s9050_s27 = smov 60  }
  0x15   : > { %216 = vrot.lane.b32.xlu0 %v9109_v2, %s9041_s18  ;;  %s9051_s28 = smov 59   ;;  %s9052_s29 = smov 58   ;;  %vm1843_vm11 = vcmask 482304   ;;  %vm1994_vm12 = vcmask 474112   ;;  %vm2145_vm13 = vcmask 465920   ;;  %vm11382_vm14 = vcmask 457728  }
  0x16   : > { %s9053_s5 = smov 57   ;;  %s9054_s8 = smov 56   ;;  %vm11384_vm15 = vcmask 211968  }
  0x17   : > { %s9055_s11 = smov 26   ;;  %s9056_s16 = smov 25  }
  0x18   : > { %222 = vrot.lane.b32.xlu1 %v9114_v3, %s9041_s18  ;;  %s9057_s9 = smov 24   ;;  %s9058_s15 = smov 23  }
  0x19   : > { %218 = vrot.lane.b32.xlu0 %v9119_v4, %s9041_s18  ;;  %s9059_s6 = smov 22   ;;  %s9060_s14 = smov 120  }
  0x1a   : > { %s11380_s30 = smov 119   ;;  %s11378_s10 = smov 118  }
  0x1b   : > { %s9063_s4 = smov 117   ;;  %s11415_s7 = smov 118  }
  0x1c   : > { %476 = vrot.lane.b32.xlu1 %v9109_v2, %s9042_s19 }
  0x1d   : > { %214 = vrot.lane.b32.xlu0 %v9122_v5, %s9041_s18 }
  0x20   : > { %480 = vrot.lane.b32.xlu1 %v9106_v1, %s9042_s19 }
  0x21   : > { %478 = vrot.lane.b32.xlu0 %v9119_v4, %s9042_s19 }
  0x24   : > { %474 = vrot.lane.b32.xlu1 %v9122_v5, %s9042_s19 }
  0x25   : > { %482 = vrot.lane.b32.xlu0 %v9114_v3, %s9042_s19 }
  0x28   : > { %629 = vrot.lane.b32.xlu1 %v9119_v4, %s9043_s20 }
  0x29   : > { %627 = vrot.lane.b32.xlu0 %v9109_v2, %s9043_s20 }
  0x2c   : > { %633 = vrot.lane.b32.xlu1 %v9114_v3, %s9043_s20 }
  0x2d   : > { %631 = vrot.lane.b32.xlu0 %v9106_v1, %s9043_s20 }
  0x30   : > { %778 = vrot.lane.b32.xlu1 %v9109_v2, %s9044_s21 }
  0x31   : > { %625 = vrot.lane.b32.xlu0 %v9122_v5, %s9043_s20 }
  0x34   : > { %782 = vrot.lane.b32.xlu1 %v9106_v1, %s9044_s21 }
  0x35   : > { %780 = vrot.lane.b32.xlu0 %v9119_v4, %s9044_s21 }
  0x38   : > { %776 = vrot.lane.b32.xlu1 %v9122_v5, %s9044_s21 }
  0x39   : > { %784 = vrot.lane.b32.xlu0 %v9114_v3, %s9044_s21 }
  0x3c   : > { %931 = vrot.lane.b32.xlu1 %v9119_v4, %s9045_s22 }
  0x3d   : > { %929 = vrot.lane.b32.xlu0 %v9109_v2, %s9045_s22 }
  0x40   : > { %935 = vrot.lane.b32.xlu1 %v9114_v3, %s9045_s22 }
  0x41   : > { %933 = vrot.lane.b32.xlu0 %v9106_v1, %s9045_s22 }
  0x44   : > { %1080 = vrot.lane.b32.xlu1 %v9109_v2, %s9046_s23 }
  0x45   : > { %927 = vrot.lane.b32.xlu0 %v9122_v5, %s9045_s22 }
  0x48   : > { %1084 = vrot.lane.b32.xlu1 %v9106_v1, %s9046_s23 }
  0x49   : > { %1082 = vrot.lane.b32.xlu0 %v9119_v4, %s9046_s23 }
  0x4c   : > { %1078 = vrot.lane.b32.xlu1 %v9122_v5, %s9046_s23 }
  0x4d   : > { %1086 = vrot.lane.b32.xlu0 %v9114_v3, %s9046_s23 }
  0x50   : > { %1233 = vrot.lane.b32.xlu1 %v9119_v4, %s9047_s24 }
  0x51   : > { %1231 = vrot.lane.b32.xlu0 %v9109_v2, %s9047_s24 }
  0x54   : > { %1237 = vrot.lane.b32.xlu1 %v9114_v3, %s9047_s24 }
  0x55   : > { %1235 = vrot.lane.b32.xlu0 %v9106_v1, %s9047_s24 }
  0x58   : > { %1382 = vrot.lane.b32.xlu1 %v9109_v2, %s9048_s25 }
  0x59   : > { %1229 = vrot.lane.b32.xlu0 %v9122_v5, %s9047_s24 }
  0x5c   : > { %1386 = vrot.lane.b32.xlu1 %v9106_v1, %s9048_s25 }
  0x5d   : > { %1384 = vrot.lane.b32.xlu0 %v9119_v4, %s9048_s25 }
  0x60   : > { %1380 = vrot.lane.b32.xlu1 %v9122_v5, %s9048_s25 }
  0x61   : > { %1388 = vrot.lane.b32.xlu0 %v9114_v3, %s9048_s25 }
  0x64   : > { %1535 = vrot.lane.b32.xlu1 %v9119_v4, %s9049_s26 }
  0x65   : > { %1533 = vrot.lane.b32.xlu0 %v9109_v2, %s9049_s26 }
  0x68   : > { %1539 = vrot.lane.b32.xlu1 %v9114_v3, %s9049_s26 }
  0x69   : > { %1537 = vrot.lane.b32.xlu0 %v9106_v1, %s9049_s26 }
  0x6c   : > { %1684 = vrot.lane.b32.xlu1 %v9109_v2, %s9050_s27 }
  0x6d   : > { %1531 = vrot.lane.b32.xlu0 %v9122_v5, %s9049_s26 }
  0x70   : > { %1688 = vrot.lane.b32.xlu1 %v9106_v1, %s9050_s27 }
  0x71   : > { %1686 = vrot.lane.b32.xlu0 %v9119_v4, %s9050_s27 }
  0x74   : > { %1682 = vrot.lane.b32.xlu1 %v9122_v5, %s9050_s27 }
  0x75   : > { %1690 = vrot.lane.b32.xlu0 %v9114_v3, %s9050_s27 }
  0x78   : > { %1837 = vrot.lane.b32.xlu1 %v9119_v4, %s9051_s28 }
  0x79   : > { %1835 = vrot.lane.b32.xlu0 %v9109_v2, %s9051_s28 }
  0x7c   : > { %1841 = vrot.lane.b32.xlu1 %v9114_v3, %s9051_s28 }
  0x7d   : > { %1839 = vrot.lane.b32.xlu0 %v9106_v1, %s9051_s28 }
  0x80   : > { %1986 = vrot.lane.b32.xlu1 %v9109_v2, %s9052_s29 }
  0x81   : > { %1833 = vrot.lane.b32.xlu0 %v9122_v5, %s9051_s28 }
  0x84   : > { %1990 = vrot.lane.b32.xlu1 %v9106_v1, %s9052_s29 }
  0x85   : > { %1988 = vrot.lane.b32.xlu0 %v9119_v4, %s9052_s29 }
  0x86   : > { %v221_v6 = vpop.permute.xlu1 %220 }
  0x87   : > { %v217_v7 = vpop.permute.xlu0 %216 }
  0x88   : > { %1984 = vrot.lane.b32.xlu1 %v9122_v5, %s9052_s29 }
  0x89   : > { %1992 = vrot.lane.b32.xlu0 %v9114_v3, %s9052_s29 }
  0x8a   : > { %v223_v8 = vpop.permute.xlu1 %222 }
  0x8b   : > { %v219_v9 = vpop.permute.xlu0 %218  ;;  %v228_v10 = vsel %vm224_vm0, %v221_v6, %v223_v8 }
  0x8c   : > { %v226_v11 = vsel %vm224_vm0, %v217_v7, %v219_v9  ;;  %291 = vmatprep.subr.bf16.mxu1 %v228_v10  ;;  %v227_v12 = vsel %vm224_vm0, %v219_v9, %v221_v6  ;;  %2139 = vrot.lane.b32.xlu1 %v9119_v4, %s9053_s5  ;;  %v8915_v10 = vld [vmem:[%s11375_s1 + $0x30] sm:$0xff]  }
  0x8d   : > { %240 = vmatprep.subr.bf16.mxu0 %v226_v11  ;;  %292 = vmatpush1.bf16.msra.mxu1 %v227_v12 }
  0x8e   : > { %v477_v14 = vpop.permute.xlu1 %476  ;;  %411 = vmatprep.subr.bf16.mxu1 %v9106_v1  ;;  %2137 = vrot.lane.b32.xlu0 %v9109_v2, %s9053_s5 }
  0x8f   : > { %v215_v15 = vpop.permute.xlu0 %214 }
  0x90   : > { %7977 = vmatmul.mubr.msk.bf16.vlgmr.msra.gmra.mrb[0].mxu1 %vm233_vm1, %v8907_v13  ;;  %v225_v16 = vsel %vm224_vm0, %v215_v15, %v217_v7  ;;  %2143 = vrot.lane.b32.xlu1 %v9114_v3, %s9053_s5 }
  0x91   : > { %241 = vmatpush1.bf16.msra.mxu0 %v225_v16  ;;  %412 = vmatpush1.bf16.msra.mxu1 %v9119_v4 }
  0x92   : > { %360 = vmatprep.subr.bf16.mxu0 %v9109_v2  ;;  %v481_v17 = vpop.permute.xlu1 %480  ;;  %333 = vmatprep.mubr.bf16.mxu1 %v11404_v0 }
  0x93   : > { %v479_v18 = vpop.permute.xlu0 %478  ;;  %2141 = vrot.lane.b32.xlu0 %v9106_v1, %s9053_s5 }
  0x94   : > { %7975 = vmatmul.mubr.msk.bf16.vlgmr.msra.gmra.mrb[0].mxu0 %vm233_vm1, %v8907_v13  ;;  %v486_v20 = vsel %vm484_vm2, %v477_v14, %v479_v18  ;;  %2288 = vrot.lane.b32.xlu1 %v9109_v2, %s9054_s8  ;;  %v487_v27 = vsel %vm484_vm2, %v479_v18, %v481_v17  ;;  %v8916_v18 = vld [vmem:[%s11375_s1 + $0x38] ss:$0 sps:$4 sm:$0xff]  }
  0x95   : > { %361 = vmatpush1.bf16.msra.mxu0 %v9122_v5  ;;  %282 = vmatprep.mubr.bf16.mxu0 %v11404_v0 }
  0x96   : > { %v475_v21 = vpop.permute.xlu1 %474  ;;  %499 = vmatprep.subr.bf16.mxu0 %v486_v20 }
  0x97   : > { %v483_v22 = vpop.permute.xlu0 %482  ;;  %2135 = vrot.lane.b32.xlu0 %v9122_v5, %s9053_s5  ;;  %v485_v31 = vsel %vm484_vm2, %v475_v21, %v477_v14  ;;  %v9469_v21 = vld [vmem:[%s9101_s17 + $0x14] ss:$40 sps:$4 sm:$0xff]  }
  0x98   : > { %7978 = vmatmul.mubr.msk.bf16.gmra.mrb[4].mxu1 %vm233_vm1, %v8908_v19  ;;  %v488_v23 = vsel %vm484_vm2, %v481_v17, %v483_v22  ;;  %2292 = vrot.lane.b32.xlu1 %v9106_v1, %s9054_s8  ;;  %v9450_v17 = vld [vmem:[%s9101_s17 + $0xc] ss:$40 sps:$4 sm:$0xff]  }
  0x99   : > { %443 = vmatprep.mubr.bf16.mxu1 %v11404_v0  ;;  %550 = vmatprep.subr.bf16.mxu1 %v488_v23 }
  0x9a   : > { %v630_v24 = vpop.permute.xlu1 %629 }
  0x9b   : > { %v628_v25 = vpop.permute.xlu0 %627  ;;  %2290 = vrot.lane.b32.xlu0 %v9119_v4, %s9054_s8 }
  0x9c   : > { %7976 = vmatmul.mubr.msk.bf16.gmra.mrb[4].mxu0 %vm233_vm1, %v8908_v19  ;;  %2286 = vrot.lane.b32.xlu1 %v9122_v5, %s9054_s8  ;;  %v637_v34 = vsel %vm635_vm3, %v628_v25, %v630_v24  ;;  %v9459_v19 = vld [vmem:[%s9101_s17 + $0x4] ss:$40 sps:$4 sm:$0xff]  }
  0x9d   : > { %392 = vmatprep.mubr.bf16.mxu0 %v11404_v0 }
  0x9e   : > { %v634_v28 = vpop.permute.xlu1 %633 }
  0x9f   : > { %v632_v29 = vpop.permute.xlu0 %631  ;;  %2294 = vrot.lane.b32.xlu0 %v9114_v3, %s9054_s8 }
  0xa0   : > { %7983 = vmatmul.mubr.msk.bf16.vlgmr.msra.gmra.mrb[0].mxu1 %vm233_vm1, %v8909_v26  ;;  %v639_v30 = vsel %vm635_vm3, %v632_v29, %v634_v28  ;;  %2441 = vrot.lane.b32.xlu1 %v9119_v4, %s9055_s11  ;;  %v638_v41 = vsel %vm635_vm3, %v630_v24, %v632_v29  ;;  %v8917_v24 = vld [vmem:[%s11375_s1 + $0x3c] sm:$0xff]  }
  0xa1   : > { %551 = vmatpush1.bf16.msra.mxu1 %v487_v27  ;;  %453 = vmatprep.mubr.bf16.mxu1 %v11404_v0 }
  0xa2   : > { %701 = vmatprep.subr.bf16.mxu1 %v639_v30  ;;  %v9294_v32 = vpop.permute.xlu1 %778 }
  0xa3   : > { %v626_v33 = vpop.permute.xlu0 %625  ;;  %2439 = vrot.lane.b32.xlu0 %v9109_v2, %s9055_s11 }
  0xa4   : > { %7981 = vmatmul.mubr.msk.bf16.vlgmr.msra.gmra.mrb[0].mxu0 %vm233_vm1, %v8909_v26  ;;  %2445 = vrot.lane.b32.xlu1 %v9114_v3, %s9055_s11  ;;  %v636_v45 = vsel %vm635_vm3, %v626_v33, %v628_v25  ;;  %v8918_v33 = vld [vmem:[%s11375_s1 + $0x44] ss:$0 sps:$4 sm:$0xff]  }
  0xa5   : > { %500 = vmatpush1.bf16.msra.mxu0 %v485_v31  ;;  %402 = vmatprep.mubr.bf16.mxu0 %v11404_v0 }
  0xa6   : > { %650 = vmatprep.subr.bf16.mxu0 %v637_v34  ;;  %v783_v36 = vpop.permute.xlu1 %782 }
  0xa7   : > { %v781_v37 = vpop.permute.xlu0 %780  ;;  %2443 = vrot.lane.b32.xlu0 %v9106_v1, %s9055_s11 }
  0xa8   : > { %7984 = vmatmul.mubr.msk.bf16.gmra.mrb[8].mxu1 %vm233_vm1, %v8910_v35  ;;  %2590 = vrot.lane.b32.xlu1 %v9109_v2, %s9056_s16  ;;  %v788_v47 = vsel %vm786_vm4, %v9294_v32, %v781_v37  ;;  %v789_v55 = vsel %vm786_vm4, %v781_v37, %v783_v36 }
  0xa9   : > { %582 = vmatprep.mubr.bf16.mxu1 %v11404_v0 }
  0xaa   : > { %v777_v38 = vpop.permute.xlu1 %776 }
  0xab   : > { %v785_v39 = vpop.permute.xlu0 %784  ;;  %2437 = vrot.lane.b32.xlu0 %v9122_v5, %s9055_s11  ;;  %v787_v59 = vsel %vm786_vm4, %v777_v38, %v9294_v32  ;;  %v8919_v38 = vld [vmem:[%s11375_s1 + $0x48] sm:$0xff]  }
  0xac   : > { %7982 = vmatmul.mubr.msk.bf16.gmra.mrb[8].mxu0 %vm233_vm1, %v8910_v35  ;;  %2594 = vrot.lane.b32.xlu1 %v9106_v1, %s9056_s16  ;;  %v790_v43 = vsel %vm786_vm4, %v783_v36, %v785_v39 }
  0xad   : > { %531 = vmatprep.mubr.bf16.mxu0 %v11404_v0 }
  0xae   : > { %v9322_v42 = vpop.permute.xlu1 %931 }
  0xaf   : > { %v9325_v44 = vpop.permute.xlu0 %929  ;;  %2592 = vrot.lane.b32.xlu0 %v9119_v4, %s9056_s16 }
  0xb0   : > { %7992 = vmatmul.mubr.msk.bf16.vlgmr.msra.gmra.mrb[0].mxu1 %vm233_vm1, %v8911_v40  ;;  %2588 = vrot.lane.b32.xlu1 %v9122_v5, %s9056_s16  ;;  %v939_v61 = vsel %vm937_vm5, %v9325_v44, %v9322_v42 }
  0xb1   : > { %702 = vmatpush1.bf16.msra.mxu1 %v638_v41  ;;  %592 = vmatprep.mubr.bf16.mxu1 %v11404_v0 }
  0xb2   : > { %852 = vmatprep.subr.bf16.mxu1 %v790_v43  ;;  %v936_v46 = vpop.permute.xlu1 %935 }
  0xb3   : > { %v934_v48 = vpop.permute.xlu0 %933  ;;  %2596 = vrot.lane.b32.xlu0 %v9114_v3, %s9056_s16 }
  0xb4   : > { %7990 = vmatmul.mubr.msk.bf16.vlgmr.msra.gmra.mrb[0].mxu0 %vm233_vm1, %v8911_v40  ;;  %2743 = vrot.lane.b32.xlu1 %v9119_v4, %s9057_s9  ;;  %v941_v57 = vsel %vm937_vm5, %v934_v48, %v936_v46  ;;  %v940_v11 = vsel %vm937_vm5, %v9322_v42, %v934_v48 }
  0xb5   : > { %651 = vmatpush1.bf16.msra.mxu0 %v636_v45  ;;  %541 = vmatprep.mubr.bf16.mxu0 %v11404_v0 }
  0xb6   : > { %801 = vmatprep.subr.bf16.mxu0 %v788_v47  ;;  %v9345_v50 = vpop.permute.xlu1 %1080  ;;  %v8920_v47 = vld [vmem:[%s11375_s1 + $0x50] ss:$0 sps:$4 sm:$0xff]  }
  0xb7   : > { %v9347_v51 = vpop.permute.xlu0 %927  ;;  %2741 = vrot.lane.b32.xlu0 %v9109_v2, %s9057_s9 }
  0xb8   : > { %7993 = vmatmul.mubr.msk.bf16.gmra.mrb[12].mxu1 %vm233_vm1, %v8912_v49  ;;  %2747 = vrot.lane.b32.xlu1 %v9114_v3, %s9057_s9  ;;  %v938_v14 = vsel %vm937_vm5, %v9347_v51, %v9325_v44  ;;  %v8921_v51 = vld [vmem:[%s11375_s1 + $0x54] sm:$0xff]  }
  0xb9   : > { %733 = vmatprep.mubr.bf16.mxu1 %v11404_v0 }
  0xba   : > { %v9355_v52 = vpop.permute.xlu1 %1084 }
  0xbb   : > { %v9357_v53 = vpop.permute.xlu0 %1082  ;;  %2745 = vrot.lane.b32.xlu0 %v9106_v1, %s9057_s9 }
  0xbc   : > { %7991 = vmatmul.mubr.msk.bf16.gmra.mrb[12].mxu0 %vm233_vm1, %v8912_v49  ;;  %2892 = vrot.lane.b32.xlu1 %v9109_v2, %s9058_s15  ;;  %v1091_v25 = vsel %vm1088_vm6, %v9357_v53, %v9355_v52 }
  0xbd   : > { %682 = vmatprep.mubr.bf16.mxu0 %v11404_v0 }
  0xbe   : > { %v9369_v56 = vpop.permute.xlu1 %1078 }
  0xbf   : > { %v1087_v58 = vpop.permute.xlu0 %1086  ;;  %2739 = vrot.lane.b32.xlu0 %v9122_v5, %s9057_s9  ;;  %v1089_v29 = vsel %vm1088_vm6, %v9369_v56, %v9345_v50 }
  0xc0   : > { %8001 = vmatmul.mubr.msk.bf16.vlgmr.msra.gmra.mrb[0].mxu1 %vm233_vm1, %v8913_v54  ;;  %2896 = vrot.lane.b32.xlu1 %v9106_v1, %s9058_s15 }
  0xc1   : > { %853 = vmatpush1.bf16.msra.mxu1 %v789_v55  ;;  %743 = vmatprep.mubr.bf16.mxu1 %v11404_v0 }
  0xc2   : > { %1003 = vmatprep.subr.bf16.mxu1 %v941_v57  ;;  %v9380_v60 = vpop.permute.xlu1 %1233  ;;  %v9619_v57 = vld [vmem:[%s9101_s17 + $0x18] ss:$40 sps:$4 sm:$0xff]  }
  0xc3   : > { %v9385_v62 = vpop.permute.xlu0 %1231  ;;  %2894 = vrot.lane.b32.xlu0 %v9119_v4, %s9058_s15 }
  0xc4   : > { %7999 = vmatmul.mubr.msk.bf16.vlgmr.msra.gmra.mrb[0].mxu0 %vm233_vm1, %v8913_v54  ;;  %2890 = vrot.lane.b32.xlu1 %v9122_v5, %s9058_s15  ;;  %v1241_v31 = vsel %vm1239_vm7, %v9385_v62, %v9380_v60 }
  0xc5   : > { %802 = vmatpush1.bf16.msra.mxu0 %v787_v59  ;;  %692 = vmatprep.mubr.bf16.mxu0 %v11404_v0 }
  0xc6   : > { %952 = vmatprep.subr.bf16.mxu0 %v939_v61  ;;  %v1238_v6 = vpop.permute.xlu1 %1237  ;;  %v9633_v61 = vld [vmem:[%s9101_s17 + $0x14] ss:$40 sps:$4 sm:$0xff]  }
  0xc7   : > { %v9396_v7 = vpop.permute.xlu0 %1235  ;;  %2898 = vrot.lane.b32.xlu0 %v9114_v3, %s9058_s15 }
  0xc8   : > { %8002 = vmatmul.mubr.msk.bf16.gmra.mrb[16].mxu1 %vm233_vm1, %v8914_v63  ;;  %3045 = vrot.lane.b32.xlu1 %v9119_v4, %s9059_s6  ;;  %v9417_v4 = vld [vmem:[%s9101_s17 + $0x8] ss:$40 sps:$4 sm:$0xff]   ;;  %v1243_v27 = vsel %vm1239_vm7, %v9396_v7, %v1238_v6  ;;  %v1242_v39 = vsel %vm1239_vm7, %v9380_v60, %v9396_v7 }
  0xc9   : > { %884 = vmatprep.mubr.bf16.mxu1 %v11404_v0 }
  0xca   : > { %v9404_v8 = vpop.permute.xlu1 %1382 }
  0xcb   : > { %v9406_v9 = vpop.permute.xlu0 %1229  ;;  %3043 = vrot.lane.b32.xlu0 %v9109_v2, %s9059_s6  ;;  %v1092_v2 = vsel %vm1088_vm6, %v9355_v52, %v1087_v58 }
  0xcc   : > { %8000 = vmatmul.mubr.msk.bf16.gmra.mrb[16].mxu0 %vm233_vm1, %v8914_v63  ;;  %3049 = vrot.lane.b32.xlu1 %v9114_v3, %s9059_s6  ;;  %v9434_v3 = vld [vmem:[%s9101_s17 + $0x10] ss:$40 sps:$4 sm:$0xff]   ;;  %v1240_v43 = vsel %vm1239_vm7, %v9406_v9, %v9385_v62  ;;  %v8922_v62 = vld [vmem:[%s11375_s1 + $0x5c] ss:$0 sps:$4 sm:$0xff]   ;;  %v9642_v63 = vld [vmem:[%s9101_s17 + $0x20] ss:$40 sps:$4 sm:$0xff]  }
  0xcd   : > { %833 = vmatprep.mubr.bf16.mxu0 %v11404_v0 }
  0xce   : > { %v9422_v12 = vpop.permute.xlu1 %1386 }
  0xcf   : > { %v9426_v13 = vpop.permute.xlu0 %1384  ;;  %3047 = vrot.lane.b32.xlu0 %v9106_v1, %s9059_s6  ;;  %v1090_v1 = vsel %vm1088_vm6, %v9345_v50, %v9357_v53 }
  0xd0   : > { %8010 = vmatmul.mubr.msk.bf16.vlgmr.msra.gmra.mrb[0].mxu1 %vm233_vm1, %v8915_v10  ;;  %3221 = vrot.lane.b32.xlu1 %v9417_v4, %s9060_s14  ;;  %v1392_v45 = vsel %vm1390_vm8, %v9404_v8, %v9426_v13  ;;  %v1393_v53 = vsel %vm1390_vm8, %v9426_v13, %v9422_v12 }
  0xd1   : > { %1004 = vmatpush1.bf16.msra.mxu1 %v940_v11  ;;  %894 = vmatprep.mubr.bf16.mxu1 %v11404_v0  ;;  %v8923_v11 = vld [vmem:[%s11375_s1 + $0x60] sm:$0xff]  }
  0xd2   : > { %1154 = vmatprep.subr.bf16.mxu1 %v1092_v2  ;;  %v9440_v15 = vpop.permute.xlu1 %1380 }
  0xd3   : > { %v9445_v16 = vpop.permute.xlu0 %1388  ;;  %3041 = vrot.lane.b32.xlu0 %v9122_v5, %s9059_s6  ;;  %v1391_v58 = vsel %vm1390_vm8, %v9440_v15, %v9404_v8  ;;  %v9652_v8 = vld [vmem:[%s9101_s17 + $0x1c] ss:$40 sps:$4 sm:$0xff]  }
  0xd4   : > { %8008 = vmatmul.mubr.msk.bf16.vlgmr.msra.gmra.mrb[0].mxu0 %vm233_vm1, %v8915_v10  ;;  %3225 = vrot.lane.b32.xlu1 %v9434_v3, %s9060_s14  ;;  %v1394_v41 = vsel %vm1390_vm8, %v9422_v12, %v9445_v16 }
  0xd5   : > { %953 = vmatpush1.bf16.msra.mxu0 %v938_v14  ;;  %843 = vmatprep.mubr.bf16.mxu0 %v11404_v0 }
  0xd6   : > { %1103 = vmatprep.subr.bf16.mxu0 %v1090_v1  ;;  %v9462_v20 = vpop.permute.xlu1 %1535 }
  0xd7   : > { %v9464_v5 = vpop.permute.xlu0 %1533  ;;  %3223 = vrot.lane.b32.xlu0 %v9450_v17, %s9060_s14 }
  0xd8   : > { %8011 = vmatmul.mubr.msk.bf16.gmra.mrb[20].mxu1 %vm233_vm1, %v8916_v18  ;;  %3219 = vrot.lane.b32.xlu1 %v9459_v19, %s9060_s14  ;;  %v1543_v60 = vsel %vm1541_vm9, %v9464_v5, %v9462_v20 }
  0xd9   : > { %1035 = vmatprep.mubr.bf16.mxu1 %v11404_v0 }
  0xda   : > { %v9475_v22 = vpop.permute.xlu1 %1539 }
  0xdb   : > { %v9477_v23 = vpop.permute.xlu0 %1537  ;;  %3227 = vrot.lane.b32.xlu0 %v9469_v21, %s9060_s14 }
  0xdc   : > { %8009 = vmatmul.mubr.msk.bf16.gmra.mrb[20].mxu0 %vm233_vm1, %v8916_v18  ;;  %3374 = vrot.lane.b32.xlu1 %v9450_v17, %s11380_s30  ;;  %v1545_v55 = vsel %vm1541_vm9, %v9477_v23, %v9475_v22  ;;  %v1544_v2 = vsel %vm1541_vm9, %v9462_v20, %v9477_v23 }
  0xdd   : > { %984 = vmatprep.mubr.bf16.mxu0 %v11404_v0 }
  0xde   : > { %v9491_v26 = vpop.permute.xlu1 %1684 }
  0xdf   : > { %v9495_v28 = vpop.permute.xlu0 %1531  ;;  %3372 = vrot.lane.b32.xlu0 %v9417_v4, %s11380_s30 }
  0xe0   : > { %8019 = vmatmul.mubr.msk.bf16.vlgmr.msra.gmra.mrb[0].mxu1 %vm233_vm1, %v8917_v24  ;;  %3378 = vrot.lane.b32.xlu1 %v9469_v21, %s11380_s30  ;;  %v1542_v15 = vsel %vm1541_vm9, %v9495_v28, %v9464_v5 }
  0xe1   : > { %1155 = vmatpush1.bf16.msra.mxu1 %v1091_v25  ;;  %1045 = vmatprep.mubr.bf16.mxu1 %v11404_v0 }
  0xe2   : > { %1305 = vmatprep.subr.bf16.mxu1 %v1243_v27  ;;  %v9506_v30 = vpop.permute.xlu1 %1688 }
  0xe3   : > { %v9511_v32 = vpop.permute.xlu0 %1686  ;;  %3376 = vrot.lane.b32.xlu0 %v9434_v3, %s11380_s30 }
  0xe4   : > { %8017 = vmatmul.mubr.msk.bf16.vlgmr.msra.gmra.mrb[0].mxu0 %vm233_vm1, %v8917_v24  ;;  %3523 = vrot.lane.b32.xlu1 %v9417_v4, %s11378_s10  ;;  %v1694_v16 = vsel %vm1692_vm10, %v9491_v26, %v9511_v32  ;;  %v1695_v23 = vsel %vm1692_vm10, %v9511_v32, %v9506_v30 }
  0xe5   : > { %1104 = vmatpush1.bf16.msra.mxu0 %v1089_v29  ;;  %994 = vmatprep.mubr.bf16.mxu0 %v11404_v0 }
  0xe6   : > { %1254 = vmatprep.subr.bf16.mxu0 %v1241_v31  ;;  %v9522_v34 = vpop.permute.xlu1 %1682  ;;  %v8926_v31 = vld [vmem:[%s11375_s1 + $0x74] ss:$0 sps:$4 sm:$0xff]  }
  0xe7   : > { %v9524_v35 = vpop.permute.xlu0 %1690  ;;  %3370 = vrot.lane.b32.xlu0 %v9459_v19, %s11380_s30  ;;  %s9064_s30 = smov 116   ;;  %v1693_v28 = vsel %vm1692_vm10, %v9522_v34, %v9491_v26 }
  0xe8   : > { %8020 = vmatmul.mubr.msk.bf16.gmra.mrb[24].mxu1 %vm233_vm1, %v8918_v33  ;;  %3527 = vrot.lane.b32.xlu1 %v9434_v3, %s11378_s10 }
  0xe9   : > { %1186 = vmatprep.mubr.bf16.mxu1 %v11404_v0 }
  0xea   : > { %v9532_v36 = vpop.permute.xlu1 %1837 }
  0xeb   : > { %v9534_v37 = vpop.permute.xlu0 %1835  ;;  %3525 = vrot.lane.b32.xlu0 %v9450_v17, %s11378_s10 }
  0xec   : > { %8018 = vmatmul.mubr.msk.bf16.gmra.mrb[24].mxu0 %vm233_vm1, %v8918_v33  ;;  %3521 = vrot.lane.b32.xlu1 %v9459_v19, %s11378_s10 }
  0xed   : > { %1135 = vmatprep.mubr.bf16.mxu0 %v11404_v0 }
  0xee   : > { %v9548_v40 = vpop.permute.xlu1 %1841 }
  0xef   : > { %v9553_v42 = vpop.permute.xlu0 %1839  ;;  %3529 = vrot.lane.b32.xlu0 %v9469_v21, %s11378_s10 }
  0xf0   : > { %8028 = vmatmul.mubr.msk.bf16.vlgmr.msra.gmra.mrb[0].mxu1 %vm233_vm1, %v8919_v38  ;;  %3676 = vrot.lane.b32.xlu1 %v9450_v17, %s9063_s4  ;;  %v1847_v25 = vsel %vm1843_vm11, %v9553_v42, %v9548_v40 }
  0xf1   : > { %1306 = vmatpush1.bf16.msra.mxu1 %v1242_v39  ;;  %1196 = vmatprep.mubr.bf16.mxu1 %v11404_v0  ;;  %v1846_v39 = vsel %vm1843_vm11, %v9532_v36, %v9553_v42 }
  0xf2   : > { %1456 = vmatprep.subr.bf16.mxu1 %v1394_v41  ;;  %v9564_v44 = vpop.permute.xlu1 %1986 }
  0xf3   : > { %v9569_v46 = vpop.permute.xlu0 %1833  ;;  %3674 = vrot.lane.b32.xlu0 %v9417_v4, %s9063_s4 }
  0xf4   : > { %8026 = vmatmul.mubr.msk.bf16.vlgmr.msra.gmra.mrb[0].mxu0 %vm233_vm1, %v8919_v38  ;;  %3680 = vrot.lane.b32.xlu1 %v9469_v21, %s9063_s4 }
  0xf5   : > { %1255 = vmatpush1.bf16.msra.mxu0 %v1240_v43  ;;  %1145 = vmatprep.mubr.bf16.mxu0 %v11404_v0 }
  0xf6   : > { %1405 = vmatprep.subr.bf16.mxu0 %v1392_v45  ;;  %v9580_v48 = vpop.permute.xlu1 %1990 }
  0xf7   : > { %v9582_v49 = vpop.permute.xlu0 %1988  ;;  %3678 = vrot.lane.b32.xlu0 %v9434_v3, %s9063_s4 }
  0xf8   : > { %8029 = vmatmul.mubr.msk.bf16.gmra.mrb[28].mxu1 %vm233_vm1, %v8920_v47  ;;  %3825 = vrot.lane.b32.xlu1 %v9417_v4, %s9064_s30  ;;  %v9665_v4 = vld [vmem:[%s9101_s17 + $0x10] ss:$40 sps:$4 sm:$0xff]   ;;  %v1996_v45 = vsel %vm1994_vm12, %v9564_v44, %v9582_v49 }
  0xf9   : > { %1337 = vmatprep.mubr.bf16.mxu1 %v11404_v0 }
  0xfa   : > { %v9590_v50 = vpop.permute.xlu1 %1984 }
  0xfb   : > { %3672 = vrot.lane.b32.xlu0 %v9459_v19, %s9063_s4  ;;  %v9598_v52 = vpop.permute.xlu0 %1992 }
  0xfc   : > { %8027 = vmatmul.mubr.msk.bf16.gmra.mrb[28].mxu0 %vm233_vm1, %v8920_v47  ;;  %3829 = vrot.lane.b32.xlu1 %v9434_v3, %s9064_s30  ;;  %v1696_v3 = vsel %vm1692_vm10, %v9506_v30, %v9524_v35  ;;  %v1845_v30 = vsel %vm1843_vm11, %v9534_v37, %v9532_v36  ;;  %v8927_v35 = vld [vmem:[%s11375_s1 + $0x78] sm:$0xff]   ;;  %v1998_v41 = vsel %vm1994_vm12, %v9580_v48, %v9598_v52  ;;  %v8928_v47 = vld [vmem:[%s11375_s1 + $0x80] ss:$0 sps:$4 sm:$0xff]  }
  0xfd   : > { %1286 = vmatprep.mubr.bf16.mxu0 %v11404_v0  ;;  %v1844_v36 = vsel %vm1843_vm11, %v9569_v46, %v9534_v37 }
  0xfe   : > { %v9606_v54 = vpop.permute.xlu1 %2139 }
  0xff   : > { %3827 = vrot.lane.b32.xlu0 %v9450_v17, %s9064_s30  ;;  %v8924_v17 = vld [vmem:[%s11375_s1 + $0x68] ss:$0 sps:$4 sm:$0xff]  }
 0x100   : > { %8037 = vmatmul.mubr.msk.bf16.vlgmr.msra.gmra.mrb[0].mxu1 %vm233_vm1, %v8921_v51  ;;  %v9614_v56 = vpop.permute.xlu0 %2137  ;;  %3823 = vrot.lane.b32.xlu1 %v9459_v19, %s9064_s30 }
 0x101   : > { %1457 = vmatpush1.bf16.msra.mxu1 %v1393_v53  ;;  %1347 = vmatprep.mubr.bf16.mxu1 %v11404_v0  ;;  %v8931_v53 = vld [vmem:[%s11375_s1 + $0x84] sm:$0xff]  }
 0x102   : > { %1607 = vmatprep.subr.bf16.mxu1 %v1545_v55  ;;  %v9625_v59 = vpop.permute.xlu1 %2143 }
 0x103   : > { %3831 = vrot.lane.b32.xlu0 %v9469_v21, %s9064_s30  ;;  %v8925_v21 = vld [vmem:[%s11375_s1 + $0x6c] sm:$0xff]  }
 0x104   : > { %8035 = vmatmul.mubr.msk.bf16.vlgmr.msra.gmra.mrb[0].mxu0 %vm233_vm1, %v8921_v51  ;;  %4107 = vrot.lane.b32.xlu1 %v9619_v57, %s9041_s18 }
 0x105   : > { %1406 = vmatpush1.bf16.msra.mxu0 %v1391_v58  ;;  %1296 = vmatprep.mubr.bf16.mxu0 %v11404_v0  ;;  %v9645_v6 = vpop.permute.xlu0 %2141  ;;  %v1997_v58 = vsel %vm1994_vm12, %v9582_v49, %v9580_v48  ;;  %v1995_v48 = vsel %vm1994_vm12, %v9590_v50, %v9564_v44 }
 0x106   : > { %1556 = vmatprep.subr.bf16.mxu0 %v1543_v60  ;;  %v9647_v7 = vpop.permute.xlu1 %2288 }
 0x107   : > { %4105 = vrot.lane.b32.xlu0 %v9633_v61, %s9041_s18 }
 0x108   : > { %8038 = vmatmul.mubr.msk.bf16.gmra.mrb[32].mxu1 %vm233_vm1, %v8922_v62  ;;  %4111 = vrot.lane.b32.xlu1 %v9642_v63, %s9041_s18 }
 0x109   : > { %1488 = vmatprep.mubr.bf16.mxu1 %v11404_v0  ;;  %v9658_v9 = vpop.permute.xlu0 %2135 }
 0x10a   : > { %v9660_v10 = vpop.permute.xlu1 %2292 }
 0x10b   : > { %4109 = vrot.lane.b32.xlu0 %v9652_v8, %s9041_s18 }
 0x10c   : > { %8036 = vmatmul.mubr.msk.bf16.gmra.mrb[32].mxu0 %vm233_vm1, %v8922_v62  ;;  %4362 = vrot.lane.b32.xlu1 %v9633_v61, %s9042_s19  ;;  %v2149_v62 = vsel %vm2145_vm13, %v9645_v6, %v9625_v59  ;;  %v2147_v59 = vsel %vm2145_vm13, %v9614_v56, %v9606_v54 }
 0x10d   : > { %1437 = vmatprep.mubr.bf16.mxu0 %v11404_v0  ;;  %v9674_v12 = vpop.permute.xlu0 %2290 }
 0x10e   : > { %v9679_v13 = vpop.permute.xlu1 %2286 }
 0x10f   : > { %4103 = vrot.lane.b32.xlu0 %v9665_v4, %s9041_s18 }
 0x110   : > { %8046 = vmatmul.mubr.msk.bf16.vlgmr.msra.gmra.mrb[0].mxu1 %vm233_vm1, %v8923_v11  ;;  %4366 = vrot.lane.b32.xlu1 %v9652_v8, %s9042_s19 }
 0x111   : > { %1608 = vmatpush1.bf16.msra.mxu1 %v1544_v2  ;;  %1498 = vmatprep.mubr.bf16.mxu1 %v11404_v0  ;;  %v9690_v14 = vpop.permute.xlu0 %2294  ;;  %v8937_v2 = vld [vmem:[%s11375_s1 + $0x8c] ss:$0 sps:$4 sm:$0xff]  }
 0x112   : > { %1758 = vmatprep.subr.bf16.mxu1 %v1696_v3  ;;  %v9695_v1 = vpop.permute.xlu1 %2441 }
 0x113   : > { %4364 = vrot.lane.b32.xlu0 %v9619_v57, %s9042_s19 }
 0x114   : > { %8044 = vmatmul.mubr.msk.bf16.vlgmr.msra.gmra.mrb[0].mxu0 %vm233_vm1, %v8923_v11  ;;  %4360 = vrot.lane.b32.xlu1 %v9665_v4, %s9042_s19 }
 0x115   : > { %1557 = vmatpush1.bf16.msra.mxu0 %v1542_v15  ;;  %1447 = vmatprep.mubr.bf16.mxu0 %v11404_v0  ;;  %v9709_v18 = vpop.permute.xlu0 %2439 }
 0x116   : > { %1707 = vmatprep.subr.bf16.mxu0 %v1694_v16  ;;  %v9711_v19 = vpop.permute.xlu1 %2445  ;;  %v8938_v16 = vld [vmem:[%s11375_s1 + $0x90] sm:$0xff]  }
 0x117   : > { %4368 = vrot.lane.b32.xlu0 %v9642_v63, %s9042_s19 }
 0x118   : > { %8047 = vmatmul.mubr.msk.bf16.gmra.mrb[36].mxu1 %vm233_vm1, %v8924_v17  ;;  %4513 = vrot.lane.b32.xlu1 %v9619_v57, %s9043_s20 }
 0x119   : > { %1639 = vmatprep.mubr.bf16.mxu1 %v11404_v0  ;;  %v9719_v20 = vpop.permute.xlu0 %2443 }
 0x11a   : > { %v9721_v5 = vpop.permute.xlu1 %2590 }
 0x11b   : > { %4511 = vrot.lane.b32.xlu0 %v9633_v61, %s9043_s20 }
 0x11c   : > { %8045 = vmatmul.mubr.msk.bf16.gmra.mrb[36].mxu0 %vm233_vm1, %v8924_v17  ;;  %4517 = vrot.lane.b32.xlu1 %v9642_v63, %s9043_s20 }
 0x11d   : > { %1588 = vmatprep.mubr.bf16.mxu0 %v11404_v0  ;;  %v9732_v22 = vpop.permute.xlu0 %2437 }
 0x11e   : > { %v9737_v24 = vpop.permute.xlu1 %2594 }
 0x11f   : > { %4515 = vrot.lane.b32.xlu0 %v9652_v8, %s9043_s20 }
 0x120   : > { %8055 = vmatmul.mubr.msk.bf16.vlgmr.msra.gmra.mrb[0].mxu1 %vm233_vm1, %v8925_v21  ;;  %4660 = vrot.lane.b32.xlu1 %v9633_v61, %s9044_s21 }
 0x121   : > { %1759 = vmatpush1.bf16.msra.mxu1 %v1695_v23  ;;  %1649 = vmatprep.mubr.bf16.mxu1 %v11404_v0  ;;  %v9748_v27 = vpop.permute.xlu0 %2592 }
 0x122   : > { %1909 = vmatprep.subr.bf16.mxu1 %v1847_v25  ;;  %v9753_v29 = vpop.permute.xlu1 %2588  ;;  %v2300_v25 = vsel %vm11382_vm14, %v9660_v10, %v9690_v14  ;;  %v2298_v14 = vsel %vm11382_vm14, %v9647_v7, %v9674_v12 }
 0x123   : > { %4509 = vrot.lane.b32.xlu0 %v9665_v4, %s9043_s20  ;;  %s11414_s20 = smov 119  }
 0x124   : > { %8053 = vmatmul.mubr.msk.bf16.vlgmr.msra.gmra.mrb[0].mxu0 %vm233_vm1, %v8925_v21  ;;  %4664 = vrot.lane.b32.xlu1 %v9652_v8, %s9044_s21  ;;  %v2148_v21 = vsel %vm2145_vm13, %v9606_v54, %v9645_v6  ;;  %v2146_v54 = vsel %vm2145_vm13, %v9658_v9, %v9614_v56 }
 0x125   : > { %1708 = vmatpush1.bf16.msra.mxu0 %v1693_v28  ;;  %1598 = vmatprep.mubr.bf16.mxu0 %v11404_v0  ;;  %v9767_v26 = vpop.permute.xlu0 %2596 }
 0x126   : > { %1858 = vmatprep.subr.bf16.mxu0 %v1845_v30  ;;  %v9769_v32 = vpop.permute.xlu1 %2743  ;;  %v8939_v30 = vld [vmem:[%s11375_s1 + $0x98] ss:$0 sps:$4 sm:$0xff]  }
 0x127   : > { %4662 = vrot.lane.b32.xlu0 %v9619_v57, %s9044_s21 }
 0x128   : > { %8056 = vmatmul.mubr.msk.bf16.gmra.mrb[40].mxu1 %vm233_vm1, %v8926_v31  ;;  %4658 = vrot.lane.b32.xlu1 %v9665_v4, %s9044_s21 }
 0x129   : > { %1790 = vmatprep.mubr.bf16.mxu1 %v11404_v0  ;;  %v9777_v33 = vpop.permute.xlu0 %2741 }
 0x12a   : > { %v9779_v34 = vpop.permute.xlu1 %2747 }
 0x12b   : > { %4666 = vrot.lane.b32.xlu0 %v9642_v63, %s9044_s21 }
 0x12c   : > { %8054 = vmatmul.mubr.msk.bf16.gmra.mrb[40].mxu0 %vm233_vm1, %v8926_v31  ;;  %4811 = vrot.lane.b32.xlu1 %v9619_v57, %s9045_s22 }
 0x12d   : > { %1739 = vmatprep.mubr.bf16.mxu0 %v11404_v0  ;;  %v9790_v38 = vpop.permute.xlu0 %2745 }
 0x12e   : > { %v9795_v40 = vpop.permute.xlu1 %2892 }
 0x12f   : > { %4809 = vrot.lane.b32.xlu0 %v9633_v61, %s9045_s22 }
 0x130   : > { %8064 = vmatmul.mubr.msk.bf16.vlgmr.msra.gmra.mrb[0].mxu1 %vm233_vm1, %v8927_v35  ;;  %4815 = vrot.lane.b32.xlu1 %v9642_v63, %s9045_s22 }
 0x131   : > { %1910 = vmatpush1.bf16.msra.mxu1 %v1846_v39  ;;  %1800 = vmatprep.mubr.bf16.mxu1 %v11404_v0  ;;  %v9806_v43 = vpop.permute.xlu0 %2739  ;;  %v8940_v39 = vld [vmem:[%s11375_s1 + $0x9c] sm:$0xff]  }
 0x132   : > { %2060 = vmatprep.subr.bf16.mxu1 %v1998_v41  ;;  %v9811_v42 = vpop.permute.xlu1 %2896 }
 0x133   : > { %4813 = vrot.lane.b32.xlu0 %v9652_v8, %s9045_s22 }
 0x134   : > { %8062 = vmatmul.mubr.msk.bf16.vlgmr.msra.gmra.mrb[0].mxu0 %vm233_vm1, %v8927_v35  ;;  %4958 = vrot.lane.b32.xlu1 %v9633_v61, %s9046_s23 }
 0x135   : > { %1859 = vmatpush1.bf16.msra.mxu0 %v1844_v36  ;;  %1749 = vmatprep.mubr.bf16.mxu0 %v11404_v0  ;;  %v9825_v37 = vpop.permute.xlu0 %2894  ;;  %v2299_v36 = vsel %vm11382_vm14, %v9674_v12, %v9660_v10  ;;  %v2297_v10 = vsel %vm11382_vm14, %v9679_v13, %v9647_v7  ;;  %vm11385_vm14 = vcmask 203776  }
 0x136   : > { %2009 = vmatprep.subr.bf16.mxu0 %v1996_v45  ;;  %v9827_v46 = vpop.permute.xlu1 %2890 }
 0x137   : > { %4807 = vrot.lane.b32.xlu0 %v9665_v4, %s9045_s22 }
 0x138   : > { %8065 = vmatmul.mubr.msk.bf16.gmra.mrb[44].mxu1 %vm233_vm1, %v8928_v47  ;;  %4962 = vrot.lane.b32.xlu1 %v9652_v8, %s9046_s23 }
 0x139   : > { %1941 = vmatprep.mubr.bf16.mxu1 %v11404_v0  ;;  %v9835_v51 = vpop.permute.xlu0 %2898 }
 0x13a   : > { %v9837_v52 = vpop.permute.xlu1 %3045 }
 0x13b   : > { %4960 = vrot.lane.b32.xlu0 %v9619_v57, %s9046_s23 }
 0x13c   : > { %8063 = vmatmul.mubr.msk.bf16.gmra.mrb[44].mxu0 %vm233_vm1, %v8928_v47  ;;  %4956 = vrot.lane.b32.xlu1 %v9665_v4, %s9046_s23  ;;  %v2451_v47 = vsel %vm11384_vm15, %v9719_v20, %v9711_v19  ;;  %v2449_v19 = vsel %vm11384_vm15, %v9709_v18, %v9695_v1 }
 0x13d   : > { %1890 = vmatprep.mubr.bf16.mxu0 %v11404_v0  ;;  %v9848_v55 = vpop.permute.xlu0 %3043 }
 0x13e   : > { %v9853_v60 = vpop.permute.xlu1 %3049 }
 0x13f   : > { %4964 = vrot.lane.b32.xlu0 %v9642_v63, %s9046_s23 }
 0x140   : > { %8073 = vmatmul.mubr.msk.bf16.vlgmr.msra.gmra.mrb[0].mxu1 %vm233_vm1, %v8931_v53  ;;  %5109 = vrot.lane.b32.xlu1 %v9619_v57, %s9047_s24 }
 0x141   : > { %2061 = vmatpush1.bf16.msra.mxu1 %v1997_v58  ;;  %1951 = vmatprep.mubr.bf16.mxu1 %v11404_v0  ;;  %v9864_v11 = vpop.permute.xlu0 %3047  ;;  %v8941_v58 = vld [vmem:[%s11375_s1 + $0xa4] ss:$0 sps:$4 sm:$0xff]  }
 0x142   : > { %2211 = vmatprep.subr.bf16.mxu1 %v2149_v62  ;;  %v9869_v49 = vpop.permute.xlu1 %3221 }
 0x143   : > { %5107 = vrot.lane.b32.xlu0 %v9633_v61, %s9047_s24 }
 0x144   : > { %8071 = vmatmul.mubr.msk.bf16.vlgmr.msra.gmra.mrb[0].mxu0 %vm233_vm1, %v8931_v53  ;;  %5113 = vrot.lane.b32.xlu1 %v9642_v63, %s9047_s24 }
 0x145   : > { %2010 = vmatpush1.bf16.msra.mxu0 %v1995_v48  ;;  %1900 = vmatprep.mubr.bf16.mxu0 %v11404_v0  ;;  %v9883_v44 = vpop.permute.xlu0 %3041 }
 0x146   : > { %2160 = vmatprep.subr.bf16.mxu0 %v2147_v59  ;;  %v9885_v50 = vpop.permute.xlu1 %3225 }
 0x147   : > { %5111 = vrot.lane.b32.xlu0 %v9652_v8, %s9047_s24 }
 0x148   : > { %8074 = vmatmul.mubr.msk.bf16.gmra.mrb[48].mxu1 %vm233_vm1, %v8937_v2  ;;  %5256 = vrot.lane.b32.xlu1 %v9633_v61, %s9048_s25 }
 0x149   : > { %2092 = vmatprep.mubr.bf16.mxu1 %v11404_v0  ;;  %v9893_v3 = vpop.permute.xlu0 %3223 }
 0x14a   : > { %v9895_v15 = vpop.permute.xlu1 %3219 }
 0x14b   : > { %5105 = vrot.lane.b32.xlu0 %v9665_v4, %s9047_s24 }
 0x14c   : > { %8072 = vmatmul.mubr.msk.bf16.gmra.mrb[48].mxu0 %vm233_vm1, %v8937_v2  ;;  %5260 = vrot.lane.b32.xlu1 %v9652_v8, %s9048_s25 }
 0x14d   : > { %2041 = vmatprep.mubr.bf16.mxu0 %v11404_v0  ;;  %v9906_v17 = vpop.permute.xlu0 %3227 }
 0x14e   : > { %v9911_v23 = vpop.permute.xlu1 %3374 }
 0x14f   : > { %5258 = vrot.lane.b32.xlu0 %v9619_v57, %s9048_s25 }
 0x150   : > { %8082 = vmatmul.mubr.msk.bf16.vlgmr.msra.gmra.mrb[0].mxu1 %vm233_vm1, %v8938_v16  ;;  %5254 = vrot.lane.b32.xlu1 %v9665_v4, %s9048_s25 }
 0x151   : > { %2212 = vmatpush1.bf16.msra.mxu1 %v2148_v21  ;;  %2102 = vmatprep.mubr.bf16.mxu1 %v11404_v0  ;;  %v9922_v28 = vpop.permute.xlu0 %3372 }
 0x152   : > { %2362 = vmatprep.subr.bf16.mxu1 %v2300_v25  ;;  %v9927_v6 = vpop.permute.xlu1 %3378 }
 0x153   : > { %5262 = vrot.lane.b32.xlu0 %v9642_v63, %s9048_s25 }
 0x154   : > { %8080 = vmatmul.mubr.msk.bf16.vlgmr.msra.gmra.mrb[0].mxu0 %vm233_vm1, %v8938_v16  ;;  %5407 = vrot.lane.b32.xlu1 %v9619_v57, %s9049_s26  ;;  %v8942_v16 = vld [vmem:[%s11375_s1 + $0xa8] sm:$0xff]  }
 0x155   : > { %2161 = vmatpush1.bf16.msra.mxu0 %v2146_v54  ;;  %2051 = vmatprep.mubr.bf16.mxu0 %v11404_v0  ;;  %v9941_v56 = vpop.permute.xlu0 %3376 }
 0x156   : > { %2311 = vmatprep.subr.bf16.mxu0 %v2298_v14  ;;  %v9943_v9 = vpop.permute.xlu1 %3523  ;;  %v2450_v14 = vsel %vm11384_vm15, %v9695_v1, %v9719_v20  ;;  %v2448_v20 = vsel %vm11384_vm15, %v9732_v22, %v9709_v18  ;;  %vm11386_vm15 = vcmask 195584  }
 0x157   : > { %5405 = vrot.lane.b32.xlu0 %v9633_v61, %s9049_s26 }
 0x158   : > { %8083 = vmatmul.mubr.msk.bf16.gmra.mrb[52].mxu1 %vm233_vm1, %v8939_v30  ;;  %5411 = vrot.lane.b32.xlu1 %v9642_v63, %s9049_s26 }
 0x159   : > { %2243 = vmatprep.mubr.bf16.mxu1 %v11404_v0  ;;  %v9951_v31 = vpop.permute.xlu0 %3370 }
 0x15a   : > { %v9953_v35 = vpop.permute.xlu1 %3527 }
 0x15b   : > { %5409 = vrot.lane.b32.xlu0 %v9652_v8, %s9049_s26 }
 0x15c   : > { %8081 = vmatmul.mubr.msk.bf16.gmra.mrb[52].mxu0 %vm233_vm1, %v8939_v30  ;;  %5554 = vrot.lane.b32.xlu1 %v9633_v61, %s9050_s27 }
 0x15d   : > { %2192 = vmatprep.mubr.bf16.mxu0 %v11404_v0  ;;  %v9964_v41 = vpop.permute.xlu0 %3525 }
 0x15e   : > { %v9969_v45 = vpop.permute.xlu1 %3521 }
 0x15f   : > { %5403 = vrot.lane.b32.xlu0 %v9665_v4, %s9049_s26 }
 0x160   : > { %8091 = vmatmul.mubr.msk.bf16.vlgmr.msra.gmra.mrb[0].mxu1 %vm233_vm1, %v8940_v39  ;;  %5558 = vrot.lane.b32.xlu1 %v9652_v8, %s9050_s27 }
 0x161   : > { %2363 = vmatpush1.bf16.msra.mxu1 %v2299_v36  ;;  %2253 = vmatprep.mubr.bf16.mxu1 %v11404_v0  ;;  %v9980_v53 = vpop.permute.xlu0 %3529 }
 0x162   : > { %2513 = vmatprep.subr.bf16.mxu1 %v2451_v47  ;;  %v9985_v12 = vpop.permute.xlu1 %3676 }
 0x163   : > { %5556 = vrot.lane.b32.xlu0 %v9619_v57, %s9050_s27 }
 0x164   : > { %8089 = vmatmul.mubr.msk.bf16.vlgmr.msra.gmra.mrb[0].mxu0 %vm233_vm1, %v8940_v39  ;;  %5552 = vrot.lane.b32.xlu1 %v9665_v4, %s9050_s27  ;;  %v2602_v39 = vsel %vm11385_vm14, %v9737_v24, %v9767_v26 }
 0x165   : > { %2312 = vmatpush1.bf16.msra.mxu0 %v2297_v10  ;;  %2202 = vmatprep.mubr.bf16.mxu0 %v11404_v0  ;;  %v9999_v7 = vpop.permute.xlu0 %3674 }
 0x166   : > { %2462 = vmatprep.subr.bf16.mxu0 %v2449_v19  ;;  %v10001_v13 = vpop.permute.xlu1 %3680  ;;  %v2600_v19 = vsel %vm11385_vm14, %v9721_v5, %v9748_v27 }
 0x167   : > { %5560 = vrot.lane.b32.xlu0 %v9642_v63, %s9050_s27 }
 0x168   : > { %8092 = vmatmul.mubr.msk.bf16.gmra.mrb[56].mxu1 %vm233_vm1, %v8941_v58  ;;  %5705 = vrot.lane.b32.xlu1 %v9619_v57, %s9051_s28 }
 0x169   : > { %2394 = vmatprep.mubr.bf16.mxu1 %v11404_v0  ;;  %v10009_v62 = vpop.permute.xlu0 %3678 }
 0x16a   : > { %v10011_v48 = vpop.permute.xlu1 %3825 }
 0x16b   : > { %v335_v59 = vpop.f32.mrb[4].mxu1  ;;  %5703 = vrot.lane.b32.xlu0 %v9633_v61, %s9051_s28 }
 0x16c   : > { %8090 = vmatmul.mubr.msk.bf16.gmra.mrb[56].mxu0 %vm233_vm1, %v8941_v58  ;;  %v337_v2 = vpop.f32.mrb[5].mxu1  ;;  %5709 = vrot.lane.b32.xlu1 %v9642_v63, %s9051_s28  ;;  %v8948_v58 = vld [vmem:[%s11375_s1 + $0xb0] ss:$0 sps:$4 sm:$0xff]  }
 0x16d   : > { %v339_v21 = vpop.f32.mrb[6].mxu1  ;;  %2343 = vmatprep.mubr.bf16.mxu0 %v11404_v0  ;;  %v10022_v25 = vpop.permute.xlu0 %3672 }
 0x16e   : > { %v340_v54 = vpop.f32.mrb[7].mxu1  ;;  %v10032_v36 = vpop.permute.xlu1 %3829 }
 0x16f   : > { %v284_v30 = vpop.f32.mrb[4].mxu0  ;;  %5707 = vrot.lane.b32.xlu0 %v9652_v8, %s9051_s28 }
 0x170   : > { %v286_v47 = vpop.f32.mrb[5].mxu0  ;;  %8100 = vmatmul.mubr.msk.bf16.vlgmr.msra.gmra.mrb[0].mxu1 %vm233_vm1, %v8942_v16  ;;  %5852 = vrot.lane.b32.xlu1 %v9633_v61, %s9052_s29 }
 0x171   : > { %v288_v10 = vpop.f32.mrb[6].mxu0  ;;  %2514 = vmatpush1.bf16.msra.mxu1 %v2450_v14  ;;  %2404 = vmatprep.mubr.bf16.mxu1 %v11404_v0  ;;  %v10038_v1 = vpop.permute.xlu0 %3827 }
 0x172   : > { %v289_v26 = vpop.f32.mrb[7].mxu0  ;;  %2664 = vmatprep.subr.bf16.mxu1 %v2602_v39  ;;  %v10057_v22 = vpop.permute.xlu1 %3823  ;;  %v8951_v10 = vld [vmem:[%s11375_s1 + $0xb4] sm:$0xff]  }
 0x173   : > { %5701 = vrot.lane.b32.xlu0 %v9665_v4, %s9051_s28 }
 0x174   : > { %8098 = vmatmul.mubr.msk.bf16.vlgmr.msra.gmra.mrb[0].mxu0 %vm233_vm1, %v8942_v16  ;;  %5856 = vrot.lane.b32.xlu1 %v9652_v8, %s9052_s29 }
 0x175   : > { %2463 = vmatpush1.bf16.msra.mxu0 %v2448_v20  ;;  %2353 = vmatprep.mubr.bf16.mxu0 %v11404_v0  ;;  %v10055_v18 = vpop.permute.xlu0 %3831 }
 0x176   : > { %2613 = vmatprep.subr.bf16.mxu0 %v2600_v19  ;;  %v10069_v54 = vpop.permute.xlu1 %4107 }
 0x177   : > { %5854 = vrot.lane.b32.xlu0 %v9619_v57, %s9052_s29 }
 0x178   : > { %8101 = vmatmul.mubr.msk.bf16.gmra.mrb[60].mxu1 %vm233_vm1, %v8948_v58  ;;  %5850 = vrot.lane.b32.xlu1 %v9665_v4, %s9052_s29 }
 0x179   : > { %2545 = vmatprep.mubr.bf16.mxu1 %v11404_v0  ;;  %v10065_v16 = vpop.permute.xlu0 %4105 }
 0x17a   : > { %11411 = vst [vmem:[#allocation2_spill] sm:$0xff] %v10065_v16  ;;  %v2601_v16 = vsel %vm11385_vm14, %v9748_v27, %v9737_v24  ;;  %v10092_v27 = vpop.permute.xlu1 %4111 }
 0x17b   : > { %v455_v21 = vpop.f32.mrb[8].mxu1  ;;  %5858 = vrot.lane.b32.xlu0 %v9642_v63, %s9052_s29  ;;  %s8864_s29 = smul.u32 96, %s11503_s13 }
 0x17c   : > { %v456_v14 = vadd.f32 %v455_v21, %v335_v59  ;;  %8099 = vmatmul.mubr.msk.bf16.gmra.mrb[60].mxu0 %vm233_vm1, %v8948_v58  ;;  %v457_v39 = vpop.f32.mrb[9].mxu1  ;;  %6003 = vrot.lane.b32.xlu1 %v9619_v57, %s9053_s5  ;;  %v2753_v58 = vsel %vm11386_vm15, %v9790_v38, %v9779_v34  ;;  %v2599_v34 = vsel %vm11385_vm14, %v9753_v29, %v9721_v5  ;;  %vm11388_vm14 = vcmask 187392  }
 0x17d   : > { %v458_v20 = vadd.f32 %v457_v39, %v337_v2  ;;  %v459_v26 = vpop.f32.mrb[10].mxu1  ;;  %2494 = vmatprep.mubr.bf16.mxu0 %v11404_v0  ;;  %v10086_v21 = vpop.permute.xlu0 %4109 }
 0x17e   : > { %v460_v19 = vpop.f32.mrb[11].mxu1  ;;  %v10113_v29 = vpop.permute.xlu1 %4362 }
 0x17f   : > { %v404_v59 = vpop.f32.mrb[8].mxu0  ;;  %6001 = vrot.lane.b32.xlu0 %v9633_v61, %s9053_s5 }
 0x180   : > { %v405_v2 = vadd.f32 %v404_v59, %v284_v30  ;;  %v406_v39 = vpop.f32.mrb[9].mxu0  ;;  %8109 = vmatmul.mubr.msk.bf16.vlgmr.msra.gmra.mrb[0].mxu1 %vm233_vm1, %v8951_v10  ;;  %6007 = vrot.lane.b32.xlu1 %v9642_v63, %s9053_s5  ;;  %v2751_v30 = vsel %vm11386_vm15, %v9777_v33, %v9769_v32 }
 0x181   : > { %v407_v26 = vadd.f32 %v406_v39, %v286_v47  ;;  %v408_v24 = vpop.f32.mrb[10].mxu0  ;;  %2665 = vmatpush1.bf16.msra.mxu1 %v2601_v16  ;;  %2555 = vmatprep.mubr.bf16.mxu1 %v11404_v0  ;;  %v8952_v47 = vld [vmem:[%s11375_s1 + $0xbc] ss:$0 sps:$4 sm:$0xff]   ;;  %v10109_v5 = vpop.permute.xlu0 %4103  ;;  %v8953_v39 = vld [vmem:[%s11375_s1 + $0xc0] sm:$0xff]  }
 0x182   : > { %v409_v19 = vpop.f32.mrb[11].mxu0  ;;  %2815 = vmatprep.subr.bf16.mxu1 %v2753_v58 }
 0x183   : > { %6005 = vrot.lane.b32.xlu0 %v9652_v8, %s9053_s5  ;;  %v10130_v19 = vpop.permute.xlu1 %4366 }
 0x184   : > { %8107 = vmatmul.mubr.msk.bf16.vlgmr.msra.gmra.mrb[0].mxu0 %vm233_vm1, %v8951_v10  ;;  %6150 = vrot.lane.b32.xlu1 %v9633_v61, %s9054_s8 }
 0x185   : > { %2614 = vmatpush1.bf16.msra.mxu0 %v2599_v34  ;;  %2504 = vmatprep.mubr.bf16.mxu0 %v11404_v0  ;;  %v10121_v10 = vpop.permute.xlu0 %4364 }
 0x186   : > { %2764 = vmatprep.subr.bf16.mxu0 %v2751_v30 }
 0x187   : > { %5999 = vrot.lane.b32.xlu0 %v9665_v4, %s9053_s5 }
 0x188   : > { %8110 = vmatmul.mubr.msk.bf16.gmra.mrb[64].mxu1 %vm233_vm1, %v8952_v47  ;;  %6154 = vrot.lane.b32.xlu1 %v9652_v8, %s9054_s8 }
 0x189   : > { %2696 = vmatprep.mubr.bf16.mxu1 %v11404_v0 }
 0x18b   : > { %v594_v16 = vpop.f32.mrb[12].mxu1  ;;  %6152 = vrot.lane.b32.xlu0 %v9619_v57, %s9054_s8 }
 0x18c   : > { %v611_v59 = vadd.f32 %v594_v16, %v456_v14  ;;  %8108 = vmatmul.mubr.msk.bf16.gmra.mrb[64].mxu0 %vm233_vm1, %v8952_v47  ;;  %v596_v58 = vpop.f32.mrb[13].mxu1  ;;  %6148 = vrot.lane.b32.xlu1 %v9665_v4, %s9054_s8  ;;  %v2752_v14 = vsel %vm11386_vm15, %v9769_v32, %v9790_v38  ;;  %v2904_v16 = vsel %vm11388_vm14, %v9811_v42, %v9835_v51  ;;  %v10144_v32 = vpop.permute.xlu0 %4368 }
 0x18d   : > { %v612_v24 = vadd.f32 %v596_v58, %v458_v20  ;;  %v598_v34 = vpop.f32.mrb[14].mxu1  ;;  %2645 = vmatprep.mubr.bf16.mxu0 %v11404_v0  ;;  %v2750_v38 = vsel %vm11386_vm15, %v9806_v43, %v9777_v33  ;;  %vm11389_vm15 = vcmask 179200  }
 0x18e   : > { %v599_v30 = vpop.f32.mrb[15].mxu1 }
 0x18f   : > { %v543_v47 = vpop.f32.mrb[12].mxu0  ;;  %6156 = vrot.lane.b32.xlu0 %v9642_v63, %s9054_s8  ;;  %s11049_s8 = scalar_lea.vmem %s11377_s3, %s8864_s29 }
 0x190   : > { %v609_v20 = vadd.f32 %v543_v47, %v405_v2  ;;  %v545_v58 = vpop.f32.mrb[13].mxu0  ;;  %8118 = vmatmul.mubr.msk.bf16.vlgmr.msra.gmra.mrb[0].mxu1 %vm233_vm1, %v8953_v39  ;;  %6301 = vrot.lane.b32.xlu1 %v9619_v57, %s9055_s11  ;;  %v2902_v2 = vsel %vm11388_vm14, %v9795_v40, %v9825_v37  ;;  %v10165_v33 = vpop.permute.xlu0 %4511 }
 0x191   : > { %v610_v34 = vadd.f32 %v545_v58, %v407_v26  ;;  %v547_v30 = vpop.f32.mrb[14].mxu0  ;;  %2816 = vmatpush1.bf16.msra.mxu1 %v2752_v14  ;;  %2706 = vmatprep.mubr.bf16.mxu1 %v11404_v0  ;;  %v10154_v26 = vpop.permute.xlu1 %4360  ;;  %v8954_v14 = vld [vmem:[%s11375_s1 + $0xc8] ss:$0 sps:$4 sm:$0xff]   ;;  %v8955_v58 = vld [vmem:[%s11375_s1 + $0xcc] sm:$0xff]  }
 0x192   : > { %v548_v51 = vpop.f32.mrb[15].mxu0  ;;  %2966 = vmatprep.subr.bf16.mxu1 %v2904_v16 }
 0x193   : > { %6299 = vrot.lane.b32.xlu0 %v9633_v61, %s9055_s11 }
 0x194   : > { %8116 = vmatmul.mubr.msk.bf16.vlgmr.msra.gmra.mrb[0].mxu0 %vm233_vm1, %v8953_v39  ;;  %6305 = vrot.lane.b32.xlu1 %v9642_v63, %s9055_s11  ;;  %v10182_v51 = vpop.permute.xlu0 %4515 }
 0x195   : > { %2765 = vmatpush1.bf16.msra.mxu0 %v2750_v38  ;;  %2655 = vmatprep.mubr.bf16.mxu0 %v11404_v0  ;;  %v10171_v43 = vpop.permute.xlu1 %4513 }
 0x196   : > { %2915 = vmatprep.subr.bf16.mxu0 %v2902_v2 }
 0x197   : > { %6303 = vrot.lane.b32.xlu0 %v9652_v8, %s9055_s11 }
 0x198   : > { %8119 = vmatmul.mubr.msk.bf16.gmra.mrb[68].mxu1 %vm233_vm1, %v8954_v14  ;;  %6448 = vrot.lane.b32.xlu1 %v9633_v61, %s9056_s16 }
 0x199   : > { %2847 = vmatprep.mubr.bf16.mxu1 %v11404_v0 }
 0x19b   : > { %v745_v39 = vpop.f32.mrb[16].mxu1  ;;  %6297 = vrot.lane.b32.xlu0 %v9665_v4, %s9055_s11 }
 0x19c   : > { %v762_v47 = vadd.f32 %v745_v39, %v611_v59  ;;  %8117 = vmatmul.mubr.msk.bf16.gmra.mrb[68].mxu0 %vm233_vm1, %v8954_v14  ;;  %v747_v16 = vpop.f32.mrb[17].mxu1  ;;  %6452 = vrot.lane.b32.xlu1 %v9652_v8, %s9056_s16  ;;  %v2903_v59 = vsel %vm11388_vm14, %v9825_v37, %v9811_v42  ;;  %v3055_v39 = vsel %vm11389_vm15, %v9864_v11, %v9853_v60 }
 0x19d   : > { %v763_v30 = vadd.f32 %v747_v16, %v612_v24  ;;  %v749_v38 = vpop.f32.mrb[18].mxu1  ;;  %2796 = vmatprep.mubr.bf16.mxu0 %v11404_v0  ;;  %v10192_v24 = vpop.permute.xlu1 %4517  ;;  %v2901_v37 = vsel %vm11388_vm14, %v9827_v46, %v9795_v40  ;;  %vm11390_vm14 = vcmask 982016  }
 0x19e   : > { %v750_v2 = vpop.f32.mrb[19].mxu1 }
 0x19f   : > { %v694_v14 = vpop.f32.mrb[16].mxu0  ;;  %6450 = vrot.lane.b32.xlu0 %v9619_v57, %s9056_s16 }
 0x1a0   : > { %v760_v16 = vadd.f32 %v694_v14, %v609_v20  ;;  %v696_v38 = vpop.f32.mrb[17].mxu0  ;;  %8127 = vmatmul.mubr.msk.bf16.vlgmr.msra.gmra.mrb[0].mxu1 %vm233_vm1, %v8955_v58  ;;  %6446 = vrot.lane.b32.xlu1 %v9665_v4, %s9056_s16  ;;  %v3053_v20 = vsel %vm11389_vm15, %v9848_v55, %v9837_v52  ;;  %v10204_v14 = vpop.permute.xlu0 %4509 }
 0x1a1   : > { %v761_v2 = vadd.f32 %v696_v38, %v610_v34  ;;  %v698_v42 = vpop.f32.mrb[18].mxu0  ;;  %2967 = vmatpush1.bf16.msra.mxu1 %v2903_v59  ;;  %2857 = vmatprep.mubr.bf16.mxu1 %v11404_v0  ;;  %v8956_v34 = vld [vmem:[%s11375_s1 + $0xd4] ss:$0 sps:$4 sm:$0xff]   ;;  %v10215_v40 = vpop.permute.xlu1 %4660 }
 0x1a2   : > { %v699_v60 = vpop.f32.mrb[19].mxu0  ;;  %3117 = vmatprep.subr.bf16.mxu1 %v3055_v39  ;;  %11412 = vst [vmem:[#allocation3_spill] sm:$0xff] %v10215_v40  ;;  %v8957_v42 = vld [vmem:[%s11375_s1 + $0xd8] sm:$0xff]   ;;  %v3054_v40 = vsel %vm11389_vm15, %v9837_v52, %v9864_v11 }
 0x1a3   : > { %6454 = vrot.lane.b32.xlu0 %v9642_v63, %s9056_s16 }
 0x1a4   : > { %8125 = vmatmul.mubr.msk.bf16.vlgmr.msra.gmra.mrb[0].mxu0 %vm233_vm1, %v8955_v58  ;;  %6599 = vrot.lane.b32.xlu1 %v9619_v57, %s9057_s9  ;;  %v10223_v46 = vpop.permute.xlu0 %4662 }
 0x1a5   : > { %2916 = vmatpush1.bf16.msra.mxu0 %v2901_v37  ;;  %2806 = vmatprep.mubr.bf16.mxu0 %v11404_v0  ;;  %v10225_v59 = vpop.permute.xlu1 %4664 }
 0x1a6   : > { %3066 = vmatprep.subr.bf16.mxu0 %v3053_v20 }
 0x1a7   : > { %6597 = vrot.lane.b32.xlu0 %v9633_v61, %s9057_s9 }
 0x1a8   : > { %8128 = vmatmul.mubr.msk.bf16.gmra.mrb[72].mxu1 %vm233_vm1, %v8956_v34  ;;  %6603 = vrot.lane.b32.xlu1 %v9642_v63, %s9057_s9 }
 0x1a9   : > { %2998 = vmatprep.mubr.bf16.mxu1 %v11404_v0  ;;  %v10250_v11 = vpop.permute.xlu1 %4658 }
 0x1ab   : > { %v896_v58 = vpop.f32.mrb[20].mxu1  ;;  %6601 = vrot.lane.b32.xlu0 %v9652_v8, %s9057_s9 }
 0x1ac   : > { %v913_v39 = vadd.f32 %v896_v58, %v762_v47  ;;  %8126 = vmatmul.mubr.msk.bf16.gmra.mrb[72].mxu0 %vm233_vm1, %v8956_v34  ;;  %v898_v38 = vpop.f32.mrb[21].mxu1  ;;  %6746 = vrot.lane.b32.xlu1 %v9633_v61, %s9058_s15  ;;  %v3233_v34 = vsel %vm11390_vm14, %v9885_v50, %v9906_v17  ;;  %v10242_v58 = vpop.permute.xlu0 %4666  ;;  %v3052_v17 = vsel %vm11389_vm15, %v9883_v44, %v9848_v55  ;;  %vm11392_vm15 = vcmask 973824  }
 0x1ad   : > { %v914_v37 = vadd.f32 %v898_v38, %v763_v30  ;;  %v900_v60 = vpop.f32.mrb[22].mxu1  ;;  %2947 = vmatprep.mubr.bf16.mxu0 %v11404_v0  ;;  %v10269_v44 = vpop.permute.xlu1 %4811 }
 0x1ae   : > { %v901_v20 = vpop.f32.mrb[23].mxu1 }
 0x1af   : > { %v845_v47 = vpop.f32.mrb[20].mxu0  ;;  %6595 = vrot.lane.b32.xlu0 %v9665_v4, %s9057_s9 }
 0x1b0   : > { %v911_v30 = vadd.f32 %v845_v47, %v760_v16  ;;  %v847_v38 = vpop.f32.mrb[21].mxu0  ;;  %8136 = vmatmul.mubr.msk.bf16.vlgmr.msra.gmra.mrb[0].mxu1 %vm233_vm1, %v8957_v42  ;;  %6750 = vrot.lane.b32.xlu1 %v9652_v8, %s9058_s15  ;;  %v3231_v16 = vsel %vm11390_vm14, %v9869_v49, %v9893_v3  ;;  %v10267_v55 = vpop.permute.xlu0 %4809 }
 0x1b1   : > { %v912_v60 = vadd.f32 %v847_v38, %v761_v2  ;;  %v849_v52 = vpop.f32.mrb[22].mxu0  ;;  %3118 = vmatpush1.bf16.msra.mxu1 %v3054_v40  ;;  %3008 = vmatprep.mubr.bf16.mxu1 %v11404_v0  ;;  %v8958_v2 = vld [vmem:[%s11375_s1 + $0xe0] ss:$0 sps:$4 sm:$0xff]   ;;  %v8959_v38 = vld [vmem:[%s11375_s1 + $0xe4] sm:$0xff]  }
 0x1b2   : > { %v850_v20 = vpop.f32.mrb[23].mxu0  ;;  %3295 = vmatprep.subr.bf16.mxu1 %v3233_v34 }
 0x1b3   : > { %6748 = vrot.lane.b32.xlu0 %v9619_v57, %s9058_s15  ;;  %v10291_v20 = vpop.permute.xlu1 %4815 }
 0x1b4   : > { %8134 = vmatmul.mubr.msk.bf16.vlgmr.msra.gmra.mrb[0].mxu0 %vm233_vm1, %v8957_v42  ;;  %6744 = vrot.lane.b32.xlu1 %v9665_v4, %s9058_s15  ;;  %v10277_v42 = vpop.permute.xlu0 %4813 }
 0x1b5   : > { %3067 = vmatpush1.bf16.msra.mxu0 %v3052_v17  ;;  %2957 = vmatprep.mubr.bf16.mxu0 %v11404_v0 }
 0x1b6   : > { %3244 = vmatprep.subr.bf16.mxu0 %v3231_v16 }
 0x1b7   : > { %6752 = vrot.lane.b32.xlu0 %v9642_v63, %s9058_s15 }
 0x1b8   : > { %8137 = vmatmul.mubr.msk.bf16.gmra.mrb[76].mxu1 %vm233_vm1, %v8958_v2  ;;  %6897 = vrot.lane.b32.xlu1 %v9619_v57, %s9059_s6  ;;  %v10288_v57 = vld [vmem:[%s9101_s17 + $0x18] ss:$40 sps:$4 sm:$0xff]  }
 0x1b9   : > { %3149 = vmatprep.mubr.bf16.mxu1 %v11404_v0 }
 0x1bb   : > { %v1047_v40 = vpop.f32.mrb[24].mxu1  ;;  %6895 = vrot.lane.b32.xlu0 %v9633_v61, %s9059_s6 }
 0x1bc   : > { %v1064_v47 = vadd.f32 %v1047_v40, %v913_v39  ;;  %8135 = vmatmul.mubr.msk.bf16.gmra.mrb[76].mxu0 %vm233_vm1, %v8958_v2  ;;  %v1049_v34 = vpop.f32.mrb[25].mxu1  ;;  %6901 = vrot.lane.b32.xlu1 %v9642_v63, %s9059_s6  ;;  %v3232_v39 = vsel %vm11390_vm14, %v9893_v3, %v9885_v50  ;;  %v3384_v63 = vsel %vm11392_vm15, %v9941_v56, %v9927_v6  ;;  %v10305_v40 = vld [vmem:[%s9101_s17 + $0x20] ss:$40 sps:$4 sm:$0xff]   ;;  %v10308_v6 = vpop.permute.xlu0 %4807 }
 0x1bd   : > { %v1065_v52 = vadd.f32 %v1049_v34, %v914_v37  ;;  %v1051_v17 = vpop.f32.mrb[26].mxu1  ;;  %3098 = vmatprep.mubr.bf16.mxu0 %v11404_v0  ;;  %v3382_v34 = vsel %vm11392_vm15, %v9922_v28, %v9911_v23 }
 0x1be   : > { %v1052_v61 = vpop.f32.mrb[27].mxu1  ;;  %v10316_v17 = vpop.permute.xlu1 %4958 }
 0x1bf   : > { %v996_v16 = vpop.f32.mrb[24].mxu0  ;;  %6899 = vrot.lane.b32.xlu0 %v9652_v8, %s9059_s6  ;;  %v3230_v8 = vsel %vm11390_vm14, %v9895_v15, %v9869_v49  ;;  %11413 = vst [vmem:[#allocation4_spill] sm:$0xff] %v10316_v17  ;;  %v8960_v49 = vld [vmem:[%s11375_s1 + $0xec] ss:$0 sps:$4 sm:$0xff]   ;;  %v10330_v15 = vld [vmem:[%s9101_s17 + $0x14] ss:$40 sps:$4 sm:$0xff]  }
 0x1c0   : > { %v1062_v37 = vadd.f32 %v996_v16, %v911_v30  ;;  %v998_v2 = vpop.f32.mrb[25].mxu0  ;;  %8145 = vmatmul.mubr.msk.bf16.vlgmr.msra.gmra.mrb[0].mxu1 %vm233_vm1, %v8959_v38  ;;  %7071 = vrot.lane.b32.xlu1 %v10288_v57, %s9060_s14  ;;  %v10333_v61 = vpop.permute.xlu0 %4960  ;;  %vm11393_vm14 = vcmask 965632  }
 0x1c1   : > { %v1063_v50 = vadd.f32 %v998_v2, %v912_v60  ;;  %v1000_v3 = vpop.f32.mrb[26].mxu0  ;;  %3296 = vmatpush1.bf16.msra.mxu1 %v3232_v39  ;;  %3159 = vmatprep.mubr.bf16.mxu1 %v11404_v0  ;;  %v10321_v60 = vld [vmem:[%s9101_s17 + $0x1c] ss:$40 sps:$4 sm:$0xff]   ;;  %v8961_v2 = vld [vmem:[%s11375_s1 + $0xf0] sm:$0xff]  }
 0x1c2   : > { %v1001_v30 = vpop.f32.mrb[27].mxu0  ;;  %3446 = vmatprep.subr.bf16.mxu1 %v3384_v63 }
 0x1c3   : > { %6893 = vrot.lane.b32.xlu0 %v9665_v4, %s9059_s6  ;;  %v10338_v4 = vld [vmem:[%s9101_s17 + $0x24] ss:$40 sps:$4 sm:$0xff]  }
 0x1c4   : > { %8143 = vmatmul.mubr.msk.bf16.vlgmr.msra.gmra.mrb[0].mxu0 %vm233_vm1, %v8959_v38  ;;  %7075 = vrot.lane.b32.xlu1 %v10305_v40, %s9060_s14  ;;  %v10344_v38 = vpop.permute.xlu1 %4962  ;;  %v10355_v30 = vpop.permute.xlu0 %4964 }
 0x1c5   : > { %3245 = vmatpush1.bf16.msra.mxu0 %v3230_v8  ;;  %3108 = vmatprep.mubr.bf16.mxu0 %v11404_v0 }
 0x1c6   : > { %3395 = vmatprep.subr.bf16.mxu0 %v3382_v34 }
 0x1c7   : > { %7073 = vrot.lane.b32.xlu0 %v10321_v60, %s9060_s14 }
 0x1c8   : > { %8146 = vmatmul.mubr.msk.bf16.gmra.mrb[80].mxu1 %vm233_vm1, %v8960_v49  ;;  %7069 = vrot.lane.b32.xlu1 %v10330_v15, %s9060_s14  ;;  %v10363_v17 = vpop.permute.xlu1 %4956 }
 0x1c9   : > { %3327 = vmatprep.mubr.bf16.mxu1 %v11404_v0 }
 0x1cb   : > { %v1198_v39 = vpop.f32.mrb[28].mxu1  ;;  %7077 = vrot.lane.b32.xlu0 %v10338_v4, %s9060_s14 }
 0x1cc   : > { %v1215_v16 = vadd.f32 %v1198_v39, %v1064_v47  ;;  %8144 = vmatmul.mubr.msk.bf16.gmra.mrb[80].mxu0 %vm233_vm1, %v8960_v49  ;;  %v1200_v63 = vpop.f32.mrb[29].mxu1  ;;  %7222 = vrot.lane.b32.xlu1 %v10321_v60, %s11414_s20  ;;  %v3383_v47 = vsel %vm11392_vm15, %v9911_v23, %v9941_v56  ;;  %v3535_v39 = vsel %vm11393_vm14, %v9953_v35, %v9980_v53 }
 0x1cd   : > { %v1216_v3 = vadd.f32 %v1200_v63, %v1065_v52  ;;  %v1202_v8 = vpop.f32.mrb[30].mxu1  ;;  %3276 = vmatprep.mubr.bf16.mxu0 %v11404_v0  ;;  %v3381_v56 = vsel %vm11392_vm15, %v9951_v31, %v9922_v28  ;;  %v10388_v28 = vpop.permute.xlu1 %5109  ;;  %vm3682_vm15 = vcmask 957440  }
 0x1ce   : > { %v1203_v34 = vpop.f32.mrb[31].mxu1 }
 0x1cf   : > { %v1147_v49 = vpop.f32.mrb[28].mxu0  ;;  %7220 = vrot.lane.b32.xlu0 %v10288_v57, %s11414_s20  ;;  %v10377_v34 = vpop.permute.xlu0 %5107 }
 0x1d0   : > { %v1213_v52 = vadd.f32 %v1147_v49, %v1062_v37  ;;  %v1149_v63 = vpop.f32.mrb[29].mxu0  ;;  %8159 = vmatmul.mubr.msk.bf16.vlgmr.msra.gmra.mrb[0].mxu1 %vm233_vm1, %v8961_v2  ;;  %7226 = vrot.lane.b32.xlu1 %v10338_v4, %s11414_s20  ;;  %v3533_v37 = vsel %vm11393_vm14, %v9943_v9, %v9964_v41 }
 0x1d1   : > { %v1214_v8 = vadd.f32 %v1149_v63, %v1063_v50  ;;  %v1151_v23 = vpop.f32.mrb[30].mxu0  ;;  %3447 = vmatpush1.bf16.msra.mxu1 %v3383_v47  ;;  %3337 = vmatprep.mubr.bf16.mxu1 %v11404_v0  ;;  %v8962_v50 = vld [vmem:[%s11375_s1 + $0xf8] ss:$0 sps:$4 sm:$0xff]   ;;  %v10398_v47 = vpop.permute.xlu1 %5113  ;;  %v8963_v63 = vld [vmem:[%s11375_s1 + $0xfc] sm:$0xff]  }
 0x1d2   : > { %v1152_v53 = vpop.f32.mrb[31].mxu0  ;;  %3597 = vmatprep.subr.bf16.mxu1 %v3535_v39 }
 0x1d3   : > { %7224 = vrot.lane.b32.xlu0 %v10305_v40, %s11414_s20  ;;  %v10396_v31 = vpop.permute.xlu0 %5111 }
 0x1d4   : > { %8157 = vmatmul.mubr.msk.bf16.vlgmr.msra.gmra.mrb[0].mxu0 %vm233_vm1, %v8961_v2  ;;  %7369 = vrot.lane.b32.xlu1 %v10288_v57, %s11415_s7 }
 0x1d5   : > { %3396 = vmatpush1.bf16.msra.mxu0 %v3381_v56  ;;  %3286 = vmatprep.mubr.bf16.mxu0 %v11404_v0 }
 0x1d6   : > { %3546 = vmatprep.subr.bf16.mxu0 %v3533_v37  ;;  %v3534_v37 = vsel %vm11393_vm14, %v9964_v41, %v9953_v35  ;;  %v10423_v41 = vpop.permute.xlu1 %5256 }
 0x1d7   : > { %7218 = vrot.lane.b32.xlu0 %v10330_v15, %s11414_s20 }
 0x1d8   : > { %8160 = vmatmul.mubr.msk.bf16.gmra.mrb[84].mxu1 %vm233_vm1, %v8962_v50  ;;  %7373 = vrot.lane.b32.xlu1 %v10305_v40, %s11415_s7 }
 0x1d9   : > { %3478 = vmatprep.mubr.bf16.mxu1 %v11404_v0 }
 0x1db   : > { %v1349_v2 = vpop.f32.mrb[32].mxu1  ;;  %7371 = vrot.lane.b32.xlu0 %v10321_v60, %s11415_s7 }
 0x1dc   : > { %v1366_v49 = vadd.f32 %v1349_v2, %v1215_v16  ;;  %8158 = vmatmul.mubr.msk.bf16.gmra.mrb[84].mxu0 %vm233_vm1, %v8962_v50  ;;  %v1351_v39 = vpop.f32.mrb[33].mxu1  ;;  %7367 = vrot.lane.b32.xlu1 %v10330_v15, %s11415_s7  ;;  %v3686_v50 = vsel %vm3682_vm15, %v10009_v62, %v10001_v13  ;;  %v10415_v2 = vpop.permute.xlu0 %5105  ;;  %v3532_v13 = vsel %vm11393_vm14, %v9969_v45, %v9943_v9  ;;  %vm3833_vm14 = vcmask 949248  }
 0x1dd   : > { %v1367_v23 = vadd.f32 %v1351_v39, %v1216_v3  ;;  %v1353_v56 = vpop.f32.mrb[34].mxu1  ;;  %3427 = vmatprep.mubr.bf16.mxu0 %v11404_v0  ;;  %v10442_v45 = vpop.permute.xlu1 %5260 }
 0x1de   : > { %v1354_v53 = vpop.f32.mrb[35].mxu1 }
 0x1df   : > { %v1298_v16 = vpop.f32.mrb[32].mxu0  ;;  %7375 = vrot.lane.b32.xlu0 %v10338_v4, %s11415_s7 }
 0x1e0   : > { %v1364_v3 = vadd.f32 %v1298_v16, %v1213_v52  ;;  %v1300_v39 = vpop.f32.mrb[33].mxu0  ;;  %8168 = vmatmul.mubr.msk.bf16.vlgmr.msra.gmra.mrb[0].mxu1 %vm233_vm1, %v8963_v63  ;;  %7520 = vrot.lane.b32.xlu1 %v10321_v60, %s9063_s4  ;;  %v3684_v52 = vsel %vm3682_vm15, %v9999_v7, %v9985_v12  ;;  %v10440_v9 = vpop.permute.xlu0 %5258 }
 0x1e1   : > { %v1365_v56 = vadd.f32 %v1300_v39, %v1214_v8  ;;  %v1302_v35 = vpop.f32.mrb[34].mxu0  ;;  %3598 = vmatpush1.bf16.msra.mxu1 %v3534_v37  ;;  %3488 = vmatprep.mubr.bf16.mxu1 %v11404_v0  ;;  %v8964_v8 = vld [vmem:[%s11375_s1 + $0x104] ss:$0 sps:$4 sm:$0xff]   ;;  %v8965_v39 = vld [vmem:[%s11375_s1 + $0x108] sm:$0xff]  }
 0x1e2   : > { %v1303_v53 = vpop.f32.mrb[35].mxu0  ;;  %3748 = vmatprep.subr.bf16.mxu1 %v3686_v50 }
 0x1e3   : > { %7518 = vrot.lane.b32.xlu0 %v10288_v57, %s9063_s4 }
 0x1e4   : > { %8166 = vmatmul.mubr.msk.bf16.vlgmr.msra.gmra.mrb[0].mxu0 %vm233_vm1, %v8963_v63  ;;  %7524 = vrot.lane.b32.xlu1 %v10338_v4, %s9063_s4  ;;  %v10450_v37 = vpop.permute.xlu0 %5262 }
 0x1e5   : > { %3547 = vmatpush1.bf16.msra.mxu0 %v3532_v13  ;;  %3437 = vmatprep.mubr.bf16.mxu0 %v11404_v0  ;;  %v10461_v13 = vpop.permute.xlu1 %5254 }
 0x1e6   : > { %3697 = vmatprep.subr.bf16.mxu0 %v3684_v52 }
 0x1e7   : > { %7522 = vrot.lane.b32.xlu0 %v10305_v40, %s9063_s4 }
 0x1e8   : > { %8169 = vmatmul.mubr.msk.bf16.gmra.mrb[88].mxu1 %vm233_vm1, %v8964_v8  ;;  %7667 = vrot.lane.b32.xlu1 %v10288_v57, %s9064_s30 }
 0x1e9   : > { %3629 = vmatprep.mubr.bf16.mxu1 %v11404_v0 }
 0x1eb   : > { %v1500_v63 = vpop.f32.mrb[36].mxu1  ;;  %7516 = vrot.lane.b32.xlu0 %v10330_v15, %s9063_s4 }
 0x1ec   : > { %v1517_v16 = vadd.f32 %v1500_v63, %v1366_v49  ;;  %8167 = vmatmul.mubr.msk.bf16.gmra.mrb[88].mxu0 %vm233_vm1, %v8964_v8  ;;  %v1502_v50 = vpop.f32.mrb[37].mxu1  ;;  %7671 = vrot.lane.b32.xlu1 %v10305_v40, %s9064_s30  ;;  %v3685_v49 = vsel %vm3682_vm15, %v9985_v12, %v10009_v62  ;;  %v3837_v8 = vsel %vm3833_vm14, %v10032_v36, %v10055_v18  ;;  %v10475_v12 = vpop.permute.xlu0 %5405  ;;  %v3963_v62 = vld [vmem:[%s11376_s2 + $0x8] sm:$0xff] }
 0x1ed   : > { %v1518_v57 = vadd.f32 %v1502_v50, %v1367_v23  ;;  %v1504_v35 = vpop.f32.mrb[38].mxu1  ;;  %3578 = vmatprep.mubr.bf16.mxu0 %v11404_v0  ;;  %v3683_v18 = vsel %vm3682_vm15, %v10022_v25, %v9999_v7  ;;  %v3962_v7 = vld [vmem:[%s11376_s2] sm:$0xff]  ;;  %v3964_v25 = vld [vmem:[%s11376_s2 + $0x10] sm:$0xff] }
 0x1ee   : > { %v1505_v53 = vpop.f32.mrb[39].mxu1 }
 0x1ef   : > { %v1449_v52 = vpop.f32.mrb[36].mxu0  ;;  %7669 = vrot.lane.b32.xlu0 %v10321_v60, %s9064_s30 }
 0x1f0   : > { %v1515_v40 = vadd.f32 %v1449_v52, %v1364_v3  ;;  %v1451_v23 = vpop.f32.mrb[37].mxu0  ;;  %8177 = vmatmul.mubr.msk.bf16.vlgmr.msra.gmra.mrb[0].mxu1 %vm233_vm1, %v8965_v39  ;;  %7665 = vrot.lane.b32.xlu1 %v10330_v15, %s9064_s30  ;;  %v3835_v15 = vsel %vm3833_vm14, %v10011_v48, %v10038_v1  ;;  %v10486_v3 = vpop.permute.xlu1 %5407  ;;  %v8967_v52 = vld [vmem:[%s11375_s1 + $0x114] sm:$0xff]  }
 0x1f1   : > { %v1516_v63 = vadd.f32 %v1451_v23, %v1365_v56  ;;  %v1453_v50 = vpop.f32.mrb[38].mxu0  ;;  %3749 = vmatpush1.bf16.msra.mxu1 %v3685_v49  ;;  %3639 = vmatprep.mubr.bf16.mxu1 %v11404_v0  ;;  %v8966_v56 = vld [vmem:[%s11375_s1 + $0x110] ss:$0 sps:$4 sm:$0xff]  }
 0x1f2   : > { %v1454_v60 = vpop.f32.mrb[39].mxu0  ;;  %3899 = vmatprep.subr.bf16.mxu1 %v3837_v8 }
 0x1f3   : > { %7673 = vrot.lane.b32.xlu0 %v10338_v4, %s9064_s30  ;;  %v10501_v4 = vpop.permute.xlu0 %5409 }
 0x1f4   : > { %8175 = vmatmul.mubr.msk.bf16.vlgmr.msra.gmra.mrb[0].mxu0 %vm233_vm1, %v8965_v39  ;;  %3972 = vperm.xlu1 %8899, %v3963_v62   ;;  %v10505_v39 = vpop.permute.xlu1 %5411 }
 0x1f5   : > { %3698 = vmatpush1.bf16.msra.mxu0 %v3683_v18  ;;  %3588 = vmatprep.mubr.bf16.mxu0 %v11404_v0  ;;  %v3836_v18 = vsel %vm3833_vm14, %v10038_v1, %v10032_v36  ;;  %v3834_v36 = vsel %vm3833_vm14, %v10057_v22, %v10011_v48 }
 0x1f6   : > { %3848 = vmatprep.subr.bf16.mxu0 %v3835_v15 }
 0x1f7   : > { %3967 = vperm.xlu0 %8898, %v3962_v7   ;;  %v10512_v50 = vpop.permute.xlu0 %5403 }
 0x1f8   : > { %8178 = vmatmul.mubr.msk.bf16.gmra.mrb[92].mxu1 %vm233_vm1, %v8966_v56  ;;  %3977 = vperm.xlu1 %8899, %v3964_v25   ;;  %v10520_v15 = vpop.permute.xlu1 %5554 }
 0x1f9   : > { %3780 = vmatprep.mubr.bf16.mxu1 %v11404_v0 }
 0x1fb   : > { %v1651_v35 = vpop.f32.mrb[40].mxu1 }
 0x1fc   : > { %v1668_v53 = vadd.f32 %v1651_v35, %v1517_v16  ;;  %8176 = vmatmul.mubr.msk.bf16.gmra.mrb[92].mxu0 %vm233_vm1, %v8966_v56  ;;  %v1653_v49 = vpop.f32.mrb[41].mxu1  ;;  %v4116_v16 = vsel %vm224_vm0, %v10086_v21, %v10092_v27  ;;  %v11416_v35 = vld [vmem:[#allocation2_spill] sm:$0xff] }
 0x1fd   : > { %v1669_v8 = vadd.f32 %v1653_v49, %v1518_v57  ;;  %v1655_v23 = vpop.f32.mrb[42].mxu1  ;;  %3729 = vmatprep.mubr.bf16.mxu0 %v11404_v0  ;;  %v4114_v27 = vsel %vm224_vm0, %v11416_v35, %v10069_v54  ;;  %v10530_v49 = vpop.permute.xlu0 %5556 }
 0x1fe   : > { %v1656_v62 = vpop.f32.mrb[43].mxu1 }
 0x1ff   : > { %v1600_v60 = vpop.f32.mrb[40].mxu0 }
 0x200   : > { %v1666_v56 = vadd.f32 %v1600_v60, %v1515_v40  ;;  %v1602_v7 = vpop.f32.mrb[41].mxu0  ;;  %8186 = vmatmul.mubr.msk.bf16.vlgmr.msra.gmra.mrb[0].mxu1 %vm233_vm1, %v8967_v52  ;;  %v8968_v40 = vld [vmem:[%s11375_s1 + $0x11c] ss:$0 sps:$4 sm:$0xff]  }
 0x201   : > { %v1667_v57 = vadd.f32 %v1602_v7, %v1516_v63  ;;  %v1604_v25 = vpop.f32.mrb[42].mxu0  ;;  %3900 = vmatpush1.bf16.msra.mxu1 %v3836_v18  ;;  %3790 = vmatprep.mubr.bf16.mxu1 %v11404_v0  ;;  %v10537_v63 = vpop.permute.xlu1 %5558  ;;  %v8969_v18 = vld [vmem:[%s11375_s1 + $0x120] sm:$0xff]  }
 0x202   : > { %v1605_v1 = vpop.f32.mrb[43].mxu0  ;;  %4178 = vmatprep.subr.bf16.mxu1 %v4116_v16  ;;  %v10541_v48 = vpop.permute.xlu0 %5560  ;;  %v4115_v25 = vsel %vm224_vm0, %v10069_v54, %v10086_v21  ;;  %v9028_v21 = vld [vmem:[%s9101_s17 + $0x1c] ss:$40 sps:$4 sm:$0xff]  }
 0x204   : > { %8184 = vmatmul.mubr.msk.bf16.vlgmr.msra.gmra.mrb[0].mxu0 %vm233_vm1, %v8967_v52 }
 0x205   : > { %3849 = vmatpush1.bf16.msra.mxu0 %v3834_v36  ;;  %3739 = vmatprep.mubr.bf16.mxu0 %v11404_v0  ;;  %v10543_v23 = vpop.permute.xlu1 %5552 }
 0x206   : > { %4127 = vmatprep.subr.bf16.mxu0 %v4114_v27  ;;  %v10553_v1 = vpop.permute.xlu0 %5703 }
 0x207   : > { %11417 = vst [vmem:[#allocation2_spill] sm:$0xff] %v10553_v1  ;;  %v9030_v1 = vld [vmem:[%s9101_s17 + $0x18] ss:$40 sps:$4 sm:$0xff]  }
 0x208   : > { %8187 = vmatmul.mubr.msk.bf16.gmra.mrb[96].mxu1 %vm233_vm1, %v8968_v40 }
 0x209   : > { %3931 = vmatprep.mubr.bf16.mxu1 %v11404_v0 }
 0x20b   : > { %v1802_v22 = vpop.f32.mrb[44].mxu1 }
 0x20c   : > { %v1819_v52 = vadd.f32 %v1802_v22, %v1668_v53  ;;  %8185 = vmatmul.mubr.msk.bf16.gmra.mrb[96].mxu0 %vm233_vm1, %v8968_v40  ;;  %v1804_v62 = vpop.f32.mrb[45].mxu1 }
 0x20d   : > { %v1820_v60 = vadd.f32 %v1804_v62, %v1669_v8  ;;  %v1806_v16 = vpop.f32.mrb[46].mxu1  ;;  %3880 = vmatprep.mubr.bf16.mxu0 %v11404_v0  ;;  %v10557_v8 = vpop.permute.xlu1 %5705  ;;  %v4113_v62 = vsel %vm224_vm0, %v10109_v5, %v11416_v35  ;;  %vm11447_vm0 = vcmask 457728  }
 0x20e   : > { %v1807_v7 = vpop.f32.mrb[47].mxu1  ;;  %v9029_v16 = vld [vmem:[%s9101_s17 + $0x14] ss:$40 sps:$4 sm:$0xff]  }
 0x20f   : > { %v1751_v36 = vpop.f32.mrb[44].mxu0 }
 0x210   : > { %v1817_v53 = vadd.f32 %v1751_v36, %v1666_v56  ;;  %v1753_v27 = vpop.f32.mrb[45].mxu0  ;;  %8195 = vmatmul.mubr.msk.bf16.vlgmr.msra.gmra.mrb[0].mxu1 %vm233_vm1, %v8969_v18  ;;  %v8970_v56 = vld [vmem:[%s11375_s1 + $0x128] ss:$0 sps:$4 sm:$0xff]   ;;  %v8971_v36 = vld [vmem:[%s11375_s1 + $0xc] sm:$0xff]  }
 0x211   : > { %v1818_v40 = vadd.f32 %v1753_v27, %v1667_v57  ;;  %v1755_v22 = vpop.f32.mrb[46].mxu0  ;;  %4179 = vmatpush1.bf16.msra.mxu1 %v4115_v25  ;;  %3941 = vmatprep.mubr.bf16.mxu1 %v11404_v0  ;;  %v10568_v57 = vpop.permute.xlu0 %5707 }
 0x212   : > { %v1756_v54 = vpop.f32.mrb[47].mxu0  ;;  %4298 = vmatprep.subr.bf16.mxu1 %v9028_v21  ;;  %v10571_v7 = vpop.permute.xlu1 %5709 }
 0x214   : > { %8193 = vmatmul.mubr.msk.bf16.vlgmr.msra.gmra.mrb[0].mxu0 %vm233_vm1, %v8969_v18 }
 0x215   : > { %4128 = vmatpush1.bf16.msra.mxu0 %v4113_v62  ;;  %3890 = vmatprep.mubr.bf16.mxu0 %v11404_v0  ;;  %v10575_v35 = vpop.permute.xlu0 %5701 }
 0x216   : > { %4247 = vmatprep.subr.bf16.mxu0 %v9029_v16  ;;  %11418 = vst [vmem:[#allocation5_spill] sm:$0xff] %v10575_v35  ;;  %v10582_v62 = vpop.permute.xlu1 %5852 }
 0x217   : > { %11419 = vst [vmem:[#allocation6_spill] sm:$0xff] %v10582_v62 }
 0x218   : > { %8196 = vmatmul.mubr.msk.bf16.gmra.mrb[100].mxu1 %vm233_vm1, %v8970_v56 }
 0x219   : > { %4210 = vmatprep.mubr.bf16.mxu1 %v11404_v0 }
 0x21b   : > { %v1953_v5 = vpop.f32.mrb[48].mxu1 }
 0x21c   : > { %v1970_v18 = vadd.f32 %v1953_v5, %v1819_v52  ;;  %8194 = vmatmul.mubr.msk.bf16.gmra.mrb[100].mxu0 %vm233_vm1, %v8970_v56  ;;  %v1955_v25 = vpop.f32.mrb[49].mxu1  ;;  %v4373_v52 = vsel %vm484_vm2, %v10130_v19, %v10144_v32  ;;  %v10595_v32 = vpop.permute.xlu1 %5856 }
 0x21d   : > { %v1971_v27 = vadd.f32 %v1955_v25, %v1820_v60  ;;  %v1957_v22 = vpop.f32.mrb[50].mxu1  ;;  %4159 = vmatprep.mubr.bf16.mxu0 %v11404_v0  ;;  %v10590_v60 = vpop.permute.xlu0 %5854 }
 0x21e   : > { %v1958_v54 = vpop.f32.mrb[51].mxu1  ;;  %11420 = vst [vmem:[#allocation7_spill] sm:$0xff] %v10590_v60  ;;  %v4371_v22 = vsel %vm484_vm2, %v10113_v29, %v10121_v10 }
 0x21f   : > { %v1902_v21 = vpop.f32.mrb[48].mxu0 }
 0x220   : > { %v1968_v16 = vadd.f32 %v1902_v21, %v1817_v53  ;;  %v1904_v56 = vpop.f32.mrb[49].mxu0  ;;  %8227 = vmatmul.mubr.msk.bf16.vlgmr.msra.gmra.mrb[104].mxu1 %vm233_vm1, %v8971_v36  ;;  %v8972_v53 = vld [vmem:[%s11375_s1 + $0x14] ss:$0 sps:$4 sm:$0xff]  }
 0x221   : > { %v1969_v5 = vadd.f32 %v1904_v56, %v1818_v40  ;;  %v1906_v35 = vpop.f32.mrb[50].mxu0  ;;  %4299 = vmatpush1.bf16.msra.mxu1 %v9030_v1  ;;  %4220 = vmatprep.mubr.bf16.mxu1 %v11404_v0  ;;  %v9031_v40 = vld [vmem:[%s9101_s17 + $0x10] ss:$40 sps:$4 sm:$0xff]   ;;  %v10603_v1 = vpop.permute.xlu0 %5858 }
 0x222   : > { %v1907_v25 = vpop.f32.mrb[51].mxu0  ;;  %4435 = vmatprep.subr.bf16.mxu1 %v4373_v52  ;;  %v10607_v35 = vpop.permute.xlu1 %5850  ;;  %v8973_v52 = vld [vmem:[%s11375_s1] sm:$0xff]  }
 0x223   : > { %11421 = vst [vmem:[#allocation8_spill] sm:$0xff] %v10607_v35  ;;  %v4372_v35 = vsel %vm484_vm2, %v10121_v10, %v10130_v19  ;;  %v4370_v10 = vsel %vm484_vm2, %v10154_v26, %v10113_v29  ;;  %vm11449_vm2 = vmmov %vm11447_vm0 }
 0x224   : > { %8225 = vmatmul.mubr.msk.bf16.vlgmr.msra.gmra.mrb[104].mxu0 %vm233_vm1, %v8971_v36 }
 0x225   : > { %4248 = vmatpush1.bf16.msra.mxu0 %v9031_v40  ;;  %4169 = vmatprep.mubr.bf16.mxu0 %v11404_v0 }
 0x226   : > { %4384 = vmatprep.subr.bf16.mxu0 %v4371_v22  ;;  %v10614_v22 = vpop.permute.xlu0 %6001 }
 0x228   : > { %8228 = vmatmul.mubr.msk.bf16.gmra.mrb[108].mxu1 %vm233_vm1, %v8972_v53 }
 0x229   : > { %4330 = vmatprep.mubr.bf16.mxu1 %v11404_v0 }
 0x22b   : > { %v2104_v54 = vpop.f32.mrb[52].mxu1 }
 0x22c   : > { %v2121_v21 = vadd.f32 %v2104_v54, %v1970_v18  ;;  %8226 = vmatmul.mubr.msk.bf16.gmra.mrb[108].mxu0 %vm233_vm1, %v8972_v53  ;;  %v2106_v36 = vpop.f32.mrb[53].mxu1  ;;  %v4522_v18 = vsel %vm635_vm3, %v10182_v51, %v10192_v24  ;;  %v10622_v53 = vpop.permute.xlu1 %6003  ;;  %v4520_v24 = vsel %vm635_vm3, %v10165_v33, %v10171_v43 }
 0x22d   : > { %v2122_v56 = vadd.f32 %v2106_v36, %v1971_v27  ;;  %v2108_v25 = vpop.f32.mrb[54].mxu1  ;;  %4279 = vmatprep.mubr.bf16.mxu0 %v11404_v0 }
 0x22e   : > { %v2109_v40 = vpop.f32.mrb[55].mxu1  ;;  %v10632_v25 = vpop.permute.xlu0 %6005 }
 0x22f   : > { %v2053_v62 = vpop.f32.mrb[52].mxu0 }
 0x230   : > { %v2119_v54 = vadd.f32 %v2053_v62, %v1968_v16  ;;  %v2055_v60 = vpop.f32.mrb[53].mxu0  ;;  %8233 = vmatmul.mubr.msk.bf16.vlgmr.msra.gmra.mrb[104].mxu1 %vm233_vm1, %v8973_v52  ;;  %v8980_v62 = vld [vmem:[%s11375_s1 + $0x8] ss:$0 sps:$4 sm:$0xff]   ;;  %v10639_v16 = vpop.permute.xlu1 %6007 }
 0x231   : > { %v2120_v27 = vadd.f32 %v2055_v60, %v1969_v5  ;;  %v2057_v36 = vpop.f32.mrb[54].mxu0  ;;  %4436 = vmatpush1.bf16.msra.mxu1 %v4372_v35  ;;  %4340 = vmatprep.mubr.bf16.mxu1 %v11404_v0 }
 0x232   : > { %v2058_v19 = vpop.f32.mrb[55].mxu0  ;;  %4584 = vmatprep.subr.bf16.mxu1 %v4522_v18  ;;  %v10643_v29 = vpop.permute.xlu0 %5999 }
 0x234   : > { %8231 = vmatmul.mubr.msk.bf16.vlgmr.msra.gmra.mrb[104].mxu0 %vm233_vm1, %v8973_v52  ;;  %v10645_v5 = vpop.permute.xlu1 %6150  ;;  %v8982_v52 = vld [vmem:[%s11375_s1 + $0x18] sm:$0xff]  }
 0x235   : > { %4385 = vmatpush1.bf16.msra.mxu0 %v4370_v10  ;;  %4289 = vmatprep.mubr.bf16.mxu0 %v11404_v0  ;;  %v4521_v10 = vsel %vm635_vm3, %v10171_v43, %v10182_v51  ;;  %v4519_v43 = vsel %vm635_vm3, %v10204_v14, %v10165_v33  ;;  %vm11450_vm3 = vmmov %vm11447_vm0 }
 0x236   : > { %4533 = vmatprep.subr.bf16.mxu0 %v4520_v24  ;;  %v10658_v24 = vpop.permute.xlu0 %6152 }
 0x238   : > { %8234 = vmatmul.mubr.msk.bf16.gmra.mrb[112].mxu1 %vm233_vm1, %v8980_v62 }
 0x239   : > { %4467 = vmatprep.mubr.bf16.mxu1 %v11404_v0 }
 0x23b   : > { %v2255_v26 = vpop.f32.mrb[56].mxu1 }
 0x23c   : > { %v2272_v60 = vadd.f32 %v2255_v26, %v2121_v21  ;;  %8232 = vmatmul.mubr.msk.bf16.gmra.mrb[112].mxu0 %vm233_vm1, %v8980_v62  ;;  %v2257_v35 = vpop.f32.mrb[57].mxu1  ;;  %v4671_v21 = vsel %vm786_vm4, %v10225_v59, %v10242_v58  ;;  %v11422_v58 = vld [vmem:[#allocation3_spill] sm:$0xff] }
 0x23d   : > { %v2273_v40 = vadd.f32 %v2257_v35, %v2122_v56  ;;  %v2259_v18 = vpop.f32.mrb[58].mxu1  ;;  %4416 = vmatprep.mubr.bf16.mxu0 %v11404_v0 }
 0x23e   : > { %v2260_v36 = vpop.f32.mrb[59].mxu1  ;;  %v10662_v18 = vpop.permute.xlu1 %6154 }
 0x23f   : > { %v2204_v19 = vpop.f32.mrb[56].mxu0  ;;  %v10675_v36 = vpop.permute.xlu0 %6156 }
 0x240   : > { %v2270_v62 = vadd.f32 %v2204_v19, %v2119_v54  ;;  %v2206_v26 = vpop.f32.mrb[57].mxu0  ;;  %8242 = vmatmul.mubr.msk.bf16.vlgmr.msra.gmra.mrb[104].mxu1 %vm233_vm1, %v8982_v52  ;;  %v4669_v54 = vsel %vm786_vm4, %v11422_v58, %v10223_v46 }
 0x241   : > { %v2271_v56 = vadd.f32 %v2206_v26, %v2120_v27  ;;  %v2208_v35 = vpop.f32.mrb[58].mxu0  ;;  %4585 = vmatpush1.bf16.msra.mxu1 %v4521_v10  ;;  %4477 = vmatprep.mubr.bf16.mxu1 %v11404_v0  ;;  %v8983_v27 = vld [vmem:[%s11375_s1 + $0x20] ss:$0 sps:$4 sm:$0xff]  }
 0x242   : > { %v2209_v51 = vpop.f32.mrb[59].mxu0  ;;  %4733 = vmatprep.subr.bf16.mxu1 %v4671_v21  ;;  %v10677_v10 = vpop.permute.xlu1 %6148  ;;  %v8984_v21 = vld [vmem:[%s11375_s1 + $0x24] sm:$0xff]  }
 0x243   : > { %v10681_v14 = vpop.permute.xlu0 %6299 }
 0x244   : > { %8240 = vmatmul.mubr.msk.bf16.vlgmr.msra.gmra.mrb[104].mxu0 %vm233_vm1, %v8982_v52  ;;  %11423 = vst [vmem:[#allocation3_spill] sm:$0xff] %v10681_v14 }
 0x245   : > { %4534 = vmatpush1.bf16.msra.mxu0 %v4519_v43  ;;  %4426 = vmatprep.mubr.bf16.mxu0 %v11404_v0 }
 0x246   : > { %4682 = vmatprep.subr.bf16.mxu0 %v4669_v54  ;;  %v10688_v43 = vpop.permute.xlu1 %6301  ;;  %v4670_v54 = vsel %vm786_vm4, %v10223_v46, %v10225_v59  ;;  %v4668_v46 = vsel %vm786_vm4, %v10250_v11, %v11422_v58  ;;  %vm11451_vm4 = vcmask 211968  }
 0x248   : > { %8243 = vmatmul.mubr.msk.bf16.gmra.mrb[116].mxu1 %vm233_vm1, %v8983_v27 }
 0x249   : > { %4616 = vmatprep.mubr.bf16.mxu1 %v11404_v0 }
 0x24b   : > { %v2406_v33 = vpop.f32.mrb[60].mxu1 }
 0x24c   : > { %v2423_v52 = vadd.f32 %v2406_v33, %v2272_v60  ;;  %8241 = vmatmul.mubr.msk.bf16.gmra.mrb[116].mxu0 %vm233_vm1, %v8983_v27  ;;  %v2408_v19 = vpop.f32.mrb[61].mxu1  ;;  %v4820_v60 = vsel %vm937_vm5, %v10277_v42, %v10291_v20  ;;  %v4818_v20 = vsel %vm937_vm5, %v10267_v55, %v10269_v44 }
 0x24d   : > { %v2424_v26 = vadd.f32 %v2408_v19, %v2273_v40  ;;  %v2410_v35 = vpop.f32.mrb[62].mxu1  ;;  %4565 = vmatprep.mubr.bf16.mxu0 %v11404_v0 }
 0x24e   : > { %v2411_v51 = vpop.f32.mrb[63].mxu1  ;;  %v10698_v35 = vpop.permute.xlu0 %6303 }
 0x24f   : > { %v2355_v14 = vpop.f32.mrb[60].mxu0 }
 0x250   : > { %v2421_v27 = vadd.f32 %v2355_v14, %v2270_v62  ;;  %v2357_v33 = vpop.f32.mrb[61].mxu0  ;;  %8251 = vmatmul.mubr.msk.bf16.vlgmr.msra.gmra.mrb[104].mxu1 %vm233_vm1, %v8984_v21  ;;  %v10706_v62 = vpop.permute.xlu1 %6305 }
 0x251   : > { %v2422_v40 = vadd.f32 %v2357_v33, %v2271_v56  ;;  %v2359_v19 = vpop.f32.mrb[62].mxu0  ;;  %4734 = vmatpush1.bf16.msra.mxu1 %v4670_v54  ;;  %4626 = vmatprep.mubr.bf16.mxu1 %v11404_v0  ;;  %v8985_v56 = vld [vmem:[%s11375_s1 + $0x2c] ss:$0 sps:$4 sm:$0xff]   ;;  %v8986_v54 = vld [vmem:[%s11375_s1 + $0x30] sm:$0xff]  }
 0x252   : > { %v2360_v59 = vpop.f32.mrb[63].mxu0  ;;  %4882 = vmatprep.subr.bf16.mxu1 %v4820_v60  ;;  %v10713_v14 = vpop.permute.xlu0 %6297 }
 0x253   : > { %v4819_v59 = vsel %vm937_vm5, %v10269_v44, %v10277_v42  ;;  %v4817_v44 = vsel %vm937_vm5, %v10308_v6, %v10267_v55  ;;  %vm11452_vm5 = vmmov %vm11447_vm0 }
 0x254   : > { %8249 = vmatmul.mubr.msk.bf16.vlgmr.msra.gmra.mrb[104].mxu0 %vm233_vm1, %v8984_v21  ;;  %v10717_v11 = vpop.permute.xlu1 %6448 }
 0x255   : > { %4683 = vmatpush1.bf16.msra.mxu0 %v4668_v46  ;;  %4575 = vmatprep.mubr.bf16.mxu0 %v11404_v0  ;;  %11424 = vst [vmem:[#allocation9_spill] sm:$0xff] %v10717_v11 }
 0x256   : > { %4831 = vmatprep.subr.bf16.mxu0 %v4818_v20  ;;  %v10724_v19 = vpop.permute.xlu0 %6450 }
 0x258   : > { %8252 = vmatmul.mubr.msk.bf16.gmra.mrb[120].mxu1 %vm233_vm1, %v8985_v56 }
 0x259   : > { %4765 = vmatprep.mubr.bf16.mxu1 %v11404_v0 }
 0x25b   : > { %v2557_v58 = vpop.f32.mrb[64].mxu1 }
 0x25c   : > { %v2574_v51 = vadd.f32 %v2557_v58, %v2423_v52  ;;  %8250 = vmatmul.mubr.msk.bf16.gmra.mrb[120].mxu0 %vm233_vm1, %v8985_v56  ;;  %v2559_v21 = vpop.f32.mrb[65].mxu1  ;;  %v4969_v52 = vsel %vm1088_vm6, %v10344_v38, %v10355_v30  ;;  %v10732_v56 = vpop.permute.xlu1 %6452 }
 0x25d   : > { %v2575_v60 = vadd.f32 %v2559_v21, %v2424_v26  ;;  %v2561_v33 = vpop.f32.mrb[66].mxu1  ;;  %4714 = vmatprep.mubr.bf16.mxu0 %v11404_v0 }
 0x25e   : > { %v2562_v46 = vpop.f32.mrb[67].mxu1  ;;  %v11425_v33 = vld [vmem:[#allocation4_spill] sm:$0xff] }
 0x25f   : > { %v2506_v20 = vpop.f32.mrb[64].mxu0  ;;  %v4967_v30 = vsel %vm1088_vm6, %v11425_v33, %v10333_v61  ;;  %v10742_v46 = vpop.permute.xlu0 %6454 }
 0x260   : > { %v2572_v58 = vadd.f32 %v2506_v20, %v2421_v27  ;;  %v2508_v11 = vpop.f32.mrb[65].mxu0  ;;  %8260 = vmatmul.mubr.msk.bf16.vlgmr.msra.gmra.mrb[104].mxu1 %vm233_vm1, %v8986_v54  ;;  %v8987_v27 = vld [vmem:[%s11375_s1 + $0x38] ss:$0 sps:$4 sm:$0xff]   ;;  %v8988_v20 = vld [vmem:[%s11375_s1 + $0x3c] sm:$0xff]  }
 0x261   : > { %v2573_v26 = vadd.f32 %v2508_v11, %v2422_v40  ;;  %v2510_v21 = vpop.f32.mrb[66].mxu0  ;;  %4883 = vmatpush1.bf16.msra.mxu1 %v4819_v59  ;;  %4775 = vmatprep.mubr.bf16.mxu1 %v11404_v0  ;;  %v10749_v40 = vpop.permute.xlu1 %6446 }
 0x262   : > { %v2511_v42 = vpop.f32.mrb[67].mxu0  ;;  %5031 = vmatprep.subr.bf16.mxu1 %v4969_v52 }
 0x263   : > { %v10753_v55 = vpop.permute.xlu0 %6597  ;;  %v4968_v42 = vsel %vm1088_vm6, %v10333_v61, %v10344_v38  ;;  %v4966_v61 = vsel %vm1088_vm6, %v10363_v17, %v11425_v33  ;;  %vm11454_vm6 = vmmov %vm11451_vm4 }
 0x264   : > { %8258 = vmatmul.mubr.msk.bf16.vlgmr.msra.gmra.mrb[104].mxu0 %vm233_vm1, %v8986_v54  ;;  %11426 = vst [vmem:[#allocation4_spill] sm:$0xff] %v10753_v55 }
 0x265   : > { %4832 = vmatpush1.bf16.msra.mxu0 %v4817_v44  ;;  %4724 = vmatprep.mubr.bf16.mxu0 %v11404_v0  ;;  %v10755_v11 = vpop.permute.xlu1 %6599 }
 0x266   : > { %4980 = vmatprep.subr.bf16.mxu0 %v4967_v30 }
 0x268   : > { %8261 = vmatmul.mubr.msk.bf16.gmra.mrb[124].mxu1 %vm233_vm1, %v8987_v27 }
 0x269   : > { %4914 = vmatprep.mubr.bf16.mxu1 %v11404_v0 }
 0x26b   : > { %v2708_v6 = vpop.f32.mrb[68].mxu1 }
 0x26c   : > { %v2725_v54 = vadd.f32 %v2708_v6, %v2574_v51  ;;  %8259 = vmatmul.mubr.msk.bf16.gmra.mrb[124].mxu0 %vm233_vm1, %v8987_v27  ;;  %v2710_v59 = vpop.f32.mrb[69].mxu1  ;;  %v5118_v51 = vsel %vm1239_vm7, %v10396_v31, %v10398_v47  ;;  %v10768_v27 = vpop.permute.xlu0 %6601  ;;  %v5116_v47 = vsel %vm1239_vm7, %v10377_v34, %v10388_v28 }
 0x26d   : > { %v2726_v52 = vadd.f32 %v2710_v59, %v2575_v60  ;;  %v2712_v21 = vpop.f32.mrb[70].mxu1  ;;  %4863 = vmatprep.mubr.bf16.mxu0 %v11404_v0 }
 0x26e   : > { %v2713_v44 = vpop.f32.mrb[71].mxu1  ;;  %v10772_v21 = vpop.permute.xlu1 %6603 }
 0x26f   : > { %v2657_v30 = vpop.f32.mrb[68].mxu0 }
 0x270   : > { %v2723_v6 = vadd.f32 %v2657_v30, %v2572_v58  ;;  %v2659_v55 = vpop.f32.mrb[69].mxu0  ;;  %8269 = vmatmul.mubr.msk.bf16.vlgmr.msra.gmra.mrb[104].mxu1 %vm233_vm1, %v8988_v20  ;;  %v8989_v58 = vld [vmem:[%s11375_s1 + $0x44] ss:$0 sps:$4 sm:$0xff]  }
 0x271   : > { %v2724_v60 = vadd.f32 %v2659_v55, %v2573_v26  ;;  %v2661_v59 = vpop.f32.mrb[70].mxu0  ;;  %5032 = vmatpush1.bf16.msra.mxu1 %v4968_v42  ;;  %4924 = vmatprep.mubr.bf16.mxu1 %v11404_v0  ;;  %v10785_v26 = vpop.permute.xlu0 %6595  ;;  %v8990_v42 = vld [vmem:[%s11375_s1 + $0x48] sm:$0xff]  }
 0x272   : > { %v2662_v38 = vpop.f32.mrb[71].mxu0  ;;  %5180 = vmatprep.subr.bf16.mxu1 %v5118_v51  ;;  %v10787_v55 = vpop.permute.xlu1 %6746 }
 0x274   : > { %8267 = vmatmul.mubr.msk.bf16.vlgmr.msra.gmra.mrb[104].mxu0 %vm233_vm1, %v8988_v20 }
 0x275   : > { %4981 = vmatpush1.bf16.msra.mxu0 %v4966_v61  ;;  %4873 = vmatprep.mubr.bf16.mxu0 %v11404_v0  ;;  %v10791_v33 = vpop.permute.xlu0 %6748  ;;  %v5117_v61 = vsel %vm1239_vm7, %v10388_v28, %v10396_v31  ;;  %v5115_v28 = vsel %vm1239_vm7, %v10415_v2, %v10377_v34  ;;  %vm11455_vm7 = vmmov %vm11451_vm4 }
 0x276   : > { %5129 = vmatprep.subr.bf16.mxu0 %v5116_v47  ;;  %v10798_v59 = vpop.permute.xlu1 %6750 }
 0x278   : > { %8270 = vmatmul.mubr.msk.bf16.gmra.mrb[128].mxu1 %vm233_vm1, %v8989_v58 }
 0x279   : > { %5063 = vmatprep.mubr.bf16.mxu1 %v11404_v0 }
 0x27b   : > { %v2859_v17 = vpop.f32.mrb[72].mxu1 }
 0x27c   : > { %v2876_v20 = vadd.f32 %v2859_v17, %v2725_v54  ;;  %8268 = vmatmul.mubr.msk.bf16.gmra.mrb[128].mxu0 %vm233_vm1, %v8989_v58  ;;  %v2861_v44 = vpop.f32.mrb[73].mxu1  ;;  %v5267_v54 = vsel %vm1390_vm8, %v10442_v45, %v10450_v37  ;;  %v5265_v37 = vsel %vm1390_vm8, %v10423_v41, %v10440_v9 }
 0x27d   : > { %v2877_v30 = vadd.f32 %v2861_v44, %v2726_v52  ;;  %v2863_v51 = vpop.f32.mrb[74].mxu1  ;;  %5012 = vmatprep.mubr.bf16.mxu0 %v11404_v0 }
 0x27e   : > { %v2864_v38 = vpop.f32.mrb[75].mxu1  ;;  %v10808_v51 = vpop.permute.xlu0 %6752 }
 0x27f   : > { %v2808_v47 = vpop.f32.mrb[72].mxu0 }
 0x280   : > { %v2874_v58 = vadd.f32 %v2808_v47, %v2723_v6  ;;  %v2810_v17 = vpop.f32.mrb[73].mxu0  ;;  %8278 = vmatmul.mubr.msk.bf16.vlgmr.msra.gmra.mrb[104].mxu1 %vm233_vm1, %v8990_v42  ;;  %v10816_v6 = vpop.permute.xlu1 %6744  ;;  %v8992_v47 = vld [vmem:[%s11375_s1 + $0x54] sm:$0xff]  }
 0x281   : > { %v2875_v52 = vadd.f32 %v2810_v17, %v2724_v60  ;;  %v2812_v44 = vpop.f32.mrb[74].mxu0  ;;  %5181 = vmatpush1.bf16.msra.mxu1 %v5117_v61  ;;  %5073 = vmatprep.mubr.bf16.mxu1 %v11404_v0  ;;  %v8991_v60 = vld [vmem:[%s11375_s1 + $0x50] ss:$0 sps:$4 sm:$0xff]  }
 0x282   : > { %v2813_v31 = vpop.f32.mrb[75].mxu0  ;;  %5329 = vmatprep.subr.bf16.mxu1 %v5267_v54  ;;  %v10823_v61 = vpop.permute.xlu0 %6895 }
 0x283   : > { %11427 = vst [vmem:[#allocation10_spill] sm:$0xff] %v10823_v61 }
 0x284   : > { %8276 = vmatmul.mubr.msk.bf16.vlgmr.msra.gmra.mrb[104].mxu0 %vm233_vm1, %v8990_v42  ;;  %v10827_v34 = vpop.permute.xlu1 %6897 }
 0x285   : > { %5130 = vmatpush1.bf16.msra.mxu0 %v5115_v28  ;;  %5022 = vmatprep.mubr.bf16.mxu0 %v11404_v0  ;;  %v5266_v28 = vsel %vm1390_vm8, %v10440_v9, %v10442_v45  ;;  %v5264_v9 = vsel %vm1390_vm8, %v10461_v13, %v10423_v41  ;;  %vm11456_vm8 = vcmask 203776  }
 0x286   : > { %5278 = vmatprep.subr.bf16.mxu0 %v5265_v37  ;;  %v10834_v44 = vpop.permute.xlu0 %6899 }
 0x288   : > { %8279 = vmatmul.mubr.msk.bf16.gmra.mrb[132].mxu1 %vm233_vm1, %v8991_v60 }
 0x289   : > { %5212 = vmatprep.mubr.bf16.mxu1 %v11404_v0 }
 0x28b   : > { %v3010_v2 = vpop.f32.mrb[76].mxu1 }
 0x28c   : > { %v3027_v38 = vadd.f32 %v3010_v2, %v2876_v20  ;;  %8277 = vmatmul.mubr.msk.bf16.gmra.mrb[132].mxu0 %vm233_vm1, %v8991_v60  ;;  %v3012_v42 = vpop.f32.mrb[77].mxu1  ;;  %v5416_v20 = vsel %vm1541_vm9, %v10501_v4, %v10505_v39  ;;  %v10842_v60 = vpop.permute.xlu1 %6901  ;;  %v5414_v39 = vsel %vm1541_vm9, %v10475_v12, %v10486_v3 }
 0x28d   : > { %v3028_v54 = vadd.f32 %v3012_v42, %v2877_v30  ;;  %v3014_v17 = vpop.f32.mrb[78].mxu1  ;;  %5161 = vmatprep.mubr.bf16.mxu0 %v11404_v0 }
 0x28e   : > { %v3015_v31 = vpop.f32.mrb[79].mxu1  ;;  %v10852_v17 = vpop.permute.xlu0 %6893 }
 0x28f   : > { %v2959_v37 = vpop.f32.mrb[76].mxu0  ;;  %v8994_v31 = vld [vmem:[%s11375_s1 + $0x60] sm:$0xff]  }
 0x290   : > { %v3025_v2 = vadd.f32 %v2959_v37, %v2874_v58  ;;  %v2961_v61 = vpop.f32.mrb[77].mxu0  ;;  %8287 = vmatmul.mubr.msk.bf16.vlgmr.msra.gmra.mrb[104].mxu1 %vm233_vm1, %v8992_v47  ;;  %v8993_v58 = vld [vmem:[%s11375_s1 + $0x5c] ss:$0 sps:$4 sm:$0xff]  }
 0x291   : > { %v3026_v30 = vadd.f32 %v2961_v61, %v2875_v52  ;;  %v2963_v42 = vpop.f32.mrb[78].mxu0  ;;  %5330 = vmatpush1.bf16.msra.mxu1 %v5266_v28  ;;  %5222 = vmatprep.mubr.bf16.mxu1 %v11404_v0  ;;  %v10859_v52 = vpop.permute.xlu1 %7071 }
 0x292   : > { %v2964_v45 = vpop.f32.mrb[79].mxu0  ;;  %5478 = vmatprep.subr.bf16.mxu1 %v5416_v20  ;;  %v10863_v41 = vpop.permute.xlu0 %7073  ;;  %v5415_v42 = vsel %vm1541_vm9, %v10486_v3, %v10501_v4  ;;  %v5413_v3 = vsel %vm1541_vm9, %v10512_v50, %v10475_v12  ;;  %vm11457_vm9 = vmmov %vm11451_vm4 }
 0x294   : > { %8285 = vmatmul.mubr.msk.bf16.vlgmr.msra.gmra.mrb[104].mxu0 %vm233_vm1, %v8992_v47 }
 0x295   : > { %5279 = vmatpush1.bf16.msra.mxu0 %v5264_v9  ;;  %5171 = vmatprep.mubr.bf16.mxu0 %v11404_v0  ;;  %v10865_v61 = vpop.permute.xlu1 %7075 }
 0x296   : > { %5427 = vmatprep.subr.bf16.mxu0 %v5414_v39  ;;  %v10878_v39 = vpop.permute.xlu0 %7077 }
 0x298   : > { %8288 = vmatmul.mubr.msk.bf16.gmra.mrb[136].mxu1 %vm233_vm1, %v8993_v58 }
 0x299   : > { %5361 = vmatprep.mubr.bf16.mxu1 %v11404_v0 }
 0x29b   : > { %v3161_v13 = vpop.f32.mrb[80].mxu1 }
 0x29c   : > { %v3178_v47 = vadd.f32 %v3161_v13, %v3027_v38  ;;  %8286 = vmatmul.mubr.msk.bf16.gmra.mrb[136].mxu0 %vm233_vm1, %v8993_v58  ;;  %v3163_v28 = vpop.f32.mrb[81].mxu1  ;;  %v5565_v38 = vsel %vm1692_vm10, %v10537_v63, %v10541_v48  ;;  %v5563_v48 = vsel %vm1692_vm10, %v10520_v15, %v10530_v49 }
 0x29d   : > { %v3179_v37 = vadd.f32 %v3163_v28, %v3028_v54  ;;  %v3165_v20 = vpop.f32.mrb[82].mxu1  ;;  %5310 = vmatprep.mubr.bf16.mxu0 %v11404_v0 }
 0x29e   : > { %v3166_v9 = vpop.f32.mrb[83].mxu1  ;;  %v10882_v20 = vpop.permute.xlu1 %7069 }
 0x29f   : > { %v3110_v45 = vpop.f32.mrb[80].mxu0 }
 0x2a0   : > { %v3176_v58 = vadd.f32 %v3110_v45, %v3025_v2  ;;  %v3112_v13 = vpop.f32.mrb[81].mxu0  ;;  %8296 = vmatmul.mubr.msk.bf16.vlgmr.msra.gmra.mrb[104].mxu1 %vm233_vm1, %v8994_v31  ;;  %v8995_v2 = vld [vmem:[%s11375_s1 + $0x68] ss:$0 sps:$4 sm:$0xff]   ;;  %v8996_v45 = vld [vmem:[%s11375_s1 + $0x6c] sm:$0xff]  }
 0x2a1   : > { %v3177_v54 = vadd.f32 %v3112_v13, %v3026_v30  ;;  %v3114_v28 = vpop.f32.mrb[82].mxu0  ;;  %5479 = vmatpush1.bf16.msra.mxu1 %v5415_v42  ;;  %5371 = vmatprep.mubr.bf16.mxu1 %v11404_v0  ;;  %v10895_v30 = vpop.permute.xlu0 %7220 }
 0x2a2   : > { %v3115_v4 = vpop.f32.mrb[83].mxu0  ;;  %5627 = vmatprep.subr.bf16.mxu1 %v5565_v38  ;;  %v10897_v42 = vpop.permute.xlu1 %7222 }
 0x2a4   : > { %8294 = vmatmul.mubr.msk.bf16.vlgmr.msra.gmra.mrb[104].mxu0 %vm233_vm1, %v8994_v31 }
 0x2a5   : > { %5428 = vmatpush1.bf16.msra.mxu0 %v5413_v3  ;;  %5320 = vmatprep.mubr.bf16.mxu0 %v11404_v0  ;;  %v10901_v50 = vpop.permute.xlu0 %7224  ;;  %v5564_v3 = vsel %vm1692_vm10, %v10530_v49, %v10537_v63  ;;  %v5562_v49 = vsel %vm1692_vm10, %v10543_v23, %v10520_v15  ;;  %vm11459_vm10 = vmmov %vm11456_vm8 }
 0x2a6   : > { %5576 = vmatprep.subr.bf16.mxu0 %v5563_v48  ;;  %v10908_v28 = vpop.permute.xlu1 %7226 }
 0x2a8   : > { %8297 = vmatmul.mubr.msk.bf16.gmra.mrb[140].mxu1 %vm233_vm1, %v8995_v2 }
 0x2a9   : > { %5510 = vmatprep.mubr.bf16.mxu1 %v11404_v0 }
 0x2ab   : > { %v3339_v12 = vpop.f32.mrb[84].mxu1 }
 0x2ac   : > { %v3356_v31 = vadd.f32 %v3339_v12, %v3178_v47  ;;  %8295 = vmatmul.mubr.msk.bf16.gmra.mrb[140].mxu0 %vm233_vm1, %v8995_v2  ;;  %v3341_v9 = vpop.f32.mrb[85].mxu1  ;;  %v5714_v47 = vsel %vm1843_vm11, %v10568_v57, %v10571_v7 }
 0x2ad   : > { %v3357_v38 = vadd.f32 %v3341_v9, %v3179_v37  ;;  %v3343_v13 = vpop.f32.mrb[86].mxu1  ;;  %5459 = vmatprep.mubr.bf16.mxu0 %v11404_v0 }
 0x2ae   : > { %v3344_v4 = vpop.f32.mrb[87].mxu1  ;;  %v10918_v13 = vpop.permute.xlu0 %7218 }
 0x2af   : > { %v3288_v48 = vpop.f32.mrb[84].mxu0  ;;  %11428 = vst [vmem:[#allocation11_spill] sm:$0xff] %v10918_v13  ;;  %v11429_v4 = vld [vmem:[#allocation2_spill] sm:$0xff] }
 0x2b0   : > { %v3354_v2 = vadd.f32 %v3288_v48, %v3176_v58  ;;  %v3290_v12 = vpop.f32.mrb[85].mxu0  ;;  %8305 = vmatmul.mubr.msk.bf16.vlgmr.msra.gmra.mrb[104].mxu1 %vm233_vm1, %v8996_v45  ;;  %v5712_v7 = vsel %vm1843_vm11, %v11429_v4, %v10557_v8  ;;  %v10926_v58 = vpop.permute.xlu1 %7369 }
 0x2b1   : > { %v3355_v37 = vadd.f32 %v3290_v12, %v3177_v54  ;;  %v3292_v9 = vpop.f32.mrb[86].mxu0  ;;  %5628 = vmatpush1.bf16.msra.mxu1 %v5564_v3  ;;  %5520 = vmatprep.mubr.bf16.mxu1 %v11404_v0  ;;  %11430 = vst [vmem:[#allocation2_spill] sm:$0xff] %v10926_v58  ;;  %v8997_v54 = vld [vmem:[%s11375_s1 + $0x74] ss:$0 sps:$4 sm:$0xff]  }
 0x2b2   : > { %v3293_v63 = vpop.f32.mrb[87].mxu0  ;;  %5776 = vmatprep.subr.bf16.mxu1 %v5714_v47  ;;  %v10933_v3 = vpop.permute.xlu0 %7371  ;;  %v8998_v47 = vld [vmem:[%s11375_s1 + $0x78] sm:$0xff]  }
 0x2b3   : > { %11431 = vst [vmem:[#allocation12_spill] sm:$0xff] %v10933_v3  ;;  %v5713_v63 = vsel %vm1843_vm11, %v10557_v8, %v10568_v57 }
 0x2b4   : > { %8303 = vmatmul.mubr.msk.bf16.vlgmr.msra.gmra.mrb[104].mxu0 %vm233_vm1, %v8996_v45  ;;  %v10937_v15 = vpop.permute.xlu1 %7373 }
 0x2b5   : > { %5577 = vmatpush1.bf16.msra.mxu0 %v5562_v49  ;;  %5469 = vmatprep.mubr.bf16.mxu0 %v11404_v0 }
 0x2b6   : > { %5725 = vmatprep.subr.bf16.mxu0 %v5712_v7  ;;  %v10944_v49 = vpop.permute.xlu0 %7375 }
 0x2b8   : > { %8306 = vmatmul.mubr.msk.bf16.gmra.mrb[144].mxu1 %vm233_vm1, %v8997_v54 }
 0x2b9   : > { %5659 = vmatprep.mubr.bf16.mxu1 %v11404_v0 }
 0x2bb   : > { %v3490_v23 = vpop.f32.mrb[88].mxu1 }
 0x2bc   : > { %v3507_v48 = vadd.f32 %v3490_v23, %v3356_v31  ;;  %8304 = vmatmul.mubr.msk.bf16.gmra.mrb[144].mxu0 %vm233_vm1, %v8997_v54  ;;  %v3492_v45 = vpop.f32.mrb[89].mxu1  ;;  %v10949_v31 = vpop.permute.xlu1 %7367  ;;  %v5863_v54 = vsel %vm1994_vm12, %v10595_v32, %v10603_v1 }
 0x2bd   : > { %v3508_v12 = vadd.f32 %v3492_v45, %v3357_v38  ;;  %v3494_v9 = vpop.f32.mrb[90].mxu1  ;;  %5608 = vmatprep.mubr.bf16.mxu0 %v11404_v0  ;;  %11432 = vst [vmem:[#allocation13_spill] sm:$0xff] %v10949_v31  ;;  %v11435_v31 = vld [vmem:[#allocation6_spill] sm:$0xff]  ;;  %v10962_v1 = vpop.permute.xlu0 %7518 }
 0x2be   : > { %v3495_v7 = vpop.f32.mrb[91].mxu1  ;;  %v11433_v9 = vld [vmem:[#allocation5_spill] sm:$0xff] }
 0x2bf   : > { %v3439_v58 = vpop.f32.mrb[88].mxu0  ;;  %v5711_v8 = vsel %vm1843_vm11, %v11433_v9, %v11429_v4  ;;  %v11434_v7 = vld [vmem:[#allocation7_spill] sm:$0xff]  ;;  %11436 = vst [vmem:[#allocation5_spill] sm:$0xff] %v10962_v1  ;;  %vm11460_vm11 = vmmov %vm11456_vm8 }
 0x2c0   : > { %v3505_v23 = vadd.f32 %v3439_v58, %v3354_v2  ;;  %v3441_v3 = vpop.f32.mrb[89].mxu0  ;;  %8314 = vmatmul.mubr.msk.bf16.vlgmr.msra.gmra.mrb[104].mxu1 %vm233_vm1, %v8998_v47  ;;  %v5861_v13 = vsel %vm1994_vm12, %v11435_v31, %v11434_v7  ;;  %v8999_v2 = vld [vmem:[%s11375_s1 + $0x80] ss:$0 sps:$4 sm:$0xff]  }
 0x2c1   : > { %v3506_v38 = vadd.f32 %v3441_v3, %v3355_v37  ;;  %v3443_v45 = vpop.f32.mrb[90].mxu0  ;;  %5777 = vmatpush1.bf16.msra.mxu1 %v5713_v63  ;;  %5669 = vmatprep.mubr.bf16.mxu1 %v11404_v0  ;;  %v10969_v37 = vpop.permute.xlu1 %7520 }
 0x2c2   : > { %v3444_v57 = vpop.f32.mrb[91].mxu0  ;;  %5925 = vmatprep.subr.bf16.mxu1 %v5863_v54  ;;  %11437 = vst [vmem:[#allocation7_spill] sm:$0xff] %v10969_v37  ;;  %v10973_v4 = vpop.permute.xlu0 %7522  ;;  %v9000_v54 = vld [vmem:[%s11375_s1 + $0x84] sm:$0xff]  }
 0x2c3   : > { %11438 = vst [vmem:[#allocation6_spill] sm:$0xff] %v10973_v4 }
 0x2c4   : > { %8312 = vmatmul.mubr.msk.bf16.vlgmr.msra.gmra.mrb[104].mxu0 %vm233_vm1, %v8998_v47 }
 0x2c5   : > { %5726 = vmatpush1.bf16.msra.mxu0 %v5711_v8  ;;  %5618 = vmatprep.mubr.bf16.mxu0 %v11404_v0  ;;  %v10975_v3 = vpop.permute.xlu1 %7524 }
 0x2c6   : > { %5874 = vmatprep.subr.bf16.mxu0 %v5861_v13  ;;  %11439 = vst [vmem:[#allocation14_spill] sm:$0xff] %v10975_v3  ;;  %v5862_v13 = vsel %vm1994_vm12, %v11434_v7, %v10595_v32  ;;  %v10985_v1 = vpop.permute.xlu0 %7516  ;;  %v11442_v32 = vld [vmem:[#allocation8_spill] sm:$0xff] }
 0x2c7   : > { %11440 = vst [vmem:[#allocation15_spill] sm:$0xff] %v10985_v1  ;;  %v5860_v7 = vsel %vm1994_vm12, %v11442_v32, %v11435_v31  ;;  %vm11461_vm12 = vcmask 195584  }
 0x2c8   : > { %8315 = vmatmul.mubr.msk.bf16.gmra.mrb[148].mxu1 %vm233_vm1, %v8999_v2 }
 0x2c9   : > { %5808 = vmatprep.mubr.bf16.mxu1 %v11404_v0 }
 0x2cb   : > { %v3641_v58 = vpop.f32.mrb[92].mxu1 }
 0x2cc   : > { %v3658_v47 = vadd.f32 %v3641_v58, %v3507_v48  ;;  %8313 = vmatmul.mubr.msk.bf16.gmra.mrb[148].mxu0 %vm233_vm1, %v8999_v2  ;;  %v3643_v63 = vpop.f32.mrb[93].mxu1  ;;  %v6012_v48 = vsel %vm2145_vm13, %v10632_v25, %v10639_v16  ;;  %v6010_v16 = vsel %vm2145_vm13, %v10614_v22, %v10622_v53 }
 0x2cd   : > { %v3659_v45 = vadd.f32 %v3643_v63, %v3508_v12  ;;  %v3645_v9 = vpop.f32.mrb[94].mxu1  ;;  %5757 = vmatprep.mubr.bf16.mxu0 %v11404_v0 }
 0x2ce   : > { %v3646_v8 = vpop.f32.mrb[95].mxu1  ;;  %v10992_v9 = vpop.permute.xlu1 %7667 }
 0x2cf   : > { %v3590_v57 = vpop.f32.mrb[92].mxu0  ;;  %11441 = vst [vmem:[#allocation16_spill] sm:$0xff] %v10992_v9 }
 0x2d0   : > { %v3656_v2 = vadd.f32 %v3590_v57, %v3505_v23  ;;  %v3592_v58 = vpop.f32.mrb[93].mxu0  ;;  %8323 = vmatmul.mubr.msk.bf16.vlgmr.msra.gmra.mrb[104].mxu1 %vm233_vm1, %v9000_v54  ;;  %v9001_v23 = vld [vmem:[%s11375_s1 + $0x8c] ss:$0 sps:$4 sm:$0xff]  }
 0x2d1   : > { %v3657_v12 = vadd.f32 %v3592_v58, %v3506_v38  ;;  %v3594_v63 = vpop.f32.mrb[94].mxu0  ;;  %5926 = vmatpush1.bf16.msra.mxu1 %v5862_v13  ;;  %5818 = vmatprep.mubr.bf16.mxu1 %v11404_v0  ;;  %v11005_v38 = vpop.permute.xlu0 %7669  ;;  %v9002_v58 = vld [vmem:[%s11375_s1 + $0x90] sm:$0xff]  }
 0x2d2   : > { %v3595_v8 = vpop.f32.mrb[95].mxu0  ;;  %6074 = vmatprep.subr.bf16.mxu1 %v6012_v48  ;;  %11443 = vst [vmem:[#allocation8_spill] sm:$0xff] %v11005_v38  ;;  %v11007_v13 = vpop.permute.xlu1 %7671 }
 0x2d3   : > { %11444 = vst [vmem:[#allocation17_spill] sm:$0xff] %v11007_v13  ;;  %v6011_v8 = vsel %vm2145_vm13, %v10622_v53, %v10632_v25  ;;  %v6009_v53 = vsel %vm2145_vm13, %v10643_v29, %v10614_v22  ;;  %vm11462_vm13 = vmmov %vm11456_vm8 }
 0x2d4   : > { %8321 = vmatmul.mubr.msk.bf16.vlgmr.msra.gmra.mrb[104].mxu0 %vm233_vm1, %v9000_v54 }
 0x2d5   : > { %5875 = vmatpush1.bf16.msra.mxu0 %v5860_v7  ;;  %5767 = vmatprep.mubr.bf16.mxu0 %v11404_v0  ;;  %v11011_v57 = vpop.permute.xlu0 %7673 }
 0x2d6   : > { %6023 = vmatprep.subr.bf16.mxu0 %v6010_v16  ;;  %11445 = vst [vmem:[#allocation18_spill] sm:$0xff] %v11011_v57  ;;  %v11019_v7 = vpop.permute.xlu1 %7665 }
 0x2d7   : > { %11446 = vst [vmem:[#allocation19_spill] sm:$0xff] %v11019_v7  ;;  %v11448_v7 = vmov 0  }
 0x2d8   : > { %8324 = vmatmul.mubr.msk.bf16.gmra.mrb[152].mxu1 %vm233_vm1, %v9001_v23 }
 0x2d9   : > { %5957 = vmatprep.mubr.bf16.mxu1 %v11404_v0 }
 0x2db   : > { %v3792_v31 = vpop.f32.mrb[96].mxu1 }
 0x2dc   : > { %v3809_v54 = vadd.f32 %v3792_v31, %v3658_v47  ;;  %8322 = vmatmul.mubr.msk.bf16.gmra.mrb[152].mxu0 %vm233_vm1, %v9001_v23  ;;  %v3794_v48 = vpop.f32.mrb[97].mxu1  ;;  %v6161_v23 = vsel %vm11447_vm0, %v10662_v18, %v10675_v36  ;;  %vm11464_vm0 = vmmov %vm11461_vm12 }
 0x2dd   : > { %v11017_v63 = vadd.f32 %v3794_v48, %v3659_v45  ;;  %v3796_v32 = vpop.f32.mrb[98].mxu1  ;;  %5906 = vmatprep.mubr.bf16.mxu0 %v11404_v0  ;;  %v3968_v0 = vpop.permute.xlu0 %3967 }
 0x2de   : > { %v3797_v16 = vpop.f32.mrb[99].mxu1 }
 0x2df   : > { %v3741_v47 = vpop.f32.mrb[96].mxu0  ;;  %v3973_v16 = vpop.permute.xlu1 %3972 }
 0x2e0   : > { %v11028_v31 = vadd.f32 %v3741_v47, %v3656_v2  ;;  %v3743_v45 = vpop.f32.mrb[97].mxu0  ;;  %8332 = vmatmul.mubr.msk.bf16.vlgmr.msra.gmra.mrb[104].mxu1 %vm233_vm1, %v9002_v58  ;;  %v6159_v2 = vsel %vm11449_vm2, %v10645_v5, %v10658_v24  ;;  %v9003_v47 = vld [vmem:[%s11375_s1 + $0x98] ss:$0 sps:$4 sm:$0xff]   ;;  %vm11465_vm2 = vmmov %vm11464_vm0 }
 0x2e1   : > { %v11031_v48 = vadd.f32 %v3743_v45, %v3657_v12  ;;  %v3745_v32 = vpop.f32.mrb[98].mxu0  ;;  %6075 = vmatpush1.bf16.msra.mxu1 %v6011_v8  ;;  %5967 = vmatprep.mubr.bf16.mxu1 %v11448_v7 }
 0x2e2   : > { %v3746_v25 = vpop.f32.mrb[99].mxu0  ;;  %6223 = vmatprep.subr.bf16.mxu1 %v6161_v23 }
 0x2e3   : > { %v3933_v36 = vpop.f32.mrb[0].mxu1 }
 0x2e4   : > { %8330 = vmatmul.mubr.msk.bf16.vlgmr.msra.gmra.mrb[104].mxu0 %vm233_vm1, %v9002_v58  ;;  %v3935_v12 = vpop.f32.mrb[1].mxu1  ;;  %v3982_v8 = vadd.f32 %v3968_v0, %v3933_v36 }
 0x2e5   : > { %6024 = vmatpush1.bf16.msra.mxu0 %v6009_v53  ;;  %v3983_v45 = vadd.f32 %v3968_v0, %v3935_v12  ;;  %v3937_v22 = vpop.f32.mrb[2].mxu1  ;;  %5916 = vmatprep.mubr.bf16.mxu0 %v11448_v7 }
 0x2e6   : > { %v8199_v29 = vclamps-f32 %v3982_v8, 0.0  ;;  %v3986_v23 = vadd.f32 %v3973_v16, %v3937_v22  ;;  %v3939_v32 = vpop.f32.mrb[3].mxu1  ;;  %6172 = vmatprep.subr.bf16.mxu0 %v6159_v2 }
 0x2e7   : > { %v8200_v25 = vclamps-f32 %v3983_v45, 0.0  ;;  %v3882_v9 = vpop.f32.mrb[0].mxu0  ;;  %v3987_v38 = vadd.f32 %v3973_v16, %v3939_v32 }
 0x2e8   : > { %v8203_v58 = vclamps-f32 %v3986_v23, 0.0  ;;  %v3980_v36 = vadd.f32 %v3968_v0, %v3882_v9  ;;  %v3884_v53 = vpop.f32.mrb[1].mxu0  ;;  %8333 = vmatmul.mubr.msk.bf16.gmra.mrb[156].mxu1 %vm233_vm1, %v9003_v47  ;;  %v3978_v9 = vpop.permute.xlu1 %3977 }
 0x2e9   : > { %v8468_v12 = vpack.c.bf16 %v8200_v25, %v8199_v29  ;;  %v8204_v1 = vclamps-f32 %v3987_v38, 0.0  ;;  %v3981_v8 = vadd.f32 %v3968_v0, %v3884_v53  ;;  %v3886_v22 = vpop.f32.mrb[2].mxu0  ;;  %6106 = vmatprep.mubr.bf16.mxu1 %v11448_v7  ;;  %v9004_v0 = vld [vmem:[%s11375_s1 + $0x9c] sm:$0xff]  }
 0x2ea   : > { %v8197_v2 = vclamps-f32 %v3980_v36, 0.0  ;;  %v3984_v45 = vadd.f32 %v3973_v16, %v3886_v22  ;;  %v3888_v32 = vpop.f32.mrb[3].mxu0 }
 0x2eb   : > { %4057 = vst [vmem:[%s11049_s8 + $0x8] sm:$0xff] %v8468_v12  ;;  %v8470_v13 = vpack.c.bf16 %v8204_v1, %v8203_v58  ;;  %v8198_v57 = vclamps-f32 %v3981_v8, 0.0  ;;  %v3985_v37 = vadd.f32 %v3973_v16, %v3888_v32  ;;  %v3943_v4 = vpop.f32.mrb[100].mxu1 }
 0x2ec   : > { %v8201_v23 = vclamps-f32 %v3984_v45, 0.0  ;;  %v3960_v3 = vadd.f32 %v3943_v4, %v3809_v54  ;;  %8331 = vmatmul.mubr.msk.bf16.gmra.mrb[156].mxu0 %vm233_vm1, %v9003_v47  ;;  %v3945_v38 = vpop.f32.mrb[101].mxu1  ;;  %v6160_v4 = vsel %vm11450_vm3, %v10658_v24, %v10662_v18  ;;  %vm11466_vm3 = vcmask 187392  }
 0x2ed   : > { %4059 = vst [vmem:[%s11049_s8 + $0x28] sm:$0xff] %v8470_v13  ;;  %v8467_v29 = vpack.c.bf16 %v8198_v57, %v8197_v2  ;;  %v8202_v25 = vclamps-f32 %v3985_v37, 0.0  ;;  %v3961_v1 = vadd.f32 %v3945_v38, %v11017_v63  ;;  %v3947_v58 = vpop.f32.mrb[102].mxu1  ;;  %6055 = vmatprep.mubr.bf16.mxu0 %v11448_v7  ;;  %v6310_v37 = vsel %vm11451_vm4, %v10698_v35, %v10706_v62  ;;  %v11453_v2 = vld [vmem:[#allocation3_spill] sm:$0xff]  ;;  %vm11467_vm4 = vmmov %vm11464_vm0 }
 0x2ee   : > { %v3990_v54 = vadd.f32 %v3978_v9, %v3960_v3  ;;  %v3948_v16 = vpop.f32.mrb[103].mxu1  ;;  %v6158_v3 = vsel %vm11452_vm5, %v10677_v10, %v10645_v5  ;;  %v6308_v45 = vsel %vm11454_vm6, %v11453_v2, %v10688_v43  ;;  %v9006_v38 = vld [vmem:[%s11375_s1 + $0xa8] sm:$0xff]   ;;  %v6459_v58 = vsel %vm11456_vm8, %v10732_v56, %v10742_v46  ;;  %v9007_v46 = vld [vmem:[%s11375_s1 + $0xb0] ss:$0 sps:$4 sm:$0xff]   ;;  %vm11468_vm5 = vmmov %vm11466_vm3 }
 0x2ef   : > { %4056 = vst [vmem:[%s11049_s8] sm:$0xff] %v8467_v29  ;;  %v8469_v47 = vpack.c.bf16 %v8202_v25, %v8201_v23  ;;  %v3991_v36 = vadd.f32 %v3978_v9, %v3961_v1  ;;  %v3892_v53 = vpop.f32.mrb[100].mxu0  ;;  %v6309_v29 = vsel %vm11455_vm7, %v10688_v43, %v10698_v35  ;;  %v6307_v16 = vsel %vm11457_vm9, %v10713_v14, %v11453_v2  ;;  %v11458_v43 = vld [vmem:[#allocation9_spill] sm:$0xff]  ;;  %vm11469_vm6 = vmmov %vm11466_vm3 }
 0x2f0   : > { %v8207_v13 = vclamps-f32 %v3990_v54, 0.0  ;;  %v3958_v57 = vadd.f32 %v3892_v53, %v11028_v31  ;;  %v3894_v63 = vpop.f32.mrb[101].mxu0  ;;  %8341 = vmatmul.mubr.msk.bf16.vlgmr.msra.gmra.mrb[104].mxu1 %vm233_vm1, %v9004_v0  ;;  %v6457_v35 = vsel %vm11459_vm10, %v11458_v43, %v10724_v19  ;;  %vm11470_vm7 = vcmask 179200   ;;  %vm11471_vm8 = vmmov %vm11466_vm3 }
 0x2f1   : > { %4058 = vst [vmem:[%s11049_s8 + $0x20] sm:$0xff] %v8469_v47  ;;  %v8208_v12 = vclamps-f32 %v3991_v36, 0.0  ;;  %v3959_v24 = vadd.f32 %v3894_v63, %v11031_v48  ;;  %v3896_v18 = vpop.f32.mrb[102].mxu0  ;;  %6224 = vmatpush1.bf16.msra.mxu1 %v6160_v4  ;;  %6116 = vmatprep.mubr.bf16.mxu1 %v11448_v7  ;;  %v9005_v48 = vld [vmem:[%s11375_s1 + $0xa4] ss:$0 sps:$4 sm:$0xff]   ;;  %v6458_v63 = vsel %vm11460_vm11, %v10724_v19, %v10732_v56  ;;  %v11463_v56 = vld [vmem:[#allocation4_spill] sm:$0xff]  ;;  %vm11473_vm9 = vmmov %vm11470_vm7 }
 0x2f2   : > { %v3988_v62 = vadd.f32 %v3978_v9, %v3958_v57  ;;  %v3897_v8 = vpop.f32.mrb[103].mxu0  ;;  %6372 = vmatprep.subr.bf16.mxu1 %v6310_v37  ;;  %v9008_v37 = vld [vmem:[%s11375_s1 + $0xb4] sm:$0xff]   ;;  %v6608_v18 = vsel %vm11461_vm12, %v10768_v27, %v10772_v21  ;;  %v6606_v2 = vsel %vm11464_vm0, %v11463_v56, %v10755_v11  ;;  %v9009_v21 = vld [vmem:[%s11375_s1 + $0xbc] ss:$0 sps:$4 sm:$0xff]   ;;  %vm11474_vm10 = vmmov %vm11470_vm7  ;;  %vm11475_vm11 = vcmask 982016  }
 0x2f3   : > { %v8472_v31 = vpack.c.bf16 %v8208_v12, %v8207_v13  ;;  %v3989_v22 = vadd.f32 %v3978_v9, %v3959_v24  ;;  %vm11476_vm12 = vmmov %vm11470_vm7 }
 0x2f4   : > { %v8205_v32 = vclamps-f32 %v3988_v62, 0.0  ;;  %8339 = vmatmul.mubr.msk.bf16.vlgmr.msra.gmra.mrb[104].mxu0 %vm233_vm1, %v9004_v0  ;;  %vm11478_vm0 = vmmov %vm11475_vm11 }
 0x2f5   : > { %4061 = vst [vmem:[%s11049_s8 + $0x48] sm:$0xff] %v8472_v31  ;;  %v8206_v23 = vclamps-f32 %v3989_v22, 0.0  ;;  %6173 = vmatpush1.bf16.msra.mxu0 %v6158_v3  ;;  %6065 = vmatprep.mubr.bf16.mxu0 %v11448_v7  ;;  %v6456_v22 = vsel %vm11462_vm13, %v10749_v40, %v11458_v43  ;;  %vm11477_vm13 = vmmov %vm11475_vm11 }
 0x2f6   : > { %6321 = vmatprep.subr.bf16.mxu0 %v6308_v45 }
 0x2f7   : > { %v8471_v5 = vpack.c.bf16 %v8206_v23, %v8205_v32 }
 0x2f8   : > { %8342 = vmatmul.mubr.msk.bf16.gmra.mrb[160].mxu1 %vm233_vm1, %v9005_v48 }
 0x2f9   : > { %4060 = vst [vmem:[%s11049_s8 + $0x40] sm:$0xff] %v8471_v5  ;;  %6255 = vmatprep.mubr.bf16.mxu1 %v11448_v7 }
 0x2fb   : > { %v4222_v10 = vpop.f32.mrb[108].mxu1 }
 0x2fc   : > { %8340 = vmatmul.mubr.msk.bf16.gmra.mrb[160].mxu0 %vm233_vm1, %v9005_v48  ;;  %v4224_v9 = vpop.f32.mrb[109].mxu1  ;;  %v9010_v48 = vld [vmem:[%s11375_s1 + $0xc0] sm:$0xff]  }
 0x2fd   : > { %v4226_v0 = vpop.f32.mrb[110].mxu1  ;;  %6204 = vmatprep.mubr.bf16.mxu0 %v11448_v7 }
 0x2fe   : > { %v4227_v25 = vpop.f32.mrb[111].mxu1  ;;  %v6757_v0 = vsel %vm11466_vm3, %v10798_v59, %v10808_v51  ;;  %v9011_v51 = vld [vmem:[%s11375_s1 + $0xc8] ss:$0 sps:$4 sm:$0xff]   ;;  %vm11480_vm3 = vmmov %vm11478_vm0 }
 0x2ff   : > { %v4171_v1 = vpop.f32.mrb[108].mxu0 }
 0x300   : > { %v4173_v4 = vpop.f32.mrb[109].mxu0  ;;  %8350 = vmatmul.mubr.msk.bf16.vlgmr.msra.gmra.mrb[104].mxu1 %vm233_vm1, %v9006_v38 }
 0x301   : > { %v4175_v54 = vpop.f32.mrb[110].mxu0  ;;  %6373 = vmatpush1.bf16.msra.mxu1 %v6309_v29  ;;  %6265 = vmatprep.mubr.bf16.mxu1 %v11448_v7 }
 0x302   : > { %v4176_v47 = vpop.f32.mrb[111].mxu0  ;;  %6521 = vmatprep.subr.bf16.mxu1 %v6459_v58 }
 0x303   : > { %v9012_v47 = vld [vmem:[%s11375_s1 + $0xcc] sm:$0xff]  }
 0x304   : > { %8348 = vmatmul.mubr.msk.bf16.vlgmr.msra.gmra.mrb[104].mxu0 %vm233_vm1, %v9006_v38 }
 0x305   : > { %6322 = vmatpush1.bf16.msra.mxu0 %v6307_v16  ;;  %6214 = vmatprep.mubr.bf16.mxu0 %v11448_v7 }
 0x306   : > { %6470 = vmatprep.subr.bf16.mxu0 %v6457_v35 }
 0x308   : > { %8351 = vmatmul.mubr.msk.bf16.gmra.mrb[164].mxu1 %vm233_vm1, %v9007_v46 }
 0x309   : > { %6404 = vmatprep.mubr.bf16.mxu1 %v11448_v7 }
 0x30b   : > { %v4342_v14 = vpop.f32.mrb[112].mxu1 }
 0x30c   : > { %v4343_v36 = vadd.f32 %v4342_v14, %v4222_v10  ;;  %8349 = vmatmul.mubr.msk.bf16.gmra.mrb[164].mxu0 %vm233_vm1, %v9007_v46  ;;  %v4344_v53 = vpop.f32.mrb[113].mxu1  ;;  %v6607_v10 = vsel %vm11465_vm2, %v10755_v11, %v10768_v27  ;;  %v6755_v27 = vsel %vm11468_vm5, %v10787_v55, %v10791_v33  ;;  %v6756_v46 = vsel %vm11469_vm6, %v10791_v33, %v10798_v59  ;;  %v11472_v59 = vld [vmem:[#allocation10_spill] sm:$0xff] }
 0x30d   : > { %v4345_v13 = vadd.f32 %v4344_v53, %v4224_v9  ;;  %v4346_v57 = vpop.f32.mrb[114].mxu1  ;;  %6353 = vmatprep.mubr.bf16.mxu0 %v11448_v7  ;;  %v6906_v53 = vsel %vm11470_vm7, %v10834_v44, %v10842_v60  ;;  %v9013_v60 = vld [vmem:[%s11375_s1 + $0xd4] ss:$0 sps:$4 sm:$0xff]   ;;  %vm11479_vm2 = vcmask 973824   ;;  %vm11483_vm6 = vcmask 965632  }
 0x30e   : > { %v4347_v12 = vpop.f32.mrb[115].mxu1  ;;  %vm11482_vm5 = vmmov %vm11479_vm2 }
 0x30f   : > { %v4291_v24 = vpop.f32.mrb[112].mxu0  ;;  %v6754_v12 = vsel %vm11471_vm8, %v10816_v6, %v10787_v55  ;;  %vm11485_vm7 = vmmov %vm11479_vm2 }
 0x310   : > { %v4292_v3 = vadd.f32 %v4291_v24, %v4171_v1  ;;  %v4293_v62 = vpop.f32.mrb[113].mxu0  ;;  %8359 = vmatmul.mubr.msk.bf16.vlgmr.msra.gmra.mrb[104].mxu1 %vm233_vm1, %v9008_v37  ;;  %v6904_v24 = vsel %vm11473_vm9, %v11472_v59, %v10827_v34  ;;  %vm11488_vm8 = vmmov %vm11483_vm6 }
 0x311   : > { %v4294_v8 = vadd.f32 %v4293_v62, %v4173_v4  ;;  %v4295_v31 = vpop.f32.mrb[114].mxu0  ;;  %6522 = vmatpush1.bf16.msra.mxu1 %v6458_v63  ;;  %6414 = vmatprep.mubr.bf16.mxu1 %v11448_v7  ;;  %v6605_v4 = vsel %vm11467_vm4, %v10785_v26, %v11463_v56  ;;  %v7082_v56 = vsel %vm11475_vm11, %v10865_v61, %v10878_v39  ;;  %v9015_v39 = vld [vmem:[%s11375_s1 + $0xe0] ss:$0 sps:$4 sm:$0xff]   ;;  %vm11481_vm4 = vmmov %vm11479_vm2 }
 0x312   : > { %v4296_v19 = vpop.f32.mrb[115].mxu0  ;;  %6670 = vmatprep.subr.bf16.mxu1 %v6608_v18  ;;  %v6905_v31 = vsel %vm11474_vm10, %v10827_v34, %v10834_v44  ;;  %v7080_v44 = vsel %vm11477_vm13, %v10859_v52, %v10863_v41  ;;  %vm11489_vm9 = vmmov %vm11483_vm6 }
 0x313   : > { %vm11493_vm10 = vmmov %vm11483_vm6 }
 0x314   : > { %8357 = vmatmul.mubr.msk.bf16.vlgmr.msra.gmra.mrb[104].mxu0 %vm233_vm1, %v9008_v37 }
 0x315   : > { %6471 = vmatpush1.bf16.msra.mxu0 %v6456_v22  ;;  %6363 = vmatprep.mubr.bf16.mxu0 %v11448_v7 }
 0x316   : > { %6619 = vmatprep.subr.bf16.mxu0 %v6606_v2 }
 0x318   : > { %8360 = vmatmul.mubr.msk.bf16.gmra.mrb[168].mxu1 %vm233_vm1, %v9009_v21 }
 0x319   : > { %6553 = vmatprep.mubr.bf16.mxu1 %v11448_v7 }
 0x31b   : > { %v4479_v40 = vpop.f32.mrb[116].mxu1 }
 0x31c   : > { %v4496_v45 = vadd.f32 %v4479_v40, %v4343_v36  ;;  %8358 = vmatmul.mubr.msk.bf16.gmra.mrb[168].mxu0 %vm233_vm1, %v9009_v21  ;;  %v4481_v32 = vpop.f32.mrb[117].mxu1 }
 0x31d   : > { %v4497_v23 = vadd.f32 %v4481_v32, %v4345_v13  ;;  %v4483_v5 = vpop.f32.mrb[118].mxu1  ;;  %6502 = vmatprep.mubr.bf16.mxu0 %v11448_v7  ;;  %v6903_v32 = vsel %vm11476_vm12, %v10852_v17, %v11472_v59 }
 0x31e   : > { %v4484_v9 = vpop.f32.mrb[119].mxu1  ;;  %v9016_v5 = vld [vmem:[%s11375_s1 + $0xe4] sm:$0xff]  }
 0x31f   : > { %v4428_v38 = vpop.f32.mrb[116].mxu0 }
 0x320   : > { %v4494_v29 = vadd.f32 %v4428_v38, %v4292_v3  ;;  %v4430_v25 = vpop.f32.mrb[117].mxu0  ;;  %8368 = vmatmul.mubr.msk.bf16.vlgmr.msra.gmra.mrb[104].mxu1 %vm233_vm1, %v9010_v48  ;;  %v9014_v3 = vld [vmem:[%s11375_s1 + $0xd8] sm:$0xff]   ;;  %v7081_v38 = vsel %vm11478_vm0, %v10863_v41, %v10865_v61  ;;  %v7229_v61 = vsel %vm11481_vm4, %v10895_v30, %v10897_v42 }
 0x321   : > { %v4495_v1 = vadd.f32 %v4430_v25, %v4294_v8  ;;  %v4432_v58 = vpop.f32.mrb[118].mxu0  ;;  %6671 = vmatpush1.bf16.msra.mxu1 %v6607_v10  ;;  %6563 = vmatprep.mubr.bf16.mxu1 %v11448_v7  ;;  %v7231_v25 = vsel %vm11479_vm2, %v10901_v50, %v10908_v28  ;;  %v9017_v28 = vld [vmem:[%s11375_s1 + $0xec] ss:$0 sps:$4 sm:$0xff]  }
 0x322   : > { %v4433_v11 = vpop.f32.mrb[119].mxu0  ;;  %6819 = vmatprep.subr.bf16.mxu1 %v6757_v0 }
 0x324   : > { %8366 = vmatmul.mubr.msk.bf16.vlgmr.msra.gmra.mrb[104].mxu0 %vm233_vm1, %v9010_v48 }
 0x325   : > { %6620 = vmatpush1.bf16.msra.mxu0 %v6605_v4  ;;  %6512 = vmatprep.mubr.bf16.mxu0 %v11448_v7 }
 0x326   : > { %6768 = vmatprep.subr.bf16.mxu0 %v6755_v27  ;;  %v7079_v27 = vsel %vm11480_vm3, %v10882_v20, %v10859_v52 }
 0x328   : > { %8369 = vmatmul.mubr.msk.bf16.gmra.mrb[172].mxu1 %vm233_vm1, %v9011_v51 }
 0x329   : > { %6702 = vmatprep.mubr.bf16.mxu1 %v11448_v7 }
 0x32b   : > { %v4628_v26 = vpop.f32.mrb[120].mxu1 }
 0x32c   : > { %v4645_v54 = vadd.f32 %v4628_v26, %v4496_v45  ;;  %8367 = vmatmul.mubr.msk.bf16.gmra.mrb[172].mxu0 %vm233_vm1, %v9011_v51  ;;  %v4630_v16 = vpop.f32.mrb[121].mxu1  ;;  %v9018_v26 = vld [vmem:[%s11375_s1 + $0xf0] sm:$0xff]  }
 0x32d   : > { %v4646_v43 = vadd.f32 %v4630_v16, %v4497_v23  ;;  %v4632_v35 = vpop.f32.mrb[122].mxu1  ;;  %6651 = vmatprep.mubr.bf16.mxu0 %v11448_v7 }
 0x32e   : > { %v4633_v14 = vpop.f32.mrb[123].mxu1 }
 0x32f   : > { %v4577_v36 = vpop.f32.mrb[120].mxu0 }
 0x330   : > { %v4643_v37 = vadd.f32 %v4577_v36, %v4494_v29  ;;  %v4579_v13 = vpop.f32.mrb[121].mxu0  ;;  %8377 = vmatmul.mubr.msk.bf16.vlgmr.msra.gmra.mrb[104].mxu1 %vm233_vm1, %v9012_v47 }
 0x331   : > { %v4644_v57 = vadd.f32 %v4579_v13, %v4495_v1  ;;  %v4581_v63 = vpop.f32.mrb[122].mxu0  ;;  %6820 = vmatpush1.bf16.msra.mxu1 %v6756_v46  ;;  %6712 = vmatprep.mubr.bf16.mxu1 %v11448_v7  ;;  %v7380_v46 = vsel %vm11483_vm6, %v10937_v15, %v10944_v49  ;;  %v11484_v13 = vld [vmem:[#allocation11_spill] sm:$0xff]  ;;  %v9019_v49 = vld [vmem:[%s11375_s1 + $0xf8] ss:$0 sps:$4 sm:$0xff]  }
 0x332   : > { %v4582_v33 = vpop.f32.mrb[123].mxu0  ;;  %6968 = vmatprep.subr.bf16.mxu1 %v6906_v53  ;;  %v11487_v63 = vld [vmem:[#allocation2_spill] sm:$0xff] }
 0x334   : > { %8375 = vmatmul.mubr.msk.bf16.vlgmr.msra.gmra.mrb[104].mxu0 %vm233_vm1, %v9012_v47  ;;  %v7230_v47 = vsel %vm11482_vm5, %v10897_v42, %v10901_v50  ;;  %v11486_v50 = vld [vmem:[#allocation12_spill] sm:$0xff] }
 0x335   : > { %6769 = vmatpush1.bf16.msra.mxu0 %v6754_v12  ;;  %6661 = vmatprep.mubr.bf16.mxu0 %v11448_v7  ;;  %v7378_v12 = vsel %vm11488_vm8, %v11487_v63, %v11486_v50 }
 0x336   : > { %6917 = vmatprep.subr.bf16.mxu0 %v6904_v24  ;;  %v9020_v24 = vld [vmem:[%s11375_s1 + $0xfc] sm:$0xff]  }
 0x338   : > { %8378 = vmatmul.mubr.msk.bf16.gmra.mrb[176].mxu1 %vm233_vm1, %v9013_v60 }
 0x339   : > { %6851 = vmatprep.mubr.bf16.mxu1 %v11448_v7 }
 0x33b   : > { %v4777_v55 = vpop.f32.mrb[124].mxu1 }
 0x33c   : > { %v4794_v6 = vadd.f32 %v4777_v55, %v4645_v54  ;;  %8376 = vmatmul.mubr.msk.bf16.gmra.mrb[176].mxu0 %vm233_vm1, %v9013_v60  ;;  %v4779_v18 = vpop.f32.mrb[125].mxu1 }
 0x33d   : > { %v4795_v62 = vadd.f32 %v4779_v18, %v4646_v43  ;;  %v4781_v8 = vpop.f32.mrb[126].mxu1  ;;  %6800 = vmatprep.mubr.bf16.mxu0 %v11448_v7 }
 0x33e   : > { %v4782_v22 = vpop.f32.mrb[127].mxu1  ;;  %v11491_v8 = vld [vmem:[#allocation6_spill] sm:$0xff] }
 0x33f   : > { %v4726_v19 = vpop.f32.mrb[124].mxu0 }
 0x340   : > { %v4792_v2 = vadd.f32 %v4726_v19, %v4643_v37  ;;  %v4728_v21 = vpop.f32.mrb[125].mxu0  ;;  %8386 = vmatmul.mubr.msk.bf16.vlgmr.msra.gmra.mrb[104].mxu1 %vm233_vm1, %v9014_v3 }
 0x341   : > { %v4793_v40 = vadd.f32 %v4728_v21, %v4644_v57  ;;  %v4730_v45 = vpop.f32.mrb[126].mxu0  ;;  %6969 = vmatpush1.bf16.msra.mxu1 %v6905_v31  ;;  %6861 = vmatprep.mubr.bf16.mxu1 %v11448_v7  ;;  %v7228_v57 = vsel %vm11485_vm7, %v11484_v13, %v10895_v30  ;;  %v11492_v21 = vld [vmem:[#allocation13_spill] sm:$0xff] }
 0x342   : > { %v4731_v34 = vpop.f32.mrb[127].mxu0  ;;  %7144 = vmatprep.subr.bf16.mxu1 %v7082_v56  ;;  %v7803_v45 = vld [vmem:[%s11376_s2] sm:$0xff] }
 0x343   : > { %v11494_v34 = vld [vmem:[#allocation7_spill] sm:$0xff]  ;;  %7808 = vperm.xlu0 %8898, %v7803_v45  }
 0x344   : > { %8384 = vmatmul.mubr.msk.bf16.vlgmr.msra.gmra.mrb[104].mxu0 %vm233_vm1, %v9014_v3 }
 0x345   : > { %6918 = vmatpush1.bf16.msra.mxu0 %v6903_v32  ;;  %6810 = vmatprep.mubr.bf16.mxu0 %v11448_v7  ;;  %v7804_v32 = vld [vmem:[%s11376_s2 + $0x8] sm:$0xff] }
 0x346   : > { %7093 = vmatprep.subr.bf16.mxu0 %v7080_v44  ;;  %v11495_v44 = vld [vmem:[#allocation5_spill] sm:$0xff]  ;;  %7813 = vperm.xlu1 %8899, %v7804_v32  }
 0x348   : > { %8387 = vmatmul.mubr.msk.bf16.gmra.mrb[180].mxu1 %vm233_vm1, %v9015_v39 }
 0x349   : > { %7000 = vmatprep.mubr.bf16.mxu1 %v11448_v7 }
 0x34b   : > { %v4926_v17 = vpop.f32.mrb[128].mxu1 }
 0x34c   : > { %v4943_v48 = vadd.f32 %v4926_v17, %v4794_v6  ;;  %8385 = vmatmul.mubr.msk.bf16.gmra.mrb[180].mxu0 %vm233_vm1, %v9015_v39  ;;  %v4928_v23 = vpop.f32.mrb[129].mxu1  ;;  %v7379_v6 = vsel %vm11489_vm9, %v11486_v50, %v10937_v15  ;;  %v7527_v39 = vsel %vm3682_vm15, %v11495_v44, %v11494_v34  ;;  %v9021_v17 = vld [vmem:[%s11375_s1 + $0x104] ss:$0 sps:$4 sm:$0xff]  }
 0x34d   : > { %v4944_v10 = vadd.f32 %v4928_v23, %v4795_v62  ;;  %v4930_v9 = vpop.f32.mrb[130].mxu1  ;;  %6949 = vmatprep.mubr.bf16.mxu0 %v11448_v7  ;;  %v11490_v62 = vld [vmem:[#allocation14_spill] sm:$0xff] }
 0x34e   : > { %v4931_v0 = vpop.f32.mrb[131].mxu1  ;;  %v7529_v31 = vsel %vm3682_vm15, %v11491_v8, %v11490_v62  ;;  %v9022_v9 = vld [vmem:[%s11375_s1 + $0x108] sm:$0xff]  }
 0x34f   : > { %v4875_v29 = vpop.f32.mrb[128].mxu0 }
 0x350   : > { %v4941_v1 = vadd.f32 %v4875_v29, %v4792_v2  ;;  %v4877_v58 = vpop.f32.mrb[129].mxu0  ;;  %8395 = vmatmul.mubr.msk.bf16.vlgmr.msra.gmra.mrb[104].mxu1 %vm233_vm1, %v9016_v5  ;;  %v7528_v29 = vsel %vm3682_vm15, %v11494_v34, %v11491_v8 }
 0x351   : > { %v4942_v4 = vadd.f32 %v4877_v58, %v4793_v40  ;;  %v4879_v11 = vpop.f32.mrb[130].mxu0  ;;  %7145 = vmatpush1.bf16.msra.mxu1 %v7081_v38  ;;  %7010 = vmatprep.mubr.bf16.mxu1 %v11448_v7  ;;  %v7377_v40 = vsel %vm11493_vm10, %v11492_v21, %v11487_v63  ;;  %v11496_v58 = vld [vmem:[#allocation18_spill] sm:$0xff]  ;;  %v9027_v21 = vld [vmem:[%s11375_s1 + $0x128] ss:$0 sps:$4 sm:$0xff]  }
 0x352   : > { %v4880_v41 = vpop.f32.mrb[131].mxu0  ;;  %7293 = vmatprep.subr.bf16.mxu1 %v7231_v25 }
 0x354   : > { %8393 = vmatmul.mubr.msk.bf16.vlgmr.msra.gmra.mrb[104].mxu0 %vm233_vm1, %v9016_v5 }
 0x355   : > { %7094 = vmatpush1.bf16.msra.mxu0 %v7079_v27  ;;  %6959 = vmatprep.mubr.bf16.mxu0 %v11448_v7 }
 0x356   : > { %7242 = vmatprep.subr.bf16.mxu0 %v7229_v61 }
 0x358   : > { %8396 = vmatmul.mubr.msk.bf16.gmra.mrb[184].mxu1 %vm233_vm1, %v9017_v28 }
 0x359   : > { %7176 = vmatprep.mubr.bf16.mxu1 %v11448_v7 }
 0x35b   : > { %v5075_v52 = vpop.f32.mrb[132].mxu1 }
 0x35c   : > { %v5092_v20 = vadd.f32 %v5075_v52, %v4943_v48  ;;  %8394 = vmatmul.mubr.msk.bf16.gmra.mrb[184].mxu0 %vm233_vm1, %v9017_v28  ;;  %v5077_v51 = vpop.f32.mrb[133].mxu1  ;;  %v7805_v48 = vld [vmem:[%s11376_s2 + $0x10] sm:$0xff]  ;;  %v11498_v52 = vld [vmem:[#allocation15_spill] sm:$0xff] }
 0x35d   : > { %v5093_v54 = vadd.f32 %v5077_v51, %v4944_v10  ;;  %v5079_v16 = vpop.f32.mrb[134].mxu1  ;;  %7125 = vmatprep.mubr.bf16.mxu0 %v11448_v7  ;;  %7818 = vperm.xlu0 %8898, %v7805_v48  }
 0x35e   : > { %v5080_v43 = vpop.f32.mrb[135].mxu1 }
 0x35f   : > { %v5024_v35 = vpop.f32.mrb[132].mxu0 }
 0x360   : > { %v5090_v14 = vadd.f32 %v5024_v35, %v4941_v1  ;;  %v5026_v36 = vpop.f32.mrb[133].mxu0  ;;  %8409 = vmatmul.mubr.msk.bf16.vlgmr.msra.gmra.mrb[104].mxu1 %vm233_vm1, %v9018_v26 }
 0x361   : > { %v5091_v53 = vadd.f32 %v5026_v36, %v4942_v4  ;;  %v5028_v37 = vpop.f32.mrb[134].mxu0  ;;  %7294 = vmatpush1.bf16.msra.mxu1 %v7230_v47  ;;  %7186 = vmatprep.mubr.bf16.mxu1 %v11448_v7  ;;  %v11497_v4 = vld [vmem:[#allocation17_spill] sm:$0xff]  ;;  %v9023_v47 = vld [vmem:[%s11375_s1 + $0x110] ss:$0 sps:$4 sm:$0xff]  }
 0x362   : > { %v5029_v42 = vpop.f32.mrb[135].mxu0  ;;  %7442 = vmatprep.subr.bf16.mxu1 %v7380_v46  ;;  %v7678_v11 = vsel %vm3833_vm14, %v11497_v4, %v11496_v58 }
 0x364   : > { %8407 = vmatmul.mubr.msk.bf16.vlgmr.msra.gmra.mrb[104].mxu0 %vm233_vm1, %v9018_v26  ;;  %v11499_v26 = vld [vmem:[#allocation8_spill] sm:$0xff] }
 0x365   : > { %7243 = vmatpush1.bf16.msra.mxu0 %v7228_v57  ;;  %7135 = vmatprep.mubr.bf16.mxu0 %v11448_v7  ;;  %v7677_v37 = vsel %vm3833_vm14, %v11499_v26, %v11497_v4 }
 0x366   : > { %7391 = vmatprep.subr.bf16.mxu0 %v7378_v12 }
 0x368   : > { %8410 = vmatmul.mubr.msk.bf16.gmra.mrb[188].mxu1 %vm233_vm1, %v9019_v49 }
 0x369   : > { %7325 = vmatprep.mubr.bf16.mxu1 %v11448_v7 }
 0x36b   : > { %v5224_v30 = vpop.f32.mrb[136].mxu1 }
 0x36c   : > { %v5241_v33 = vadd.f32 %v5224_v30, %v5092_v20  ;;  %8408 = vmatmul.mubr.msk.bf16.gmra.mrb[188].mxu0 %vm233_vm1, %v9019_v49  ;;  %v5226_v59 = vpop.f32.mrb[137].mxu1  ;;  %v7526_v20 = vsel %vm3682_vm15, %v11498_v52, %v11495_v44  ;;  %v11501_v49 = vld [vmem:[#allocation19_spill] sm:$0xff] }
 0x36d   : > { %v5242_v60 = vadd.f32 %v5226_v59, %v5093_v54  ;;  %v5228_v55 = vpop.f32.mrb[138].mxu1  ;;  %7274 = vmatprep.mubr.bf16.mxu0 %v11448_v7  ;;  %v11500_v54 = vld [vmem:[#allocation16_spill] sm:$0xff]  ;;  %v9025_v59 = vld [vmem:[%s11375_s1 + $0x11c] ss:$0 sps:$4 sm:$0xff]  }
 0x36e   : > { %v5229_v18 = vpop.f32.mrb[139].mxu1  ;;  %v7676_v16 = vsel %vm3833_vm14, %v11500_v54, %v11499_v26  ;;  %v7675_v30 = vsel %vm3833_vm14, %v11501_v49, %v11500_v54 }
 0x36f   : > { %v5173_v3 = vpop.f32.mrb[136].mxu0 }
 0x370   : > { %v5239_v22 = vadd.f32 %v5173_v3, %v5090_v14  ;;  %v5175_v19 = vpop.f32.mrb[137].mxu0  ;;  %8418 = vmatmul.mubr.msk.bf16.vlgmr.msra.gmra.mrb[104].mxu1 %vm233_vm1, %v9020_v24  ;;  %v9024_v14 = vld [vmem:[%s11375_s1 + $0x114] sm:$0xff]  }
 0x371   : > { %v5240_v56 = vadd.f32 %v5175_v19, %v5091_v53  ;;  %v5177_v2 = vpop.f32.mrb[138].mxu0  ;;  %7443 = vmatpush1.bf16.msra.mxu1 %v7379_v6  ;;  %7335 = vmatprep.mubr.bf16.mxu1 %v11448_v7  ;;  %v9026_v6 = vld [vmem:[%s11375_s1 + $0x120] sm:$0xff]  }
 0x372   : > { %v5178_v15 = vpop.f32.mrb[139].mxu0  ;;  %7591 = vmatprep.subr.bf16.mxu1 %v7529_v31 }
 0x374   : > { %8416 = vmatmul.mubr.msk.bf16.vlgmr.msra.gmra.mrb[104].mxu0 %vm233_vm1, %v9020_v24 }
 0x375   : > { %7392 = vmatpush1.bf16.msra.mxu0 %v7377_v40  ;;  %7284 = vmatprep.mubr.bf16.mxu0 %v11448_v7 }
 0x376   : > { %7540 = vmatprep.subr.bf16.mxu0 %v7527_v39 }
 0x378   : > { %8419 = vmatmul.mubr.msk.bf16.gmra.mrb[192].mxu1 %vm233_vm1, %v9021_v17 }
 0x379   : > { %7474 = vmatprep.mubr.bf16.mxu1 %v11448_v7 }
 0x37b   : > { %v5373_v23 = vpop.f32.mrb[140].mxu1 }
 0x37c   : > { %v5390_v5 = vadd.f32 %v5373_v23, %v5241_v33  ;;  %8417 = vmatmul.mubr.msk.bf16.gmra.mrb[192].mxu0 %vm233_vm1, %v9021_v17  ;;  %v5375_v10 = vpop.f32.mrb[141].mxu1 }
 0x37d   : > { %v5391_v38 = vadd.f32 %v5375_v10, %v5242_v60  ;;  %v5377_v0 = vpop.f32.mrb[142].mxu1  ;;  %7423 = vmatprep.mubr.bf16.mxu0 %v11448_v7 }
 0x37e   : > { %v5378_v25 = vpop.f32.mrb[143].mxu1 }
 0x37f   : > { %v5322_v1 = vpop.f32.mrb[140].mxu0 }
 0x380   : > { %v5388_v27 = vadd.f32 %v5322_v1, %v5239_v22  ;;  %v5324_v41 = vpop.f32.mrb[141].mxu0  ;;  %8427 = vmatmul.mubr.msk.bf16.vlgmr.msra.gmra.mrb[104].mxu1 %vm233_vm1, %v9022_v9 }
 0x381   : > { %v5389_v61 = vadd.f32 %v5324_v41, %v5240_v56  ;;  %v5326_v28 = vpop.f32.mrb[142].mxu0  ;;  %7592 = vmatpush1.bf16.msra.mxu1 %v7528_v29  ;;  %7484 = vmatprep.mubr.bf16.mxu1 %v11448_v7 }
 0x382   : > { %v5327_v51 = vpop.f32.mrb[143].mxu0  ;;  %7740 = vmatprep.subr.bf16.mxu1 %v7678_v11 }
 0x384   : > { %8425 = vmatmul.mubr.msk.bf16.vlgmr.msra.gmra.mrb[104].mxu0 %vm233_vm1, %v9022_v9 }
 0x385   : > { %7541 = vmatpush1.bf16.msra.mxu0 %v7526_v20  ;;  %7433 = vmatprep.mubr.bf16.mxu0 %v11448_v7 }
 0x386   : > { %7689 = vmatprep.subr.bf16.mxu0 %v7676_v16 }
 0x388   : > { %8428 = vmatmul.mubr.msk.bf16.gmra.mrb[196].mxu1 %vm233_vm1, %v9023_v47 }
 0x389   : > { %7623 = vmatprep.mubr.bf16.mxu1 %v11448_v7 }
 0x38b   : > { %v5522_v43 = vpop.f32.mrb[144].mxu1 }
 0x38c   : > { %v5539_v35 = vadd.f32 %v5522_v43, %v5390_v5  ;;  %8426 = vmatmul.mubr.msk.bf16.gmra.mrb[196].mxu0 %vm233_vm1, %v9023_v47  ;;  %v5524_v46 = vpop.f32.mrb[145].mxu1 }
 0x38d   : > { %v5540_v36 = vadd.f32 %v5524_v46, %v5391_v38  ;;  %v5526_v53 = vpop.f32.mrb[146].mxu1  ;;  %7572 = vmatprep.mubr.bf16.mxu0 %v11448_v7 }
 0x38e   : > { %v5527_v13 = vpop.f32.mrb[147].mxu1 }
 0x38f   : > { %v5471_v57 = vpop.f32.mrb[144].mxu0 }
 0x390   : > { %v5537_v42 = vadd.f32 %v5471_v57, %v5388_v27  ;;  %v5473_v50 = vpop.f32.mrb[145].mxu0  ;;  %8436 = vmatmul.mubr.msk.bf16.vlgmr.msra.gmra.mrb[104].mxu1 %vm233_vm1, %v9024_v14 }
 0x391   : > { %v5538_v63 = vadd.f32 %v5473_v50, %v5389_v61  ;;  %v5475_v12 = vpop.f32.mrb[146].mxu0  ;;  %7741 = vmatpush1.bf16.msra.mxu1 %v7677_v37  ;;  %7633 = vmatprep.mubr.bf16.mxu1 %v11448_v7 }
 0x392   : > { %v5476_v33 = vpop.f32.mrb[147].mxu0 }
 0x394   : > { %8434 = vmatmul.mubr.msk.bf16.vlgmr.msra.gmra.mrb[104].mxu0 %vm233_vm1, %v9024_v14 }
 0x395   : > { %7690 = vmatpush1.bf16.msra.mxu0 %v7675_v30  ;;  %7582 = vmatprep.mubr.bf16.mxu0 %v11448_v7 }
 0x398   : > { %8437 = vmatmul.mubr.msk.bf16.gmra.mrb[200].mxu1 %vm233_vm1, %v9025_v59 }
 0x399   : > { %7772 = vmatprep.mubr.bf16.mxu1 %v11448_v7 }
 0x39b   : > { %v5671_v24 = vpop.f32.mrb[148].mxu1 }
 0x39c   : > { %v5688_v60 = vadd.f32 %v5671_v24, %v5539_v35  ;;  %8435 = vmatmul.mubr.msk.bf16.gmra.mrb[200].mxu0 %vm233_vm1, %v9025_v59  ;;  %v5673_v55 = vpop.f32.mrb[149].mxu1 }
 0x39d   : > { %v5689_v18 = vadd.f32 %v5673_v55, %v5540_v36  ;;  %v5675_v3 = vpop.f32.mrb[150].mxu1  ;;  %7721 = vmatprep.mubr.bf16.mxu0 %v11448_v7 }
 0x39e   : > { %v5676_v62 = vpop.f32.mrb[151].mxu1 }
 0x39f   : > { %v5620_v8 = vpop.f32.mrb[148].mxu0 }
 0x3a0   : > { %v5686_v31 = vadd.f32 %v5620_v8, %v5537_v42  ;;  %v5622_v22 = vpop.f32.mrb[149].mxu0  ;;  %8445 = vmatmul.mubr.msk.bf16.vlgmr.msra.gmra.mrb[104].mxu1 %vm233_vm1, %v9026_v6 }
 0x3a1   : > { %v5687_v19 = vadd.f32 %v5622_v22, %v5538_v63  ;;  %v5624_v56 = vpop.f32.mrb[150].mxu0  ;;  %7782 = vmatprep.mubr.bf16.mxu1 %v11448_v7 }
 0x3a2   : > { %v5625_v2 = vpop.f32.mrb[151].mxu0 }
 0x3a4   : > { %8443 = vmatmul.mubr.msk.bf16.vlgmr.msra.gmra.mrb[104].mxu0 %vm233_vm1, %v9026_v6 }
 0x3a5   : > { %7731 = vmatprep.mubr.bf16.mxu0 %v11448_v7 }
 0x3a8   : > { %8446 = vmatmul.mubr.msk.bf16.gmra.mrb[204].mxu1 %vm233_vm1, %v9027_v21 }
 0x3ab   : > { %v5820_v40 = vpop.f32.mrb[152].mxu1 }
 0x3ac   : > { %v5837_v15 = vadd.f32 %v5820_v40, %v5688_v60  ;;  %8444 = vmatmul.mubr.msk.bf16.gmra.mrb[204].mxu0 %vm233_vm1, %v9027_v21  ;;  %v5822_v45 = vpop.f32.mrb[153].mxu1 }
 0x3ad   : > { %v5838_v32 = vadd.f32 %v5822_v45, %v5689_v18  ;;  %v5824_v34 = vpop.f32.mrb[154].mxu1 }
 0x3ae   : > { %v5825_v44 = vpop.f32.mrb[155].mxu1 }
 0x3af   : > { %v5769_v39 = vpop.f32.mrb[152].mxu0 }
 0x3b0   : > { %v5835_v17 = vadd.f32 %v5769_v39, %v5686_v31  ;;  %v5771_v48 = vpop.f32.mrb[153].mxu0 }
 0x3b1   : > { %v5836_v23 = vadd.f32 %v5771_v48, %v5687_v19  ;;  %v5773_v5 = vpop.f32.mrb[154].mxu0 }
 0x3b2   : > { %v5774_v10 = vpop.f32.mrb[155].mxu0 }
 0x3bb   : > { %v5969_v9 = vpop.f32.mrb[156].mxu1 }
 0x3bc   : > { %v5986_v38 = vadd.f32 %v5969_v9, %v5837_v15  ;;  %v5971_v0 = vpop.f32.mrb[157].mxu1 }
 0x3bd   : > { %v5987_v7 = vadd.f32 %v5971_v0, %v5838_v32  ;;  %v5973_v29 = vpop.f32.mrb[158].mxu1 }
 0x3be   : > { %v5974_v25 = vpop.f32.mrb[159].mxu1 }
 0x3bf   : > { %v5918_v1 = vpop.f32.mrb[156].mxu0 }
 0x3c0   : > { %v5984_v58 = vadd.f32 %v5918_v1, %v5835_v17  ;;  %v5920_v4 = vpop.f32.mrb[157].mxu0 }
 0x3c1   : > { %v5985_v11 = vadd.f32 %v5920_v4, %v5836_v23  ;;  %v5922_v27 = vpop.f32.mrb[158].mxu0 }
 0x3c2   : > { %v5923_v41 = vpop.f32.mrb[159].mxu0 }
 0x3cb   : > { %v6118_v61 = vpop.f32.mrb[160].mxu1 }
 0x3cc   : > { %v6135_v28 = vadd.f32 %v6118_v61, %v5986_v38  ;;  %v6120_v52 = vpop.f32.mrb[161].mxu1 }
 0x3cd   : > { %v6136_v20 = vadd.f32 %v6120_v52, %v5987_v7  ;;  %v6122_v51 = vpop.f32.mrb[162].mxu1 }
 0x3ce   : > { %v6123_v26 = vpop.f32.mrb[163].mxu1 }
 0x3cf   : > { %v6067_v54 = vpop.f32.mrb[160].mxu0 }
 0x3d0   : > { %v6133_v16 = vadd.f32 %v6067_v54, %v5984_v58  ;;  %v6069_v47 = vpop.f32.mrb[161].mxu0 }
 0x3d1   : > { %v6134_v43 = vadd.f32 %v6069_v47, %v5985_v11  ;;  %v6071_v35 = vpop.f32.mrb[162].mxu0 }
 0x3d2   : > { %v6072_v46 = vpop.f32.mrb[163].mxu0 }
 0x3db   : > { %v6267_v14 = vpop.f32.mrb[164].mxu1 }
 0x3dc   : > { %v6284_v36 = vadd.f32 %v6267_v14, %v6135_v28  ;;  %v6269_v53 = vpop.f32.mrb[165].mxu1 }
 0x3dd   : > { %v6285_v37 = vadd.f32 %v6269_v53, %v6136_v20  ;;  %v6271_v13 = vpop.f32.mrb[166].mxu1 }
 0x3de   : > { %v6272_v57 = vpop.f32.mrb[167].mxu1 }
 0x3df   : > { %v6216_v42 = vpop.f32.mrb[164].mxu0 }
 0x3e0   : > { %v6282_v50 = vadd.f32 %v6216_v42, %v6133_v16  ;;  %v6218_v63 = vpop.f32.mrb[165].mxu0 }
 0x3e1   : > { %v6283_v12 = vadd.f32 %v6218_v63, %v6134_v43  ;;  %v6220_v49 = vpop.f32.mrb[166].mxu0 }
 0x3e2   : > { %v6221_v30 = vpop.f32.mrb[167].mxu0 }
 0x3eb   : > { %v6416_v33 = vpop.f32.mrb[168].mxu1 }
 0x3ec   : > { %v6433_v59 = vadd.f32 %v6416_v33, %v6284_v36  ;;  %v6418_v24 = vpop.f32.mrb[169].mxu1 }
 0x3ed   : > { %v6434_v60 = vadd.f32 %v6418_v24, %v6285_v37  ;;  %v6420_v55 = vpop.f32.mrb[170].mxu1 }
 0x3ee   : > { %v6421_v6 = vpop.f32.mrb[171].mxu1 }
 0x3ef   : > { %v6365_v18 = vpop.f32.mrb[168].mxu0 }
 0x3f0   : > { %v6431_v3 = vadd.f32 %v6365_v18, %v6282_v50  ;;  %v6367_v62 = vpop.f32.mrb[169].mxu0 }
 0x3f1   : > { %v6432_v8 = vadd.f32 %v6367_v62, %v6283_v12  ;;  %v6369_v31 = vpop.f32.mrb[170].mxu0 }
 0x3f2   : > { %v6370_v22 = vpop.f32.mrb[171].mxu0 }
 0x3fb   : > { %v6565_v19 = vpop.f32.mrb[172].mxu1 }
 0x3fc   : > { %v6582_v56 = vadd.f32 %v6565_v19, %v6433_v59  ;;  %v6567_v2 = vpop.f32.mrb[173].mxu1 }
 0x3fd   : > { %v6583_v21 = vadd.f32 %v6567_v2, %v6434_v60  ;;  %v6569_v40 = vpop.f32.mrb[174].mxu1 }
 0x3fe   : > { %v6570_v15 = vpop.f32.mrb[175].mxu1 }
 0x3ff   : > { %v6514_v45 = vpop.f32.mrb[172].mxu0 }
 0x400   : > { %v6580_v32 = vadd.f32 %v6514_v45, %v6431_v3  ;;  %v6516_v34 = vpop.f32.mrb[173].mxu0 }
 0x401   : > { %v6581_v44 = vadd.f32 %v6516_v34, %v6432_v8  ;;  %v6518_v39 = vpop.f32.mrb[174].mxu0 }
 0x402   : > { %v6519_v17 = vpop.f32.mrb[175].mxu0 }
 0x40b   : > { %v6714_v48 = vpop.f32.mrb[176].mxu1 }
 0x40c   : > { %v6731_v23 = vadd.f32 %v6714_v48, %v6582_v56  ;;  %v6716_v5 = vpop.f32.mrb[177].mxu1 }
 0x40d   : > { %v6732_v10 = vadd.f32 %v6716_v5, %v6583_v21  ;;  %v6718_v9 = vpop.f32.mrb[178].mxu1 }
 0x40e   : > { %v6719_v38 = vpop.f32.mrb[179].mxu1 }
 0x40f   : > { %v6663_v0 = vpop.f32.mrb[176].mxu0 }
 0x410   : > { %v6729_v7 = vadd.f32 %v6663_v0, %v6580_v32  ;;  %v6665_v29 = vpop.f32.mrb[177].mxu0 }
 0x411   : > { %v6730_v25 = vadd.f32 %v6665_v29, %v6581_v44  ;;  %v6667_v1 = vpop.f32.mrb[178].mxu0 }
 0x412   : > { %v6668_v58 = vpop.f32.mrb[179].mxu0 }
 0x41b   : > { %v6863_v4 = vpop.f32.mrb[180].mxu1 }
 0x41c   : > { %v6880_v11 = vadd.f32 %v6863_v4, %v6731_v23  ;;  %v6865_v27 = vpop.f32.mrb[181].mxu1 }
 0x41d   : > { %v6881_v41 = vadd.f32 %v6865_v27, %v6732_v10  ;;  %v6867_v61 = vpop.f32.mrb[182].mxu1 }
 0x41e   : > { %v6868_v28 = vpop.f32.mrb[183].mxu1 }
 0x41f   : > { %v6812_v52 = vpop.f32.mrb[180].mxu0 }
 0x420   : > { %v6878_v20 = vadd.f32 %v6812_v52, %v6729_v7  ;;  %v6814_v51 = vpop.f32.mrb[181].mxu0 }
 0x421   : > { %v6879_v26 = vadd.f32 %v6814_v51, %v6730_v25  ;;  %v6816_v54 = vpop.f32.mrb[182].mxu0 }
 0x422   : > { %v6817_v16 = vpop.f32.mrb[183].mxu0  ;;  %v7814_v54 = vpop.permute.xlu1 %7813 }
 0x42b   : > { %v7012_v47 = vpop.f32.mrb[184].mxu1 }
 0x42c   : > { %v7029_v43 = vadd.f32 %v7012_v47, %v6880_v11  ;;  %v7014_v35 = vpop.f32.mrb[185].mxu1 }
 0x42d   : > { %v7030_v46 = vadd.f32 %v7014_v35, %v6881_v41  ;;  %v7016_v14 = vpop.f32.mrb[186].mxu1 }
 0x42e   : > { %v7017_v36 = vpop.f32.mrb[187].mxu1 }
 0x42f   : > { %v6961_v53 = vpop.f32.mrb[184].mxu0 }
 0x430   : > { %v7027_v37 = vadd.f32 %v6961_v53, %v6878_v20  ;;  %v6963_v13 = vpop.f32.mrb[185].mxu0  ;;  %v7809_v20 = vpop.permute.xlu0 %7808 }
 0x431   : > { %v7028_v57 = vadd.f32 %v6963_v13, %v6879_v26  ;;  %v6965_v42 = vpop.f32.mrb[186].mxu0 }
 0x432   : > { %v6966_v50 = vpop.f32.mrb[187].mxu0 }
 0x43b   : > { %v7188_v63 = vpop.f32.mrb[188].mxu1 }
 0x43c   : > { %v7205_v12 = vadd.f32 %v7188_v63, %v7029_v43  ;;  %v7190_v49 = vpop.f32.mrb[189].mxu1 }
 0x43d   : > { %v7206_v30 = vadd.f32 %v7190_v49, %v7030_v46  ;;  %v7192_v33 = vpop.f32.mrb[190].mxu1 }
 0x43e   : > { %v7193_v59 = vpop.f32.mrb[191].mxu1 }
 0x43f   : > { %v7137_v24 = vpop.f32.mrb[188].mxu0 }
 0x440   : > { %v7203_v60 = vadd.f32 %v7137_v24, %v7027_v37  ;;  %v7139_v55 = vpop.f32.mrb[189].mxu0 }
 0x441   : > { %v7204_v6 = vadd.f32 %v7139_v55, %v7028_v57  ;;  %v7141_v18 = vpop.f32.mrb[190].mxu0 }
 0x442   : > { %v7142_v3 = vpop.f32.mrb[191].mxu0 }
 0x44b   : > { %v7337_v62 = vpop.f32.mrb[192].mxu1 }
 0x44c   : > { %v7354_v8 = vadd.f32 %v7337_v62, %v7205_v12  ;;  %v7339_v31 = vpop.f32.mrb[193].mxu1 }
 0x44d   : > { %v7355_v22 = vadd.f32 %v7339_v31, %v7206_v30  ;;  %v7341_v19 = vpop.f32.mrb[194].mxu1 }
 0x44e   : > { %v7342_v56 = vpop.f32.mrb[195].mxu1  ;;  %v7819_v19 = vpop.permute.xlu0 %7818 }
 0x44f   : > { %v7286_v2 = vpop.f32.mrb[192].mxu0 }
 0x450   : > { %v7352_v21 = vadd.f32 %v7286_v2, %v7203_v60  ;;  %v7288_v40 = vpop.f32.mrb[193].mxu0 }
 0x451   : > { %v7353_v15 = vadd.f32 %v7288_v40, %v7204_v6  ;;  %v7290_v45 = vpop.f32.mrb[194].mxu0 }
 0x452   : > { %v7291_v32 = vpop.f32.mrb[195].mxu0 }
 0x45b   : > { %v7486_v34 = vpop.f32.mrb[196].mxu1 }
 0x45c   : > { %v7503_v44 = vadd.f32 %v7486_v34, %v7354_v8  ;;  %v7488_v39 = vpop.f32.mrb[197].mxu1 }
 0x45d   : > { %v7504_v17 = vadd.f32 %v7488_v39, %v7355_v22  ;;  %v7490_v48 = vpop.f32.mrb[198].mxu1 }
 0x45e   : > { %v7491_v23 = vpop.f32.mrb[199].mxu1 }
 0x45f   : > { %v7435_v5 = vpop.f32.mrb[196].mxu0 }
 0x460   : > { %v7501_v10 = vadd.f32 %v7435_v5, %v7352_v21  ;;  %v7437_v9 = vpop.f32.mrb[197].mxu0 }
 0x461   : > { %v7502_v38 = vadd.f32 %v7437_v9, %v7353_v15  ;;  %v7439_v0 = vpop.f32.mrb[198].mxu0 }
 0x462   : > { %v7440_v7 = vpop.f32.mrb[199].mxu0 }
 0x46b   : > { %v7635_v29 = vpop.f32.mrb[200].mxu1 }
 0x46c   : > { %v7652_v25 = vadd.f32 %v7635_v29, %v7503_v44  ;;  %v7637_v1 = vpop.f32.mrb[201].mxu1 }
 0x46d   : > { %v7653_v58 = vadd.f32 %v7637_v1, %v7504_v17  ;;  %v7639_v4 = vpop.f32.mrb[202].mxu1 }
 0x46e   : > { %v7640_v11 = vpop.f32.mrb[203].mxu1 }
 0x46f   : > { %v7584_v27 = vpop.f32.mrb[200].mxu0 }
 0x470   : > { %v7650_v41 = vadd.f32 %v7584_v27, %v7501_v10  ;;  %v7586_v61 = vpop.f32.mrb[201].mxu0 }
 0x471   : > { %v7651_v28 = vadd.f32 %v7586_v61, %v7502_v38  ;;  %v7588_v52 = vpop.f32.mrb[202].mxu0 }
 0x472   : > { %v7589_v51 = vpop.f32.mrb[203].mxu0 }
 0x473   : > { %v7774_v26 = vpop.f32.mrb[104].mxu1 }
 0x474   : > { %v7776_v16 = vpop.f32.mrb[105].mxu1  ;;  %v7823_v47 = vadd.f32 %v7809_v20, %v7774_v26 }
 0x475   : > { %v7824_v43 = vadd.f32 %v7809_v20, %v7776_v16  ;;  %v7778_v35 = vpop.f32.mrb[106].mxu1 }
 0x476   : > { %v8449_v46 = vclamps-f32 %v7823_v47, 0.0  ;;  %v7827_v14 = vadd.f32 %v7814_v54, %v7778_v35  ;;  %v7780_v36 = vpop.f32.mrb[107].mxu1 }
 0x477   : > { %v8450_v53 = vclamps-f32 %v7824_v43, 0.0  ;;  %v7723_v37 = vpop.f32.mrb[104].mxu0  ;;  %v7828_v13 = vadd.f32 %v7814_v54, %v7780_v36 }
 0x478   : > { %v8453_v57 = vclamps-f32 %v7827_v14, 0.0  ;;  %v7821_v42 = vadd.f32 %v7809_v20, %v7723_v37  ;;  %v7725_v50 = vpop.f32.mrb[105].mxu0 }
 0x479   : > { %v8474_v63 = vpack.c.bf16 %v8450_v53, %v8449_v46  ;;  %v8454_v12 = vclamps-f32 %v7828_v13, 0.0  ;;  %v7822_v49 = vadd.f32 %v7809_v20, %v7725_v50  ;;  %v7727_v30 = vpop.f32.mrb[106].mxu0 }
 0x47a   : > { %v8447_v33 = vclamps-f32 %v7821_v42, 0.0  ;;  %v7825_v59 = vadd.f32 %v7814_v54, %v7727_v30  ;;  %v7729_v24 = vpop.f32.mrb[107].mxu0 }
 0x47b   : > { %7898 = vst [vmem:[%s11049_s8 + $0x18] sm:$0xff] %v8474_v63  ;;  %v8476_v60 = vpack.c.bf16 %v8454_v12, %v8453_v57  ;;  %v8448_v55 = vclamps-f32 %v7822_v49, 0.0  ;;  %v7826_v6 = vadd.f32 %v7814_v54, %v7729_v24  ;;  %v7784_v18 = vpop.f32.mrb[204].mxu1 }
 0x47c   : > { %v8451_v3 = vclamps-f32 %v7825_v59, 0.0  ;;  %v7801_v62 = vadd.f32 %v7784_v18, %v7652_v25  ;;  %v7786_v8 = vpop.f32.mrb[205].mxu1 }
 0x47d   : > { %7900 = vst [vmem:[%s11049_s8 + $0x38] sm:$0xff] %v8476_v60  ;;  %v8473_v31 = vpack.c.bf16 %v8448_v55, %v8447_v33  ;;  %v8452_v22 = vclamps-f32 %v7826_v6, 0.0  ;;  %v7802_v56 = vadd.f32 %v7786_v8, %v7653_v58  ;;  %v7788_v2 = vpop.f32.mrb[206].mxu1 }
 0x47e   : > { %v7831_v21 = vadd.f32 %v7819_v19, %v7801_v62  ;;  %v7789_v40 = vpop.f32.mrb[207].mxu1 }
 0x47f   : > { %7897 = vst [vmem:[%s11049_s8 + $0x10] sm:$0xff] %v8473_v31  ;;  %v8475_v15 = vpack.c.bf16 %v8452_v22, %v8451_v3  ;;  %v7832_v45 = vadd.f32 %v7819_v19, %v7802_v56  ;;  %v7733_v32 = vpop.f32.mrb[204].mxu0 }
 0x480   : > { %v8457_v34 = vclamps-f32 %v7831_v21, 0.0  ;;  %v7799_v44 = vadd.f32 %v7733_v32, %v7650_v41  ;;  %v7735_v39 = vpop.f32.mrb[205].mxu0 }
 0x481   : > { %7899 = vst [vmem:[%s11049_s8 + $0x30] sm:$0xff] %v8475_v15  ;;  %v8458_v17 = vclamps-f32 %v7832_v45, 0.0  ;;  %v7800_v48 = vadd.f32 %v7735_v39, %v7651_v28  ;;  %v7737_v23 = vpop.f32.mrb[206].mxu0 }
 0x482   : > { %v7829_v5 = vadd.f32 %v7819_v19, %v7799_v44  ;;  %v7738_v10 = vpop.f32.mrb[207].mxu0 }
 0x483   : > { %v8478_v9 = vpack.c.bf16 %v8458_v17, %v8457_v34  ;;  %v7830_v38 = vadd.f32 %v7819_v19, %v7800_v48 }
 0x484   : > { %v8455_v0 = vclamps-f32 %v7829_v5, 0.0 }
 0x485   : > { %7902 = vst [vmem:[%s11049_s8 + $0x58] sm:$0xff] %v8478_v9  ;;  %v8456_v7 = vclamps-f32 %v7830_v38, 0.0 }
 0x487   : > { %v8477_v29 = vpack.c.bf16 %v8456_v7, %v8455_v0 }
 0x489   : > { %7901 = vst [vmem:[%s11049_s8 + $0x50] sm:$0xff] %v8477_v29 }
 0x48a PF: > { %s13_s12 = sadd.s32 1, %s9038_s12  }
 0x48b   : > { %p10_p4 = scmp.ge.s32.totalorder %s13_s12, 4  }
 0x48d   :  { %12 = sbr.rel (!%p10_p4) target bundleno = 1 (0x1), region = 86 }

</bundles_post_ra>
